<compile_context>
chip_gen: v7x
topology: tpu7x:2x2x1
jax: 0.10.0
libtpu: 0.0.40
codegen_flags: <defaults>
</compile_context>

<pallas_src>
import math

import numpy as np
import jax
import jax.numpy as jnp
from jax.experimental import pallas as pl
from jax.experimental.pallas import tpu as pltpu


_NUM_CONV = 6   # conv layers in the b==1 attention head


# ----------------------------------------------------------------------------
# Fused kernel: q_sample + conv stack + flatten/QKV + attention + head
# ----------------------------------------------------------------------------
def _fused_kernel(*refs):
    (x0_ref, eps_ref, c_ref, feat_ref,
     mprev_ref, mnext_ref, posmask_ref, summat_ref) = refs[:8]
    conv_refs = refs[8:8 + 2 * _NUM_CONV]                    # 6 x (w, b)
    wqkv_ref, bqkv_ref, whead_ref, bhead_ref = refs[8 + 2 * _NUM_CONV:
                                                    12 + 2 * _NUM_CONV]
    out_ref, xnoisy_ref = refs[12 + 2 * _NUM_CONV:]

    f32 = jnp.float32
    bf16 = jnp.bfloat16

    # ------------------------------------------------------------- q_sample
    # x_noisy = c * x_0 + sqrt(1 - c^2) * eps
    c = c_ref[...]                                           # (B, 1)
    xnoisy_ref[...] = (c * x0_ref[...]
                       + jnp.sqrt(jnp.maximum(1.0 - c * c, 0.0)) * eps_ref[...])

    B = summat_ref.shape[0]
    BL = feat_ref.shape[0]
    L = posmask_ref.shape[0]
    E3 = bqkv_ref.shape[1]
    E = E3 // 3

    mprev = mprev_ref[...]                                   # (BL, 1) f32
    mnext = mnext_ref[...]                                   # (BL, 1) f32

    # -------------------------------------- conv1d(k=3,'same') + LeakyReLU(0.2)
    # Channel-last: out[r] = x[r-1] @ W0 + x[r] @ W1 + x[r+1] @ W2.  Neighbor
    # taps via pltpu.roll on the sublane axis (jnp.roll convention:
    # roll(h, 1)[r] == h[r-1]); per-sample boundary rows zeroed by the
    # precomputed masks.  Sequential accumulation into one f32 accumulator.
    def conv_lrelu(h, w_ref, b_ref):
        # h: (BL, Cin) f32 ; w_ref: (3, Cin, Cout) bf16 ; b_ref: (1, Cout) f32
        hm = pltpu.roll(h, 1, 0) * mprev          # x[r-1], masked at sample start
        hp = pltpu.roll(h, BL - 1, 0) * mnext     # x[r+1], masked at sample end
        acc = jnp.dot(h.astype(bf16), w_ref[1], preferred_element_type=f32)
        acc = acc + jnp.dot(hm.astype(bf16), w_ref[0], preferred_element_type=f32)
        acc = acc + jnp.dot(hp.astype(bf16), w_ref[2], preferred_element_type=f32)
        acc = acc + b_ref[...]
        return jnp.where(acc > 0, acc, 0.2 * acc)            # LeakyReLU(0.2)

    h = feat_ref[...]                                        # (BL, Cin0) f32
    for li in range(_NUM_CONV):
        h = conv_lrelu(h, conv_refs[2 * li], conv_refs[2 * li + 1])
    h_bf = h.astype(bf16)                                    # (BL, 64)

    # ---------------- Flatten + (q/k/v Linear ∘ in_proj) fused projection
    # g[r] = h[r] @ Wqkv[r % L]; per-position masks select which weight slice
    # each row uses, then one per-sample sum matmul aggregates rows -> (B, 3E).
    g = jnp.dot(h_bf * posmask_ref[0], wqkv_ref[0], preferred_element_type=f32)
    for l in range(1, L):
        g = g + jnp.dot(h_bf * posmask_ref[l], wqkv_ref[l],
                        preferred_element_type=f32)
    qkv = (jnp.dot(summat_ref[...], g.astype(bf16), preferred_element_type=f32)
           + bqkv_ref[...])                                  # (B, 3E)
    qi = qkv[:, :E]            # 1/sqrt(E) scale already folded into weights
    ki = qkv[:, E:2 * E]
    vi = qkv[:, 2 * E:]

    # ----------------- single-head attention over the length-B "sequence"
    # (PyTorch MHA with a 2-D (B, E) input treats it as an unbatched sequence,
    #  so attention mixes across batch rows — reproduced intentionally.)
    scores = jnp.dot(qi, ki.T, preferred_element_type=f32)   # (B, B), tiny
    m = jnp.max(scores, axis=-1, keepdims=True)
    p = jnp.exp(scores - m)
    p = p * pl.reciprocal(jnp.sum(p, axis=-1, keepdims=True), approx=True)
    ctx = jnp.dot(p, vi, preferred_element_type=f32)         # (B, E)

    # ----- out_proj ∘ classifierhead1 ∘ classifierhead2 (pre-composed affine)
    y = (jnp.dot(ctx.astype(bf16), whead_ref[...], preferred_element_type=f32)
         + bhead_ref[...])
    out_ref[...] = y.astype(out_ref.dtype)                   # (B, 1)


# ----------------------------------------------------------------------------
# Parameter initialization (deterministic, synthetic; stored in kernel layout,
# with all purely-affine chains pre-composed host-side).
# ----------------------------------------------------------------------------
def init_params(key, cin, seq_len):
    E = 256
    feat_dim = 64 * seq_len
    relu_gain = math.sqrt(2.0)
    keys = iter(jax.random.split(key, 32))

    def normal(shape, std):
        return std * jax.random.normal(next(keys), shape, jnp.float32)

    def xavier(shape, fan_in, fan_out, gain):
        return normal(shape, gain * math.sqrt(2.0 / (fan_in + fan_out)))

    params = {}

    # attentionhead conv stack (b == 1): 16->256->256->128->128->64->64.
    # Kernel layout (3 taps, Cin, Cout) bf16  ==  torch (Cout, Cin, 3) transposed.
    conv_dims = [(cin, 256), (256, 256), (256, 128), (128, 128), (128, 64), (64, 64)]
    convs = []
    for ci, co in conv_dims:
        w = normal((3, ci, co), (1.0 / (ci * 3)) ** 0.5).astype(jnp.bfloat16)
        b = normal((1, co), 0.01)
        convs.append((w, b))
    params["convs"] = convs

    # SelfAttention(feat_dim, 256): each branch Linear (xavier gain=relu,
    # bias=1, per _init_weights) composed exactly with its MHA in_proj chunk
    # (xavier gain=1, bias=0) and, for q, the 1/sqrt(E) attention scale.
    def qkv_branch(scale):
        w_lin = xavier((feat_dim, E), feat_dim, E, relu_gain)   # rows = c*L + l
        b_lin = jnp.ones((E,), jnp.float32)
        w_in = xavier((E, E), E, E, 1.0)
        b_in = jnp.zeros((E,), jnp.float32)
        return scale * (w_lin @ w_in), scale * (b_lin @ w_in + b_in)

    wq, bq = qkv_branch(1.0 / math.sqrt(E))
    wk, bk = qkv_branch(1.0)
    wv, bv = qkv_branch(1.0)
    w_qkv = jnp.concatenate([wq, wk, wv], axis=1)               # (feat_dim, 3E)
    # torch nn.Flatten on (B, 64, L) is channel-major (row index c*L + l);
    # re-lay rows into kernel layout (l, c, :).  With real checkpoint weights
    # this same permutation must be applied here.
    w_qkv = w_qkv.reshape(64, seq_len, 3 * E).transpose(1, 0, 2)
    params["w_qkv"] = w_qkv.astype(jnp.bfloat16)                # (L, 64, 3E)
    params["b_qkv"] = jnp.concatenate([bq, bk, bv])[None, :]    # (1, 3E) f32

    # MHA out_proj (xavier relu, bias=1) ∘ classifierhead1 (4 bias-1 Linears,
    # NO activations in the reference) ∘ classifierhead2 (sigmoid-gain xavier,
    # bias=1, and no sigmoid applied in forward): exact affine composition.
    w = xavier((E, E), E, E, relu_gain)
    b = jnp.ones((E,), jnp.float32)
    head_dims = [(256, 128, relu_gain), (128, 64, relu_gain), (64, 32, relu_gain),
                 (32, 16, relu_gain), (16, 1, 1.0)]   # calculate_gain('sigmoid')==1
    for fi, fo, gain in head_dims:
        wl = xavier((fi, fo), fi, fo, gain)
        b = b @ wl + jnp.ones((fo,), jnp.float32)
        w = w @ wl
    params["w_head"] = w.astype(jnp.bfloat16)                   # (E, 1)
    params["b_head"] = b[None, :]                               # (1, 1) f32
    return params


# ----------------------------------------------------------------------------
# Forward pass (b == 1 variant of DiffusionClassifier) -- single pallas_call
# ----------------------------------------------------------------------------
def diffusion_classifier_forward(params, x_0, eps, sqrt_alpha, features):
    B = x_0.shape[0]
    N = x_0.shape[-1]
    _, Cin, L = features.shape
    BL = B * L

    x0_2d = x_0.reshape(B, N)
    eps_2d = eps.reshape(B, N)
    c_2d = sqrt_alpha.reshape(B, 1)
    # channel-last with batch folded into rows: (B*L, Cin)
    feat_cl = jnp.transpose(features, (0, 2, 1)).reshape(BL, Cin)

    # Hoisted constant masks (built with numpy at trace time, no in-kernel iota):
    r = np.arange(BL)
    mprev = jnp.asarray((r % L != 0).astype(np.float32)[:, None])          # (BL,1)
    mnext = jnp.asarray((r % L != L - 1).astype(np.float32)[:, None])      # (BL,1)
    posmask = jnp.asarray((r[None, :] % L == np.arange(L)[:, None])
                          .astype(np.float32)[:, :, None], dtype=jnp.bfloat16)
    summat = jnp.asarray((r[None, :] // L == np.arange(B)[:, None])
                         .astype(np.float32), dtype=jnp.bfloat16)          # (B,BL)

    flat = [x0_2d, eps_2d, c_2d, feat_cl, mprev, mnext, posmask, summat]
    for w, b in params["convs"]:
        flat += [w, b]
    flat += [params["w_qkv"], params["b_qkv"], params["w_head"], params["b_head"]]

    # Single grid-less invocation: every input is one whole-array VMEM block
    # (~1.8 MB resident set).  See module docstring for the per-timestep grid
    # TODO that would amortize the weight DMA and use both v7x TensorCores.
    logits, xnoisy_2d = pl.pallas_call(
        _fused_kernel,
        out_shape=(jax.ShapeDtypeStruct((B, 1), jnp.float32),
                   jax.ShapeDtypeStruct((B, N), jnp.float32)),
        compiler_params=pltpu.CompilerParams(vmem_limit_bytes=8 * 1024 * 1024),
    )(*flat)
    return logits, xnoisy_2d.reshape(x_0.shape)


if __name__ == "__main__":
    key = jax.random.PRNGKey(0)
    k_param, k_x0, k_eps, k_feat = jax.random.split(key, 4)

    B = 2
    b_stage = 1
    factors = [2, 4]                                   # config.factors
    upsampling_out_channels = [8, 16]                  # config.upsampling_out_channels
    Cin = upsampling_out_channels[b_stage]             # 16
    L = math.prod(factors[:b_stage + 1])               # 8  (input_dim)

    params = init_params(k_param, Cin, L)

    # x_0 waveform (B, 1, N); eps ~ N(0,1); deterministic noise level ~0.9
    x_0 = jax.random.normal(k_x0, (B, 1, 64), jnp.float32)
    eps = jax.random.normal(k_eps, (B, 1, 64), jnp.float32)
    sqrt_alpha = jnp.full((B, 1, 1), 0.9, jnp.float32)

    # Stand-in for get_b_blocks_features output: (B, upsampling_out_channels[b], L)
    features = jax.random.normal(k_feat, (B, Cin, L), jnp.float32)

    fwd = jax.jit(diffusion_classifier_forward)
    out, x_noisy = fwd(params, x_0, eps, sqrt_alpha, features)
    jax.block_until_ready(out)
    jax.block_until_ready(x_noisy)
    assert out.shape == (B, 1)
    assert x_noisy.shape == x_0.shape
    assert bool(jnp.all(jnp.isfinite(out)))
    print("KERNEL_OK")
</pallas_src>

<mosaic_0001>
module attributes {stable_mosaic.version = 11 : i64} {
  func.func @_fused_kernel(%arg0: memref<2x64xf32, #tpu.memory_space<vmem>>, %arg1: memref<2x64xf32, #tpu.memory_space<vmem>>, %arg2: memref<2x1xf32, #tpu.memory_space<vmem>>, %arg3: memref<16x16xf32, #tpu.memory_space<vmem>>, %arg4: memref<16x1xf32, #tpu.memory_space<vmem>>, %arg5: memref<16x1xf32, #tpu.memory_space<vmem>>, %arg6: memref<8x16x1xbf16, #tpu.memory_space<vmem>>, %arg7: memref<2x16xbf16, #tpu.memory_space<vmem>>, %arg8: memref<3x16x256xbf16, #tpu.memory_space<vmem>>, %arg9: memref<1x256xf32, #tpu.memory_space<vmem>>, %arg10: memref<3x256x256xbf16, #tpu.memory_space<vmem>>, %arg11: memref<1x256xf32, #tpu.memory_space<vmem>>, %arg12: memref<3x256x128xbf16, #tpu.memory_space<vmem>>, %arg13: memref<1x128xf32, #tpu.memory_space<vmem>>, %arg14: memref<3x128x128xbf16, #tpu.memory_space<vmem>>, %arg15: memref<1x128xf32, #tpu.memory_space<vmem>>, %arg16: memref<3x128x64xbf16, #tpu.memory_space<vmem>>, %arg17: memref<1x64xf32, #tpu.memory_space<vmem>>, %arg18: memref<3x64x64xbf16, #tpu.memory_space<vmem>>, %arg19: memref<1x64xf32, #tpu.memory_space<vmem>>, %arg20: memref<8x64x768xbf16, #tpu.memory_space<vmem>>, %arg21: memref<1x768xf32, #tpu.memory_space<vmem>>, %arg22: memref<256x1xbf16, #tpu.memory_space<vmem>>, %arg23: memref<1x1xf32, #tpu.memory_space<vmem>>, %arg24: memref<2x1xf32, #tpu.memory_space<vmem>>, %arg25: memref<2x64xf32, #tpu.memory_space<vmem>>) attributes {dimension_semantics = [], scalar_prefetch = 0 : i64, scratch_operands = 0 : i64, tpu.core_type = #tpu.core_type<tc>} {
    %c0 = arith.constant 0 : index
    %c0_0 = arith.constant 0 : index
    %0 = vector.load %arg2[%c0, %c0_0] : memref<2x1xf32, #tpu.memory_space<vmem>>, vector<2x1xf32>
    %c0_1 = arith.constant 0 : index
    %c0_2 = arith.constant 0 : index
    %1 = vector.load %arg0[%c0_1, %c0_2] : memref<2x64xf32, #tpu.memory_space<vmem>>, vector<2x64xf32>
    %2 = vector.broadcast %0 : vector<2x1xf32> to vector<2x64xf32>
    %3 = arith.mulf %2, %1 : vector<2x64xf32>
    %4 = arith.mulf %0, %0 : vector<2x1xf32>
    %cst = arith.constant 1.000000e+00 : f32
    %5 = vector.broadcast %cst : f32 to vector<2x1xf32>
    %6 = arith.subf %5, %4 : vector<2x1xf32>
    %cst_3 = arith.constant 0.000000e+00 : f32
    %7 = vector.broadcast %cst_3 : f32 to vector<2x1xf32>
    %8 = arith.maximumf %6, %7 : vector<2x1xf32>
    %9 = math.sqrt %8 : vector<2x1xf32>
    %c0_4 = arith.constant 0 : index
    %c0_5 = arith.constant 0 : index
    %10 = vector.load %arg1[%c0_4, %c0_5] : memref<2x64xf32, #tpu.memory_space<vmem>>, vector<2x64xf32>
    %11 = vector.broadcast %9 : vector<2x1xf32> to vector<2x64xf32>
    %12 = arith.mulf %11, %10 : vector<2x64xf32>
    %13 = arith.addf %3, %12 : vector<2x64xf32>
    %c0_6 = arith.constant 0 : index
    %c0_7 = arith.constant 0 : index
    %14 = vector.load %arg25[%c0_6, %c0_7] : memref<2x64xf32, #tpu.memory_space<vmem>>, vector<2x64xf32>
    tpu.vector_store %arg25[%c0_6, %c0_7], %13 {strides = array<i32>} : memref<2x64xf32, #tpu.memory_space<vmem>>, vector<2x64xf32>,
    %c0_8 = arith.constant 0 : index
    %c0_9 = arith.constant 0 : index
    %15 = vector.load %arg4[%c0_8, %c0_9] : memref<16x1xf32, #tpu.memory_space<vmem>>, vector<16x1xf32>
    %c0_10 = arith.constant 0 : index
    %c0_11 = arith.constant 0 : index
    %16 = vector.load %arg5[%c0_10, %c0_11] : memref<16x1xf32, #tpu.memory_space<vmem>>, vector<16x1xf32>
    %c0_12 = arith.constant 0 : index
    %c0_13 = arith.constant 0 : index
    %17 = vector.load %arg3[%c0_12, %c0_13] : memref<16x16xf32, #tpu.memory_space<vmem>>, vector<16x16xf32>
    %c1_i32 = arith.constant 1 : i32
    %18 = tpu.dynamic_rotate %17 by %c1_i32 dim 0 : vector<16x16xf32>, i32 -> vector<16x16xf32>
    %19 = vector.broadcast %15 : vector<16x1xf32> to vector<16x16xf32>
    %20 = arith.mulf %18, %19 : vector<16x16xf32>
    %c15_i32 = arith.constant 15 : i32
    %21 = tpu.dynamic_rotate %17 by %c15_i32 dim 0 : vector<16x16xf32>, i32 -> vector<16x16xf32>
    %22 = vector.broadcast %16 : vector<16x1xf32> to vector<16x16xf32>
    %23 = arith.mulf %21, %22 : vector<16x16xf32>
    %24 = arith.truncf %17 : vector<16x16xf32> to vector<16x16xbf16>
    %c1 = arith.constant 1 : index
    %c0_14 = arith.constant 0 : index
    %c0_15 = arith.constant 0 : index
    %25 = vector.load %arg8[%c1, %c0_14, %c0_15] : memref<3x16x256xbf16, #tpu.memory_space<vmem>>, vector<1x16x256xbf16>
    %26 = vector.shape_cast %25 : vector<1x16x256xbf16> to vector<16x256xbf16>
    %cst_16 = arith.constant dense<0.000000e+00> : vector<16x256xf32>
    %27 = tpu.matmul %24, %26, %cst_16 {dimension_numbers = #tpu.dot_dimension_numbers<[1], [0], [0], [1], [0, 0, 1, 1], [], []>} : vector<16x16xbf16>, vector<16x256xbf16>, vector<16x256xf32> -> vector<16x256xf32>
    %28 = arith.truncf %20 : vector<16x16xf32> to vector<16x16xbf16>
    %c0_17 = arith.constant 0 : index
    %c0_18 = arith.constant 0 : index
    %c0_19 = arith.constant 0 : index
    %29 = vector.load %arg8[%c0_17, %c0_18, %c0_19] : memref<3x16x256xbf16, #tpu.memory_space<vmem>>, vector<1x16x256xbf16>
    %30 = vector.shape_cast %29 : vector<1x16x256xbf16> to vector<16x256xbf16>
    %cst_20 = arith.constant dense<0.000000e+00> : vector<16x256xf32>
    %31 = tpu.matmul %28, %30, %cst_20 {dimension_numbers = #tpu.dot_dimension_numbers<[1], [0], [0], [1], [0, 0, 1, 1], [], []>} : vector<16x16xbf16>, vector<16x256xbf16>, vector<16x256xf32> -> vector<16x256xf32>
    %32 = arith.addf %27, %31 : vector<16x256xf32>
    %33 = arith.truncf %23 : vector<16x16xf32> to vector<16x16xbf16>
    %c2 = arith.constant 2 : index
    %c0_21 = arith.constant 0 : index
    %c0_22 = arith.constant 0 : index
    %34 = vector.load %arg8[%c2, %c0_21, %c0_22] : memref<3x16x256xbf16, #tpu.memory_space<vmem>>, vector<1x16x256xbf16>
    %35 = vector.shape_cast %34 : vector<1x16x256xbf16> to vector<16x256xbf16>
    %cst_23 = arith.constant dense<0.000000e+00> : vector<16x256xf32>
    %36 = tpu.matmul %33, %35, %cst_23 {dimension_numbers = #tpu.dot_dimension_numbers<[1], [0], [0], [1], [0, 0, 1, 1], [], []>} : vector<16x16xbf16>, vector<16x256xbf16>, vector<16x256xf32> -> vector<16x256xf32>
    %37 = arith.addf %32, %36 : vector<16x256xf32>
    %c0_24 = arith.constant 0 : index
    %c0_25 = arith.constant 0 : index
    %38 = vector.load %arg9[%c0_24, %c0_25] : memref<1x256xf32, #tpu.memory_space<vmem>>, vector<1x256xf32>
    %39 = vector.broadcast %38 : vector<1x256xf32> to vector<16x256xf32>
    %40 = arith.addf %37, %39 : vector<16x256xf32>
    %cst_26 = arith.constant 0.000000e+00 : f32
    %41 = vector.broadcast %cst_26 : f32 to vector<16x256xf32>
    %42 = arith.cmpf ogt, %40, %41 : vector<16x256xf32>
    %cst_27 = arith.constant 2.000000e-01 : f32
    %43 = vector.broadcast %cst_27 : f32 to vector<16x256xf32>
    %44 = arith.mulf %43, %40 : vector<16x256xf32>
    %45 = arith.select %42, %40, %44 : vector<16x256xi1>, vector<16x256xf32>
    %c1_i32_28 = arith.constant 1 : i32
    %46 = tpu.dynamic_rotate %45 by %c1_i32_28 dim 0 : vector<16x256xf32>, i32 -> vector<16x256xf32>
    %47 = vector.broadcast %15 : vector<16x1xf32> to vector<16x256xf32>
    %48 = arith.mulf %46, %47 : vector<16x256xf32>
    %c15_i32_29 = arith.constant 15 : i32
    %49 = tpu.dynamic_rotate %45 by %c15_i32_29 dim 0 : vector<16x256xf32>, i32 -> vector<16x256xf32>
    %50 = vector.broadcast %16 : vector<16x1xf32> to vector<16x256xf32>
    %51 = arith.mulf %49, %50 : vector<16x256xf32>
    %52 = arith.truncf %45 : vector<16x256xf32> to vector<16x256xbf16>
    %c1_30 = arith.constant 1 : index
    %c0_31 = arith.constant 0 : index
    %c0_32 = arith.constant 0 : index
    %53 = vector.load %arg10[%c1_30, %c0_31, %c0_32] : memref<3x256x256xbf16, #tpu.memory_space<vmem>>, vector<1x256x256xbf16>
    %54 = vector.shape_cast %53 : vector<1x256x256xbf16> to vector<256x256xbf16>
    %cst_33 = arith.constant dense<0.000000e+00> : vector<16x256xf32>
    %55 = tpu.matmul %52, %54, %cst_33 {dimension_numbers = #tpu.dot_dimension_numbers<[1], [0], [0], [1], [0, 0, 1, 1], [], []>} : vector<16x256xbf16>, vector<256x256xbf16>, vector<16x256xf32> -> vector<16x256xf32>
    %56 = arith.truncf %48 : vector<16x256xf32> to vector<16x256xbf16>
    %c0_34 = arith.constant 0 : index
    %c0_35 = arith.constant 0 : index
    %c0_36 = arith.constant 0 : index
    %57 = vector.load %arg10[%c0_34, %c0_35, %c0_36] : memref<3x256x256xbf16, #tpu.memory_space<vmem>>, vector<1x256x256xbf16>
    %58 = vector.shape_cast %57 : vector<1x256x256xbf16> to vector<256x256xbf16>
    %cst_37 = arith.constant dense<0.000000e+00> : vector<16x256xf32>
    %59 = tpu.matmul %56, %58, %cst_37 {dimension_numbers = #tpu.dot_dimension_numbers<[1], [0], [0], [1], [0, 0, 1, 1], [], []>} : vector<16x256xbf16>, vector<256x256xbf16>, vector<16x256xf32> -> vector<16x256xf32>
    %60 = arith.addf %55, %59 : vector<16x256xf32>
    %61 = arith.truncf %51 : vector<16x256xf32> to vector<16x256xbf16>
    %c2_38 = arith.constant 2 : index
    %c0_39 = arith.constant 0 : index
    %c0_40 = arith.constant 0 : index
    %62 = vector.load %arg10[%c2_38, %c0_39, %c0_40] : memref<3x256x256xbf16, #tpu.memory_space<vmem>>, vector<1x256x256xbf16>
    %63 = vector.shape_cast %62 : vector<1x256x256xbf16> to vector<256x256xbf16>
    %cst_41 = arith.constant dense<0.000000e+00> : vector<16x256xf32>
    %64 = tpu.matmul %61, %63, %cst_41 {dimension_numbers = #tpu.dot_dimension_numbers<[1], [0], [0], [1], [0, 0, 1, 1], [], []>} : vector<16x256xbf16>, vector<256x256xbf16>, vector<16x256xf32> -> vector<16x256xf32>
    %65 = arith.addf %60, %64 : vector<16x256xf32>
    %c0_42 = arith.constant 0 : index
    %c0_43 = arith.constant 0 : index
    %66 = vector.load %arg11[%c0_42, %c0_43] : memref<1x256xf32, #tpu.memory_space<vmem>>, vector<1x256xf32>
    %67 = vector.broadcast %66 : vector<1x256xf32> to vector<16x256xf32>
    %68 = arith.addf %65, %67 : vector<16x256xf32>
    %cst_44 = arith.constant 0.000000e+00 : f32
    %69 = vector.broadcast %cst_44 : f32 to vector<16x256xf32>
    %70 = arith.cmpf ogt, %68, %69 : vector<16x256xf32>
    %cst_45 = arith.constant 2.000000e-01 : f32
    %71 = vector.broadcast %cst_45 : f32 to vector<16x256xf32>
    %72 = arith.mulf %71, %68 : vector<16x256xf32>
    %73 = arith.select %70, %68, %72 : vector<16x256xi1>, vector<16x256xf32>
    %c1_i32_46 = arith.constant 1 : i32
    %74 = tpu.dynamic_rotate %73 by %c1_i32_46 dim 0 : vector<16x256xf32>, i32 -> vector<16x256xf32>
    %75 = vector.broadcast %15 : vector<16x1xf32> to vector<16x256xf32>
    %76 = arith.mulf %74, %75 : vector<16x256xf32>
    %c15_i32_47 = arith.constant 15 : i32
    %77 = tpu.dynamic_rotate %73 by %c15_i32_47 dim 0 : vector<16x256xf32>, i32 -> vector<16x256xf32>
    %78 = vector.broadcast %16 : vector<16x1xf32> to vector<16x256xf32>
    %79 = arith.mulf %77, %78 : vector<16x256xf32>
    %80 = arith.truncf %73 : vector<16x256xf32> to vector<16x256xbf16>
    %c1_48 = arith.constant 1 : index
    %c0_49 = arith.constant 0 : index
    %c0_50 = arith.constant 0 : index
    %81 = vector.load %arg12[%c1_48, %c0_49, %c0_50] : memref<3x256x128xbf16, #tpu.memory_space<vmem>>, vector<1x256x128xbf16>
    %82 = vector.shape_cast %81 : vector<1x256x128xbf16> to vector<256x128xbf16>
    %cst_51 = arith.constant dense<0.000000e+00> : vector<16x128xf32>
    %83 = tpu.matmul %80, %82, %cst_51 {dimension_numbers = #tpu.dot_dimension_numbers<[1], [0], [0], [1], [0, 0, 1, 1], [], []>} : vector<16x256xbf16>, vector<256x128xbf16>, vector<16x128xf32> -> vector<16x128xf32>
    %84 = arith.truncf %76 : vector<16x256xf32> to vector<16x256xbf16>
    %c0_52 = arith.constant 0 : index
    %c0_53 = arith.constant 0 : index
    %c0_54 = arith.constant 0 : index
    %85 = vector.load %arg12[%c0_52, %c0_53, %c0_54] : memref<3x256x128xbf16, #tpu.memory_space<vmem>>, vector<1x256x128xbf16>
    %86 = vector.shape_cast %85 : vector<1x256x128xbf16> to vector<256x128xbf16>
    %cst_55 = arith.constant dense<0.000000e+00> : vector<16x128xf32>
    %87 = tpu.matmul %84, %86, %cst_55 {dimension_numbers = #tpu.dot_dimension_numbers<[1], [0], [0], [1], [0, 0, 1, 1], [], []>} : vector<16x256xbf16>, vector<256x128xbf16>, vector<16x128xf32> -> vector<16x128xf32>
    %88 = arith.addf %83, %87 : vector<16x128xf32>
    %89 = arith.truncf %79 : vector<16x256xf32> to vector<16x256xbf16>
    %c2_56 = arith.constant 2 : index
    %c0_57 = arith.constant 0 : index
    %c0_58 = arith.constant 0 : index
    %90 = vector.load %arg12[%c2_56, %c0_57, %c0_58] : memref<3x256x128xbf16, #tpu.memory_space<vmem>>, vector<1x256x128xbf16>
    %91 = vector.shape_cast %90 : vector<1x256x128xbf16> to vector<256x128xbf16>
    %cst_59 = arith.constant dense<0.000000e+00> : vector<16x128xf32>
    %92 = tpu.matmul %89, %91, %cst_59 {dimension_numbers = #tpu.dot_dimension_numbers<[1], [0], [0], [1], [0, 0, 1, 1], [], []>} : vector<16x256xbf16>, vector<256x128xbf16>, vector<16x128xf32> -> vector<16x128xf32>
    %93 = arith.addf %88, %92 : vector<16x128xf32>
    %c0_60 = arith.constant 0 : index
    %c0_61 = arith.constant 0 : index
    %94 = vector.load %arg13[%c0_60, %c0_61] : memref<1x128xf32, #tpu.memory_space<vmem>>, vector<1x128xf32>
    %95 = vector.broadcast %94 : vector<1x128xf32> to vector<16x128xf32>
    %96 = arith.addf %93, %95 : vector<16x128xf32>
    %cst_62 = arith.constant 0.000000e+00 : f32
    %97 = vector.broadcast %cst_62 : f32 to vector<16x128xf32>
    %98 = arith.cmpf ogt, %96, %97 : vector<16x128xf32>
    %cst_63 = arith.constant 2.000000e-01 : f32
    %99 = vector.broadcast %cst_63 : f32 to vector<16x128xf32>
    %100 = arith.mulf %99, %96 : vector<16x128xf32>
    %101 = arith.select %98, %96, %100 : vector<16x128xi1>, vector<16x128xf32>
    %c1_i32_64 = arith.constant 1 : i32
    %102 = tpu.dynamic_rotate %101 by %c1_i32_64 dim 0 : vector<16x128xf32>, i32 -> vector<16x128xf32>
    %103 = vector.broadcast %15 : vector<16x1xf32> to vector<16x128xf32>
    %104 = arith.mulf %102, %103 : vector<16x128xf32>
    %c15_i32_65 = arith.constant 15 : i32
    %105 = tpu.dynamic_rotate %101 by %c15_i32_65 dim 0 : vector<16x128xf32>, i32 -> vector<16x128xf32>
    %106 = vector.broadcast %16 : vector<16x1xf32> to vector<16x128xf32>
    %107 = arith.mulf %105, %106 : vector<16x128xf32>
    %108 = arith.truncf %101 : vector<16x128xf32> to vector<16x128xbf16>
    %c1_66 = arith.constant 1 : index
    %c0_67 = arith.constant 0 : index
    %c0_68 = arith.constant 0 : index
    %109 = vector.load %arg14[%c1_66, %c0_67, %c0_68] : memref<3x128x128xbf16, #tpu.memory_space<vmem>>, vector<1x128x128xbf16>
    %110 = vector.shape_cast %109 : vector<1x128x128xbf16> to vector<128x128xbf16>
    %cst_69 = arith.constant dense<0.000000e+00> : vector<16x128xf32>
    %111 = tpu.matmul %108, %110, %cst_69 {dimension_numbers = #tpu.dot_dimension_numbers<[1], [0], [0], [1], [0, 0, 1, 1], [], []>} : vector<16x128xbf16>, vector<128x128xbf16>, vector<16x128xf32> -> vector<16x128xf32>
    %112 = arith.truncf %104 : vector<16x128xf32> to vector<16x128xbf16>
    %c0_70 = arith.constant 0 : index
    %c0_71 = arith.constant 0 : index
    %c0_72 = arith.constant 0 : index
    %113 = vector.load %arg14[%c0_70, %c0_71, %c0_72] : memref<3x128x128xbf16, #tpu.memory_space<vmem>>, vector<1x128x128xbf16>
    %114 = vector.shape_cast %113 : vector<1x128x128xbf16> to vector<128x128xbf16>
    %cst_73 = arith.constant dense<0.000000e+00> : vector<16x128xf32>
    %115 = tpu.matmul %112, %114, %cst_73 {dimension_numbers = #tpu.dot_dimension_numbers<[1], [0], [0], [1], [0, 0, 1, 1], [], []>} : vector<16x128xbf16>, vector<128x128xbf16>, vector<16x128xf32> -> vector<16x128xf32>
    %116 = arith.addf %111, %115 : vector<16x128xf32>
    %117 = arith.truncf %107 : vector<16x128xf32> to vector<16x128xbf16>
    %c2_74 = arith.constant 2 : index
    %c0_75 = arith.constant 0 : index
    %c0_76 = arith.constant 0 : index
    %118 = vector.load %arg14[%c2_74, %c0_75, %c0_76] : memref<3x128x128xbf16, #tpu.memory_space<vmem>>, vector<1x128x128xbf16>
    %119 = vector.shape_cast %118 : vector<1x128x128xbf16> to vector<128x128xbf16>
    %cst_77 = arith.constant dense<0.000000e+00> : vector<16x128xf32>
    %120 = tpu.matmul %117, %119, %cst_77 {dimension_numbers = #tpu.dot_dimension_numbers<[1], [0], [0], [1], [0, 0, 1, 1], [], []>} : vector<16x128xbf16>, vector<128x128xbf16>, vector<16x128xf32> -> vector<16x128xf32>
    %121 = arith.addf %116, %120 : vector<16x128xf32>
    %c0_78 = arith.constant 0 : index
    %c0_79 = arith.constant 0 : index
    %122 = vector.load %arg15[%c0_78, %c0_79] : memref<1x128xf32, #tpu.memory_space<vmem>>, vector<1x128xf32>
    %123 = vector.broadcast %122 : vector<1x128xf32> to vector<16x128xf32>
    %124 = arith.addf %121, %123 : vector<16x128xf32>
    %cst_80 = arith.constant 0.000000e+00 : f32
    %125 = vector.broadcast %cst_80 : f32 to vector<16x128xf32>
    %126 = arith.cmpf ogt, %124, %125 : vector<16x128xf32>
    %cst_81 = arith.constant 2.000000e-01 : f32
    %127 = vector.broadcast %cst_81 : f32 to vector<16x128xf32>
    %128 = arith.mulf %127, %124 : vector<16x128xf32>
    %129 = arith.select %126, %124, %128 : vector<16x128xi1>, vector<16x128xf32>
    %c1_i32_82 = arith.constant 1 : i32
    %130 = tpu.dynamic_rotate %129 by %c1_i32_82 dim 0 : vector<16x128xf32>, i32 -> vector<16x128xf32>
    %131 = vector.broadcast %15 : vector<16x1xf32> to vector<16x128xf32>
    %132 = arith.mulf %130, %131 : vector<16x128xf32>
    %c15_i32_83 = arith.constant 15 : i32
    %133 = tpu.dynamic_rotate %129 by %c15_i32_83 dim 0 : vector<16x128xf32>, i32 -> vector<16x128xf32>
    %134 = vector.broadcast %16 : vector<16x1xf32> to vector<16x128xf32>
    %135 = arith.mulf %133, %134 : vector<16x128xf32>
    %136 = arith.truncf %129 : vector<16x128xf32> to vector<16x128xbf16>
    %c1_84 = arith.constant 1 : index
    %c0_85 = arith.constant 0 : index
    %c0_86 = arith.constant 0 : index
    %137 = vector.load %arg16[%c1_84, %c0_85, %c0_86] : memref<3x128x64xbf16, #tpu.memory_space<vmem>>, vector<1x128x64xbf16>
    %138 = vector.shape_cast %137 : vector<1x128x64xbf16> to vector<128x64xbf16>
    %cst_87 = arith.constant dense<0.000000e+00> : vector<16x64xf32>
    %139 = tpu.matmul %136, %138, %cst_87 {dimension_numbers = #tpu.dot_dimension_numbers<[1], [0], [0], [1], [0, 0, 1, 1], [], []>} : vector<16x128xbf16>, vector<128x64xbf16>, vector<16x64xf32> -> vector<16x64xf32>
    %140 = arith.truncf %132 : vector<16x128xf32> to vector<16x128xbf16>
    %c0_88 = arith.constant 0 : index
    %c0_89 = arith.constant 0 : index
    %c0_90 = arith.constant 0 : index
    %141 = vector.load %arg16[%c0_88, %c0_89, %c0_90] : memref<3x128x64xbf16, #tpu.memory_space<vmem>>, vector<1x128x64xbf16>
    %142 = vector.shape_cast %141 : vector<1x128x64xbf16> to vector<128x64xbf16>
    %cst_91 = arith.constant dense<0.000000e+00> : vector<16x64xf32>
    %143 = tpu.matmul %140, %142, %cst_91 {dimension_numbers = #tpu.dot_dimension_numbers<[1], [0], [0], [1], [0, 0, 1, 1], [], []>} : vector<16x128xbf16>, vector<128x64xbf16>, vector<16x64xf32> -> vector<16x64xf32>
    %144 = arith.addf %139, %143 : vector<16x64xf32>
    %145 = arith.truncf %135 : vector<16x128xf32> to vector<16x128xbf16>
    %c2_92 = arith.constant 2 : index
    %c0_93 = arith.constant 0 : index
    %c0_94 = arith.constant 0 : index
    %146 = vector.load %arg16[%c2_92, %c0_93, %c0_94] : memref<3x128x64xbf16, #tpu.memory_space<vmem>>, vector<1x128x64xbf16>
    %147 = vector.shape_cast %146 : vector<1x128x64xbf16> to vector<128x64xbf16>
    %cst_95 = arith.constant dense<0.000000e+00> : vector<16x64xf32>
    %148 = tpu.matmul %145, %147, %cst_95 {dimension_numbers = #tpu.dot_dimension_numbers<[1], [0], [0], [1], [0, 0, 1, 1], [], []>} : vector<16x128xbf16>, vector<128x64xbf16>, vector<16x64xf32> -> vector<16x64xf32>
    %149 = arith.addf %144, %148 : vector<16x64xf32>
    %c0_96 = arith.constant 0 : index
    %c0_97 = arith.constant 0 : index
    %150 = vector.load %arg17[%c0_96, %c0_97] : memref<1x64xf32, #tpu.memory_space<vmem>>, vector<1x64xf32>
    %151 = vector.broadcast %150 : vector<1x64xf32> to vector<16x64xf32>
    %152 = arith.addf %149, %151 : vector<16x64xf32>
    %cst_98 = arith.constant 0.000000e+00 : f32
    %153 = vector.broadcast %cst_98 : f32 to vector<16x64xf32>
    %154 = arith.cmpf ogt, %152, %153 : vector<16x64xf32>
    %cst_99 = arith.constant 2.000000e-01 : f32
    %155 = vector.broadcast %cst_99 : f32 to vector<16x64xf32>
    %156 = arith.mulf %155, %152 : vector<16x64xf32>
    %157 = arith.select %154, %152, %156 : vector<16x64xi1>, vector<16x64xf32>
    %c1_i32_100 = arith.constant 1 : i32
    %158 = tpu.dynamic_rotate %157 by %c1_i32_100 dim 0 : vector<16x64xf32>, i32 -> vector<16x64xf32>
    %159 = vector.broadcast %15 : vector<16x1xf32> to vector<16x64xf32>
    %160 = arith.mulf %158, %159 : vector<16x64xf32>
    %c15_i32_101 = arith.constant 15 : i32
    %161 = tpu.dynamic_rotate %157 by %c15_i32_101 dim 0 : vector<16x64xf32>, i32 -> vector<16x64xf32>
    %162 = vector.broadcast %16 : vector<16x1xf32> to vector<16x64xf32>
    %163 = arith.mulf %161, %162 : vector<16x64xf32>
    %164 = arith.truncf %157 : vector<16x64xf32> to vector<16x64xbf16>
    %c1_102 = arith.constant 1 : index
    %c0_103 = arith.constant 0 : index
    %c0_104 = arith.constant 0 : index
    %165 = vector.load %arg18[%c1_102, %c0_103, %c0_104] : memref<3x64x64xbf16, #tpu.memory_space<vmem>>, vector<1x64x64xbf16>
    %166 = vector.shape_cast %165 : vector<1x64x64xbf16> to vector<64x64xbf16>
    %cst_105 = arith.constant dense<0.000000e+00> : vector<16x64xf32>
    %167 = tpu.matmul %164, %166, %cst_105 {dimension_numbers = #tpu.dot_dimension_numbers<[1], [0], [0], [1], [0, 0, 1, 1], [], []>} : vector<16x64xbf16>, vector<64x64xbf16>, vector<16x64xf32> -> vector<16x64xf32>
    %168 = arith.truncf %160 : vector<16x64xf32> to vector<16x64xbf16>
    %c0_106 = arith.constant 0 : index
    %c0_107 = arith.constant 0 : index
    %c0_108 = arith.constant 0 : index
    %169 = vector.load %arg18[%c0_106, %c0_107, %c0_108] : memref<3x64x64xbf16, #tpu.memory_space<vmem>>, vector<1x64x64xbf16>
    %170 = vector.shape_cast %169 : vector<1x64x64xbf16> to vector<64x64xbf16>
    %cst_109 = arith.constant dense<0.000000e+00> : vector<16x64xf32>
    %171 = tpu.matmul %168, %170, %cst_109 {dimension_numbers = #tpu.dot_dimension_numbers<[1], [0], [0], [1], [0, 0, 1, 1], [], []>} : vector<16x64xbf16>, vector<64x64xbf16>, vector<16x64xf32> -> vector<16x64xf32>
    %172 = arith.addf %167, %171 : vector<16x64xf32>
    %173 = arith.truncf %163 : vector<16x64xf32> to vector<16x64xbf16>
    %c2_110 = arith.constant 2 : index
    %c0_111 = arith.constant 0 : index
    %c0_112 = arith.constant 0 : index
    %174 = vector.load %arg18[%c2_110, %c0_111, %c0_112] : memref<3x64x64xbf16, #tpu.memory_space<vmem>>, vector<1x64x64xbf16>
    %175 = vector.shape_cast %174 : vector<1x64x64xbf16> to vector<64x64xbf16>
    %cst_113 = arith.constant dense<0.000000e+00> : vector<16x64xf32>
    %176 = tpu.matmul %173, %175, %cst_113 {dimension_numbers = #tpu.dot_dimension_numbers<[1], [0], [0], [1], [0, 0, 1, 1], [], []>} : vector<16x64xbf16>, vector<64x64xbf16>, vector<16x64xf32> -> vector<16x64xf32>
    %177 = arith.addf %172, %176 : vector<16x64xf32>
    %c0_114 = arith.constant 0 : index
    %c0_115 = arith.constant 0 : index
    %178 = vector.load %arg19[%c0_114, %c0_115] : memref<1x64xf32, #tpu.memory_space<vmem>>, vector<1x64xf32>
    %179 = vector.broadcast %178 : vector<1x64xf32> to vector<16x64xf32>
    %180 = arith.addf %177, %179 : vector<16x64xf32>
    %cst_116 = arith.constant 0.000000e+00 : f32
    %181 = vector.broadcast %cst_116 : f32 to vector<16x64xf32>
    %182 = arith.cmpf ogt, %180, %181 : vector<16x64xf32>
    %cst_117 = arith.constant 2.000000e-01 : f32
    %183 = vector.broadcast %cst_117 : f32 to vector<16x64xf32>
    %184 = arith.mulf %183, %180 : vector<16x64xf32>
    %185 = arith.select %182, %180, %184 : vector<16x64xi1>, vector<16x64xf32>
    %186 = arith.truncf %185 : vector<16x64xf32> to vector<16x64xbf16>
    %c0_118 = arith.constant 0 : index
    %c0_119 = arith.constant 0 : index
    %c0_120 = arith.constant 0 : index
    %187 = vector.load %arg6[%c0_118, %c0_119, %c0_120] : memref<8x16x1xbf16, #tpu.memory_space<vmem>>, vector<1x16x1xbf16>
    %188 = vector.shape_cast %187 : vector<1x16x1xbf16> to vector<16x1xbf16>
    %189 = vector.broadcast %188 : vector<16x1xbf16> to vector<16x64xbf16>
    %190 = arith.mulf %186, %189 : vector<16x64xbf16>
    %c0_121 = arith.constant 0 : index
    %c0_122 = arith.constant 0 : index
    %c0_123 = arith.constant 0 : index
    %191 = vector.load %arg20[%c0_121, %c0_122, %c0_123] : memref<8x64x768xbf16, #tpu.memory_space<vmem>>, vector<1x64x768xbf16>
    %192 = vector.shape_cast %191 : vector<1x64x768xbf16> to vector<64x768xbf16>
    %cst_124 = arith.constant dense<0.000000e+00> : vector<16x768xf32>
    %193 = tpu.matmul %190, %192, %cst_124 {dimension_numbers = #tpu.dot_dimension_numbers<[1], [0], [0], [1], [0, 0, 1, 1], [], []>} : vector<16x64xbf16>, vector<64x768xbf16>, vector<16x768xf32> -> vector<16x768xf32>
    %c1_125 = arith.constant 1 : index
    %c0_126 = arith.constant 0 : index
    %c0_127 = arith.constant 0 : index
    %194 = vector.load %arg6[%c1_125, %c0_126, %c0_127] : memref<8x16x1xbf16, #tpu.memory_space<vmem>>, vector<1x16x1xbf16>
    %195 = vector.shape_cast %194 : vector<1x16x1xbf16> to vector<16x1xbf16>
    %196 = vector.broadcast %195 : vector<16x1xbf16> to vector<16x64xbf16>
    %197 = arith.mulf %186, %196 : vector<16x64xbf16>
    %c1_128 = arith.constant 1 : index
    %c0_129 = arith.constant 0 : index
    %c0_130 = arith.constant 0 : index
    %198 = vector.load %arg20[%c1_128, %c0_129, %c0_130] : memref<8x64x768xbf16, #tpu.memory_space<vmem>>, vector<1x64x768xbf16>
    %199 = vector.shape_cast %198 : vector<1x64x768xbf16> to vector<64x768xbf16>
    %cst_131 = arith.constant dense<0.000000e+00> : vector<16x768xf32>
    %200 = tpu.matmul %197, %199, %cst_131 {dimension_numbers = #tpu.dot_dimension_numbers<[1], [0], [0], [1], [0, 0, 1, 1], [], []>} : vector<16x64xbf16>, vector<64x768xbf16>, vector<16x768xf32> -> vector<16x768xf32>
    %201 = arith.addf %193, %200 : vector<16x768xf32>
    %c2_132 = arith.constant 2 : index
    %c0_133 = arith.constant 0 : index
    %c0_134 = arith.constant 0 : index
    %202 = vector.load %arg6[%c2_132, %c0_133, %c0_134] : memref<8x16x1xbf16, #tpu.memory_space<vmem>>, vector<1x16x1xbf16>
    %203 = vector.shape_cast %202 : vector<1x16x1xbf16> to vector<16x1xbf16>
    %204 = vector.broadcast %203 : vector<16x1xbf16> to vector<16x64xbf16>
    %205 = arith.mulf %186, %204 : vector<16x64xbf16>
    %c2_135 = arith.constant 2 : index
    %c0_136 = arith.constant 0 : index
    %c0_137 = arith.constant 0 : index
    %206 = vector.load %arg20[%c2_135, %c0_136, %c0_137] : memref<8x64x768xbf16, #tpu.memory_space<vmem>>, vector<1x64x768xbf16>
    %207 = vector.shape_cast %206 : vector<1x64x768xbf16> to vector<64x768xbf16>
    %cst_138 = arith.constant dense<0.000000e+00> : vector<16x768xf32>
    %208 = tpu.matmul %205, %207, %cst_138 {dimension_numbers = #tpu.dot_dimension_numbers<[1], [0], [0], [1], [0, 0, 1, 1], [], []>} : vector<16x64xbf16>, vector<64x768xbf16>, vector<16x768xf32> -> vector<16x768xf32>
    %209 = arith.addf %201, %208 : vector<16x768xf32>
    %c3 = arith.constant 3 : index
    %c0_139 = arith.constant 0 : index
    %c0_140 = arith.constant 0 : index
    %210 = vector.load %arg6[%c3, %c0_139, %c0_140] : memref<8x16x1xbf16, #tpu.memory_space<vmem>>, vector<1x16x1xbf16>
    %211 = vector.shape_cast %210 : vector<1x16x1xbf16> to vector<16x1xbf16>
    %212 = vector.broadcast %211 : vector<16x1xbf16> to vector<16x64xbf16>
    %213 = arith.mulf %186, %212 : vector<16x64xbf16>
    %c3_141 = arith.constant 3 : index
    %c0_142 = arith.constant 0 : index
    %c0_143 = arith.constant 0 : index
    %214 = vector.load %arg20[%c3_141, %c0_142, %c0_143] : memref<8x64x768xbf16, #tpu.memory_space<vmem>>, vector<1x64x768xbf16>
    %215 = vector.shape_cast %214 : vector<1x64x768xbf16> to vector<64x768xbf16>
    %cst_144 = arith.constant dense<0.000000e+00> : vector<16x768xf32>
    %216 = tpu.matmul %213, %215, %cst_144 {dimension_numbers = #tpu.dot_dimension_numbers<[1], [0], [0], [1], [0, 0, 1, 1], [], []>} : vector<16x64xbf16>, vector<64x768xbf16>, vector<16x768xf32> -> vector<16x768xf32>
    %217 = arith.addf %209, %216 : vector<16x768xf32>
    %c4 = arith.constant 4 : index
    %c0_145 = arith.constant 0 : index
    %c0_146 = arith.constant 0 : index
    %218 = vector.load %arg6[%c4, %c0_145, %c0_146] : memref<8x16x1xbf16, #tpu.memory_space<vmem>>, vector<1x16x1xbf16>
    %219 = vector.shape_cast %218 : vector<1x16x1xbf16> to vector<16x1xbf16>
    %220 = vector.broadcast %219 : vector<16x1xbf16> to vector<16x64xbf16>
    %221 = arith.mulf %186, %220 : vector<16x64xbf16>
    %c4_147 = arith.constant 4 : index
    %c0_148 = arith.constant 0 : index
    %c0_149 = arith.constant 0 : index
    %222 = vector.load %arg20[%c4_147, %c0_148, %c0_149] : memref<8x64x768xbf16, #tpu.memory_space<vmem>>, vector<1x64x768xbf16>
    %223 = vector.shape_cast %222 : vector<1x64x768xbf16> to vector<64x768xbf16>
    %cst_150 = arith.constant dense<0.000000e+00> : vector<16x768xf32>
    %224 = tpu.matmul %221, %223, %cst_150 {dimension_numbers = #tpu.dot_dimension_numbers<[1], [0], [0], [1], [0, 0, 1, 1], [], []>} : vector<16x64xbf16>, vector<64x768xbf16>, vector<16x768xf32> -> vector<16x768xf32>
    %225 = arith.addf %217, %224 : vector<16x768xf32>
    %c5 = arith.constant 5 : index
    %c0_151 = arith.constant 0 : index
    %c0_152 = arith.constant 0 : index
    %226 = vector.load %arg6[%c5, %c0_151, %c0_152] : memref<8x16x1xbf16, #tpu.memory_space<vmem>>, vector<1x16x1xbf16>
    %227 = vector.shape_cast %226 : vector<1x16x1xbf16> to vector<16x1xbf16>
    %228 = vector.broadcast %227 : vector<16x1xbf16> to vector<16x64xbf16>
    %229 = arith.mulf %186, %228 : vector<16x64xbf16>
    %c5_153 = arith.constant 5 : index
    %c0_154 = arith.constant 0 : index
    %c0_155 = arith.constant 0 : index
    %230 = vector.load %arg20[%c5_153, %c0_154, %c0_155] : memref<8x64x768xbf16, #tpu.memory_space<vmem>>, vector<1x64x768xbf16>
    %231 = vector.shape_cast %230 : vector<1x64x768xbf16> to vector<64x768xbf16>
    %cst_156 = arith.constant dense<0.000000e+00> : vector<16x768xf32>
    %232 = tpu.matmul %229, %231, %cst_156 {dimension_numbers = #tpu.dot_dimension_numbers<[1], [0], [0], [1], [0, 0, 1, 1], [], []>} : vector<16x64xbf16>, vector<64x768xbf16>, vector<16x768xf32> -> vector<16x768xf32>
    %233 = arith.addf %225, %232 : vector<16x768xf32>
    %c6 = arith.constant 6 : index
    %c0_157 = arith.constant 0 : index
    %c0_158 = arith.constant 0 : index
    %234 = vector.load %arg6[%c6, %c0_157, %c0_158] : memref<8x16x1xbf16, #tpu.memory_space<vmem>>, vector<1x16x1xbf16>
    %235 = vector.shape_cast %234 : vector<1x16x1xbf16> to vector<16x1xbf16>
    %236 = vector.broadcast %235 : vector<16x1xbf16> to vector<16x64xbf16>
    %237 = arith.mulf %186, %236 : vector<16x64xbf16>
    %c6_159 = arith.constant 6 : index
    %c0_160 = arith.constant 0 : index
    %c0_161 = arith.constant 0 : index
    %238 = vector.load %arg20[%c6_159, %c0_160, %c0_161] : memref<8x64x768xbf16, #tpu.memory_space<vmem>>, vector<1x64x768xbf16>
    %239 = vector.shape_cast %238 : vector<1x64x768xbf16> to vector<64x768xbf16>
    %cst_162 = arith.constant dense<0.000000e+00> : vector<16x768xf32>
    %240 = tpu.matmul %237, %239, %cst_162 {dimension_numbers = #tpu.dot_dimension_numbers<[1], [0], [0], [1], [0, 0, 1, 1], [], []>} : vector<16x64xbf16>, vector<64x768xbf16>, vector<16x768xf32> -> vector<16x768xf32>
    %241 = arith.addf %233, %240 : vector<16x768xf32>
    %c7 = arith.constant 7 : index
    %c0_163 = arith.constant 0 : index
    %c0_164 = arith.constant 0 : index
    %242 = vector.load %arg6[%c7, %c0_163, %c0_164] : memref<8x16x1xbf16, #tpu.memory_space<vmem>>, vector<1x16x1xbf16>
    %243 = vector.shape_cast %242 : vector<1x16x1xbf16> to vector<16x1xbf16>
    %244 = vector.broadcast %243 : vector<16x1xbf16> to vector<16x64xbf16>
    %245 = arith.mulf %186, %244 : vector<16x64xbf16>
    %c7_165 = arith.constant 7 : index
    %c0_166 = arith.constant 0 : index
    %c0_167 = arith.constant 0 : index
    %246 = vector.load %arg20[%c7_165, %c0_166, %c0_167] : memref<8x64x768xbf16, #tpu.memory_space<vmem>>, vector<1x64x768xbf16>
    %247 = vector.shape_cast %246 : vector<1x64x768xbf16> to vector<64x768xbf16>
    %cst_168 = arith.constant dense<0.000000e+00> : vector<16x768xf32>
    %248 = tpu.matmul %245, %247, %cst_168 {dimension_numbers = #tpu.dot_dimension_numbers<[1], [0], [0], [1], [0, 0, 1, 1], [], []>} : vector<16x64xbf16>, vector<64x768xbf16>, vector<16x768xf32> -> vector<16x768xf32>
    %249 = arith.addf %241, %248 : vector<16x768xf32>
    %c0_169 = arith.constant 0 : index
    %c0_170 = arith.constant 0 : index
    %250 = vector.load %arg7[%c0_169, %c0_170] : memref<2x16xbf16, #tpu.memory_space<vmem>>, vector<2x16xbf16>
    %251 = arith.truncf %249 : vector<16x768xf32> to vector<16x768xbf16>
    %cst_171 = arith.constant dense<0.000000e+00> : vector<2x768xf32>
    %252 = tpu.matmul %250, %251, %cst_171 {dimension_numbers = #tpu.dot_dimension_numbers<[1], [0], [0], [1], [0, 0, 1, 1], [], []>} : vector<2x16xbf16>, vector<16x768xbf16>, vector<2x768xf32> -> vector<2x768xf32>
    %c0_172 = arith.constant 0 : index
    %c0_173 = arith.constant 0 : index
    %253 = vector.load %arg21[%c0_172, %c0_173] : memref<1x768xf32, #tpu.memory_space<vmem>>, vector<1x768xf32>
    %254 = vector.broadcast %253 : vector<1x768xf32> to vector<2x768xf32>
    %255 = arith.addf %252, %254 : vector<2x768xf32>
    %256 = vector.extract_strided_slice %255 {offsets = [0, 0], sizes = [2, 256], strides = [1, 1]} : vector<2x768xf32> to vector<2x256xf32>
    %257 = vector.extract_strided_slice %255 {offsets = [0, 256], sizes = [2, 256], strides = [1, 1]} : vector<2x768xf32> to vector<2x256xf32>
    %258 = vector.extract_strided_slice %255 {offsets = [0, 512], sizes = [2, 256], strides = [1, 1]} : vector<2x768xf32> to vector<2x256xf32>
    %259 = tpu.transpose %257, [1, 0] : vector<2x256xf32> -> vector<256x2xf32>
    %cst_174 = arith.constant dense<0.000000e+00> : vector<2x2xf32>
    %260 = tpu.matmul %256, %259, %cst_174 {dimension_numbers = #tpu.dot_dimension_numbers<[1], [0], [0], [1], [0, 0, 1, 1], [], []>} : vector<2x256xf32>, vector<256x2xf32>, vector<2x2xf32> -> vector<2x2xf32>
    %cst_175 = arith.constant dense<0xFF800000> : vector<2xf32>
    %261 = vector.multi_reduction <maximumf>, %260, %cst_175 [1] : vector<2x2xf32> to vector<2xf32>
    %262 = vector.shape_cast %261 : vector<2xf32> to vector<2x1xf32>
    %263 = vector.broadcast %262 : vector<2x1xf32> to vector<2x2xf32>
    %264 = arith.subf %260, %263 : vector<2x2xf32>
    %265 = math.exp %264 : vector<2x2xf32>
    %cst_176 = arith.constant dense<0.000000e+00> : vector<2xf32>
    %266 = vector.multi_reduction <add>, %265, %cst_176 [1] : vector<2x2xf32> to vector<2xf32>
    %267 = vector.shape_cast %266 : vector<2xf32> to vector<2x1xf32>
    %268 = tpu.reciprocal %267 {approx = true} : vector<2x1xf32> -> vector<2x1xf32>
    %269 = vector.broadcast %268 : vector<2x1xf32> to vector<2x2xf32>
    %270 = arith.mulf %265, %269 : vector<2x2xf32>
    %cst_177 = arith.constant dense<0.000000e+00> : vector<2x256xf32>
    %271 = tpu.matmul %270, %258, %cst_177 {dimension_numbers = #tpu.dot_dimension_numbers<[1], [0], [0], [1], [0, 0, 1, 1], [], []>} : vector<2x2xf32>, vector<2x256xf32>, vector<2x256xf32> -> vector<2x256xf32>
    %272 = arith.truncf %271 : vector<2x256xf32> to vector<2x256xbf16>
    %c0_178 = arith.constant 0 : index
    %c0_179 = arith.constant 0 : index
    %273 = vector.load %arg22[%c0_178, %c0_179] : memref<256x1xbf16, #tpu.memory_space<vmem>>, vector<256x1xbf16>
    %cst_180 = arith.constant dense<0.000000e+00> : vector<2x1xf32>
    %274 = tpu.matmul %272, %273, %cst_180 {dimension_numbers = #tpu.dot_dimension_numbers<[1], [0], [0], [1], [0, 0, 1, 1], [], []>} : vector<2x256xbf16>, vector<256x1xbf16>, vector<2x1xf32> -> vector<2x1xf32>
    %c0_181 = arith.constant 0 : index
    %c0_182 = arith.constant 0 : index
    %275 = vector.load %arg23[%c0_181, %c0_182] : memref<1x1xf32, #tpu.memory_space<vmem>>, vector<1x1xf32>
    %276 = vector.broadcast %275 : vector<1x1xf32> to vector<2x1xf32>
    %277 = arith.addf %274, %276 : vector<2x1xf32>
    %c0_183 = arith.constant 0 : index
    %c0_184 = arith.constant 0 : index
    %278 = vector.load %arg24[%c0_183, %c0_184] : memref<2x1xf32, #tpu.memory_space<vmem>>, vector<2x1xf32>
    tpu.vector_store %arg24[%c0_183, %c0_184], %277 {strides = array<i32>} : memref<2x1xf32, #tpu.memory_space<vmem>>, vector<2x1xf32>,
    return
  }
}

</mosaic_0001>

<bundles_post_ra>
// kernel: diffusion_classifier_forward.1
= control target key start
LH: loop header
LB: loop body
LE: loop exit
PB: predicated region body
PF: predicated region fallthrough
CT: control target
= control target key end

     0   :  { %s8990_s0 = inlined_call_operand.vmem [shape: f32[2,64], index: 0, kind: input, shape index: {}]   ;;  %s8991_s1 = inlined_call_operand.hbm [shape: f32[2,64], index: 1, kind: input, shape index: {}]   ;;  %s8992_s2 = inlined_call_operand.vmem [shape: f32[2,1], index: 2, kind: input, shape index: {}]   ;;  %s8993_s3 = inlined_call_operand.vmem [shape: f32[16,16], index: 3, kind: input, shape index: {}]   ;;  %s8994_s4 = inlined_call_operand.hbm [shape: f32[16,1], index: 4, kind: input, shape index: {}]   ;;  %s8995_s5 = inlined_call_operand.vmem [shape: f32[16,1], index: 5, kind: input, shape index: {}]   ;;  %s8996_s6 = inlined_call_operand.hbm [shape: bf16[8,16,1], index: 6, kind: input, shape index: {}]   ;;  %s8997_s7 = inlined_call_operand.hbm [shape: bf16[2,16], index: 7, kind: input, shape index: {}]   ;;  %s8998_s8 = inlined_call_operand.hbm [shape: bf16[3,16,256], index: 8, kind: input, shape index: {}]   ;;  %s8999_s9 = inlined_call_operand.hbm [shape: f32[1,256], index: 9, kind: input, shape index: {}]   ;;  %s9000_s10 = inlined_call_operand.hbm [shape: bf16[3,256,256], index: 10, kind: input, shape index: {}]   ;;  %s9001_s11 = inlined_call_operand.hbm [shape: f32[1,256], index: 11, kind: input, shape index: {}]   ;;  %s9002_s12 = inlined_call_operand.vmem [shape: bf16[3,256,128], index: 12, kind: input, shape index: {}]   ;;  %s9003_s13 = inlined_call_operand.hbm [shape: f32[1,128], index: 13, kind: input, shape index: {}]   ;;  %s9004_s14 = inlined_call_operand.hbm [shape: bf16[3,128,128], index: 14, kind: input, shape index: {}]   ;;  %s9005_s15 = inlined_call_operand.hbm [shape: f32[1,128], index: 15, kind: input, shape index: {}]   ;;  %s9006_s16 = inlined_call_operand.vmem [shape: bf16[3,128,64], index: 16, kind: input, shape index: {}]   ;;  %s9007_s17 = inlined_call_operand.hbm [shape: f32[1,64], index: 17, kind: input, shape index: {}]   ;;  %s9008_s18 = inlined_call_operand.vmem [shape: bf16[3,64,64], index: 18, kind: input, shape index: {}]   ;;  %s9009_s19 = inlined_call_operand.hbm [shape: f32[1,64], index: 19, kind: input, shape index: {}]   ;;  %s9010_s20 = inlined_call_operand.hbm [shape: bf16[8,64,768], index: 20, kind: input, shape index: {}]   ;;  %s9011_s21 = inlined_call_operand.hbm [shape: f32[1,768], index: 21, kind: input, shape index: {}]   ;;  %s9012_s22 = inlined_call_operand.vmem [shape: bf16[256,1], index: 22, kind: input, shape index: {}]   ;;  %s9013_s23 = inlined_call_operand.<no memory space> [shape: f32[1,1], index: 23, kind: input, shape index: {}]   ;;  %s9014_s24 = inlined_call_operand.vmem [shape: f32[2,1], index: 24, kind: output, shape index: {0}]   ;;  %s9015_s25 = inlined_call_operand.hbm [shape: f32[2,64], index: 25, kind: output, shape index: {1}]  }
   0x1   :  { %9025 = sst [smem:[#allocation37_spill]] %s8990_s0  ;;  %v31_v0 = vstv %s9013_s23 }
   0x2   :  { %9026 = sst [smem:[#allocation38_spill]] %s8991_s1  ;;  %32 = vst [vmem:[#allocation2] sm:$0x1] %v31_v0 }
   0x3   :  { %9027 = sst [smem:[#allocation39_spill]] %s8992_s2 }
   0x4   :  { %9028 = sst [smem:[#allocation40_spill]] %s8993_s3 }
   0x5   :  { %9029 = sst [smem:[#allocation41_spill]] %s8994_s4 }
   0x6   :  { %9030 = sst [smem:[#allocation42_spill]] %s8995_s5 }
   0x7   :  { %9031 = sst [smem:[#allocation43_spill]] %s8996_s6 }
   0x8   :  { %9032 = sst [smem:[#allocation44_spill]] %s8997_s7 }
   0x9   :  { %9033 = sst [smem:[#allocation45_spill]] %s8998_s8 }
   0xa   :  { %9034 = sst [smem:[#allocation46_spill]] %s8999_s9 }
   0xb   :  { %9035 = sst [smem:[#allocation47_spill]] %s9014_s24 }
   0xc   :  { %9036 = sst [smem:[#allocation48_spill]] %s9015_s25 }
   0xd   :  { %33 = vsyncpa [#allocation4], 0 }
   0xe   :  { %34 = vsyncpa [#allocation7], 0 }
   0xf   :  { %35 = vsyncpa [#allocation10], 0 }
  0x10   :  { %36 = vsyncpa [#allocation13], 0 }
  0x11   :  { %37 = vsyncpa [#allocation16], 0 }
  0x12   :  { %38 = vsyncpa [#allocation19], 0 }
  0x13   :  { %39 = vsyncpa [#allocation22], 0 }
  0x14   :  { %40 = vsyncpa [#allocation25], 0 }
  0x15   :  { %41 = vsyncpa [#allocation5], 0  ;;  %s7890_s6 = smov [#allocation6]   ;;  %s9037_s26 = sld [smem:[#allocation41_spill]] }
  0x16   :  { %s63_s30 = sshll.u32 %s7890_s6, 4  ;;  %s64_s30 = int_to_ptr.vmem [resolvable:$true] %s63_s30 }
  0x1b   :  { %s7520_s1 = scalar_lea.hbm %s9037_s26, 256 }
  0x1c   :  { %p7521_p0 = scmp.ne.s32.totalorder %s9037_s26, %s7520_s1  ;;  %p7524_p1 = scmp.lt.u32.totalorder %s7520_s1, %s9037_s26 }
  0x1e   :  { %p7526_p2 = pnand %p7524_p1, %p7521_p0 }
  0x20   :  { %7529 = shalt.err (!%p7526_p2)
}
  0x21   :  { %s7530_s28 = scalar_lea.vmem %s64_s30, 256  ;;  %p7535_p4 = scmp.lt.s32.totalorder %s64_s30, %s64_s30 }
  0x22   :  { %p7531_p3 = scmp.ne.s32.totalorder %s64_s30, %s7530_s28  ;;  %p7536_p5 = scmp.lt.s32.totalorder %s7530_s28, %s7530_s28 }
  0x24   :  { %p7537_p6 = por %p7536_p5, %p7535_p4 }
  0x26   :  { %p7538_p7 = pnand %p7537_p6, %p7531_p3 }
  0x28   :  { %7541 = shalt.err (!%p7538_p7)
}
  0x29   :  { %s7891_s9 = smov 128   ;;  %s7892_s5 = smov 8  }
  0x2a   :  { %69 = dma.hbm_to_vmem [thread:$0]  %s9037_s26, 256, %s64_s30, [#allocation7], %s7891_s9, %s7891_s9, %s7892_s5  }
  0x2b   :  { %s7893_s2 = smov [#allocation9]   ;;  %s7894_s7 = smov [#allocation12]  }
  0x2c   :  { %s90_s6 = sshll.u32 %s7893_s2, 4  ;;  %s112_s3 = sshll.u32 %s7894_s7, 4  ;;  %s91_s6 = int_to_ptr.vmem [resolvable:$true] %s90_s6  ;;  %s113_s3 = int_to_ptr.vmem [resolvable:$true] %s112_s3 }
  0x2d   :  { %s9038_s27 = sld [smem:[#allocation44_spill]] }
  0x33   :  { %s7542_s23 = scalar_lea.hbm %s9038_s27, 16 }
  0x34   :  { %p7543_p8 = scmp.ne.s32.totalorder %s9038_s27, %s7542_s23  ;;  %p7546_p9 = scmp.lt.u32.totalorder %s7542_s23, %s9038_s27 }
  0x36   :  { %p7548_p10 = pnand %p7546_p9, %p7543_p8 }
  0x38   :  { %7551 = shalt.err (!%p7548_p10)
}
  0x39   :  { %s7552_s30 = scalar_lea.vmem %s91_s6, 16  ;;  %s7556_s26 = scalar_lea.vmem %s91_s6, 32 }
  0x3a   :  { %p7553_p11 = scmp.ne.s32.totalorder %s91_s6, %s7552_s30  ;;  %p7557_p12 = scmp.lt.s32.totalorder %s91_s6, %s91_s6 }
  0x3b   :  { %p7558_p13 = scmp.lt.s32.totalorder %s7556_s26, %s7552_s30 }
  0x3d   :  { %p7559_p0 = por %p7558_p13, %p7557_p12 }
  0x3f   :  { %p7560_p1 = pnand %p7559_p0, %p7553_p11 }
  0x41   :  { %7563 = shalt.err (!%p7560_p1)
}
  0x42   :  { %93 = dma.hbm_to_vmem [thread:$0]  %s9038_s27, 16, %s91_s6, [#allocation10]  }
  0x43   :  { %s9039_s1 = sld [smem:[#allocation46_spill]] }
  0x49   :  { %s7564_s24 = scalar_lea.hbm %s9039_s1, 32 }
  0x4a   :  { %p7565_p2 = scmp.ne.s32.totalorder %s9039_s1, %s7564_s24  ;;  %p7568_p3 = scmp.lt.u32.totalorder %s7564_s24, %s9039_s1 }
  0x4c   :  { %p7570_p4 = pnand %p7568_p3, %p7565_p2 }
  0x4e   :  { %7573 = shalt.err (!%p7570_p4)
}
  0x4f   :  { %s7574_s28 = scalar_lea.vmem %s113_s3, 32  ;;  %p7579_p6 = scmp.lt.s32.totalorder %s113_s3, %s113_s3 }
  0x50   :  { %p7575_p5 = scmp.ne.s32.totalorder %s113_s3, %s7574_s28  ;;  %p7580_p7 = scmp.lt.s32.totalorder %s7574_s28, %s7574_s28 }
  0x52   :  { %p7581_p8 = por %p7580_p7, %p7579_p6 }
  0x54   :  { %p7582_p9 = pnand %p7581_p8, %p7575_p5 }
  0x56   :  { %7585 = shalt.err (!%p7582_p9)
}
  0x57   :  { %115 = dma.hbm_to_vmem [thread:$0]  %s9039_s1, 32, %s113_s3, [#allocation13]  }
  0x58   :  { %s7895_s30 = smov [#allocation15]   ;;  %s7586_s2 = scalar_lea.hbm %s9001_s11, 32 }
  0x59   :  { %s134_s26 = sshll.u32 %s7895_s30, 4  ;;  %p7587_p10 = scmp.ne.s32.totalorder %s9001_s11, %s7586_s2  ;;  %s135_s26 = int_to_ptr.vmem [resolvable:$true] %s134_s26 }
  0x5a   :  { %p7590_p11 = scmp.lt.u32.totalorder %s7586_s2, %s9001_s11 }
  0x5c   :  { %p7592_p12 = pnand %p7590_p11, %p7587_p10 }
  0x5e   :  { %7595 = shalt.err (!%p7592_p12)
}
  0x5f   :  { %s7596_s23 = scalar_lea.vmem %s135_s26, 32  ;;  %p7601_p0 = scmp.lt.s32.totalorder %s135_s26, %s135_s26 }
  0x60   :  { %p7597_p13 = scmp.ne.s32.totalorder %s135_s26, %s7596_s23  ;;  %p7602_p1 = scmp.lt.s32.totalorder %s7596_s23, %s7596_s23 }
  0x62   :  { %p7603_p2 = por %p7602_p1, %p7601_p0 }
  0x64   :  { %p7604_p3 = pnand %p7603_p2, %p7597_p13 }
  0x66   :  { %7607 = shalt.err (!%p7604_p3)
}
  0x67   :  { %137 = dma.hbm_to_vmem [thread:$0]  %s9001_s11, 32, %s135_s26, [#allocation16]  }
  0x68   :  { %s7896_s4 = smov [#allocation18]   ;;  %s7897_s6 = smov [#allocation21]  }
  0x69   :  { %s155_s28 = sshll.u32 %s7896_s4, 4  ;;  %s180_s27 = sshll.u32 %s7897_s6, 4  ;;  %s156_s28 = int_to_ptr.vmem [resolvable:$true] %s155_s28  ;;  %s8100_s27 = int_to_ptr.vmem [resolvable:$true] %s180_s27 }
  0x6a   :  { %s7608_s29 = scalar_lea.hbm %s9004_s14, 3072 }
  0x6b   :  { %p7609_p4 = scmp.ne.s32.totalorder %s9004_s14, %s7608_s29  ;;  %p7612_p5 = scmp.lt.u32.totalorder %s7608_s29, %s9004_s14 }
  0x6d   :  { %p7614_p6 = pnand %p7612_p5, %p7609_p4 }
  0x6f   :  { %7617 = shalt.err (!%p7614_p6)
}
  0x70   :  { %s7618_s11 = scalar_lea.vmem %s156_s28, 3072  ;;  %p7623_p8 = scmp.lt.s32.totalorder %s156_s28, %s156_s28 }
  0x71   :  { %p7619_p7 = scmp.ne.s32.totalorder %s156_s28, %s7618_s11  ;;  %p7624_p9 = scmp.lt.s32.totalorder %s7618_s11, %s7618_s11 }
  0x73   :  { %p7625_p10 = por %p7624_p9, %p7623_p8 }
  0x75   :  { %p7626_p11 = pnand %p7625_p10, %p7619_p7 }
  0x77   :  { %7629 = shalt.err (!%p7626_p11)
}
  0x78   :  { %s7898_s26 = smov 64   ;;  %s7899_s8 = smov 4  }
  0x79   :  { %161 = dma.hbm_to_vmem [thread:$0]  %s9004_s14, 3072, %s156_s28, [#allocation19], %s7898_s26, %s7898_s26, %s7899_s8  }
  0x7a   :  { %s7630_s6 = scalar_lea.hbm %s9007_s17, 16 }
  0x7b   :  { %p7631_p12 = scmp.ne.s32.totalorder %s9007_s17, %s7630_s6  ;;  %p7634_p13 = scmp.lt.u32.totalorder %s7630_s6, %s9007_s17 }
  0x7d   :  { %p7636_p0 = pnand %p7634_p13, %p7631_p12 }
  0x7f   :  { %7639 = shalt.err (!%p7636_p0)
}
  0x80   :  { %s7640_s7 = scalar_lea.vmem %s8100_s27, 16  ;;  %s7644_s14 = scalar_lea.vmem %s8100_s27, 32 }
  0x81   :  { %p7641_p1 = scmp.ne.s32.totalorder %s8100_s27, %s7640_s7  ;;  %p7645_p2 = scmp.lt.s32.totalorder %s8100_s27, %s8100_s27 }
  0x82   :  { %p7646_p3 = scmp.lt.s32.totalorder %s7644_s14, %s7640_s7 }
  0x84   :  { %p7647_p4 = por %p7646_p3, %p7645_p2 }
  0x86   :  { %p7648_p5 = pnand %p7647_p4, %p7641_p1 }
  0x88   :  { %7651 = shalt.err (!%p7648_p5)
}
  0x89   :  { %183 = dma.hbm_to_vmem [thread:$0]  %s9007_s17, 16, %s8100_s27, [#allocation22]  }
  0x8a   :  { %s7900_s25 = smov [#allocation24]   ;;  %s7652_s1 = scalar_lea.hbm %s9010_s20, 24576 }
  0x8b   :  { %s201_s11 = sshll.u32 %s7900_s25, 4  ;;  %p7653_p6 = scmp.ne.s32.totalorder %s9010_s20, %s7652_s1  ;;  %s202_s11 = int_to_ptr.vmem [resolvable:$true] %s201_s11 }
  0x8c   :  { %p7656_p7 = scmp.lt.u32.totalorder %s7652_s1, %s9010_s20 }
  0x8e   :  { %p7658_p8 = pnand %p7656_p7, %p7653_p6 }
  0x90   :  { %7661 = shalt.err (!%p7658_p8)
}
  0x91   :  { %s7662_s29 = scalar_lea.vmem %s202_s11, 24576  ;;  %p7667_p10 = scmp.lt.s32.totalorder %s202_s11, %s202_s11 }
  0x92   :  { %p7663_p9 = scmp.ne.s32.totalorder %s202_s11, %s7662_s29  ;;  %p7668_p11 = scmp.lt.s32.totalorder %s7662_s29, %s7662_s29 }
  0x94   :  { %p7669_p12 = por %p7668_p11, %p7667_p10 }
  0x96   :  { %p7670_p13 = pnand %p7669_p12, %p7663_p9 }
  0x98   :  { %7673 = shalt.err (!%p7670_p13)
}
  0x99   :  { %s7901_s17 = smov 384   ;;  %s7902_s27 = smov 24  }
  0x9a   :  { %207 = dma.hbm_to_vmem [thread:$0]  %s9010_s20, 24576, %s202_s11, [#allocation25], %s7901_s17, %s7901_s17, %s7902_s27  }
  0x9b   :  { %s7903_s14 = smov [#allocation3]   ;;  %s7904_s24 = smov [#allocation8]  }
  0x9c   :  { %s50_s28 = sshll.u32 %s7903_s14, 4  ;;  %s77_s25 = sshll.u32 %s7904_s24, 4  ;;  %s51_s28 = int_to_ptr.vmem [resolvable:$true] %s50_s28  ;;  %s78_s25 = int_to_ptr.vmem [resolvable:$true] %s77_s25 }
  0x9d   :  { %s9040_s1 = sld [smem:[#allocation38_spill]] }
  0xa3   :  { %s7674_s4 = scalar_lea.hbm %s9040_s1, 32 }
  0xa4   :  { %p7675_p0 = scmp.ne.s32.totalorder %s9040_s1, %s7674_s4  ;;  %p7678_p1 = scmp.lt.u32.totalorder %s7674_s4, %s9040_s1 }
  0xa6   :  { %p7680_p2 = pnand %p7678_p1, %p7675_p0 }
  0xa8   :  { %7683 = shalt.err (!%p7680_p2)
}
  0xa9   :  { %s7684_s20 = scalar_lea.vmem %s51_s28, 32  ;;  %p7689_p4 = scmp.lt.s32.totalorder %s51_s28, %s51_s28 }
  0xaa   :  { %p7685_p3 = scmp.ne.s32.totalorder %s51_s28, %s7684_s20  ;;  %p7690_p5 = scmp.lt.s32.totalorder %s7684_s20, %s7684_s20 }
  0xac   :  { %p7691_p6 = por %p7690_p5, %p7689_p4 }
  0xae   :  { %p7692_p7 = pnand %p7691_p6, %p7685_p3 }
  0xb0   :  { %7695 = shalt.err (!%p7692_p7)
}
  0xb1   :  { %53 = dma.hbm_to_vmem [thread:$0]  %s9040_s1, 32, %s51_s28, [#allocation4]  }
  0xb2   :  { %s9041_s7 = sld [smem:[#allocation43_spill]] }
  0xb8   :  { %s7696_s14 = scalar_lea.hbm %s9041_s7, 1024 }
  0xb9   :  { %p7697_p8 = scmp.ne.s32.totalorder %s9041_s7, %s7696_s14  ;;  %p7700_p9 = scmp.lt.u32.totalorder %s7696_s14, %s9041_s7 }
  0xbb   :  { %p7702_p10 = pnand %p7700_p9, %p7697_p8 }
  0xbd   :  { %7705 = shalt.err (!%p7702_p10)
}
  0xbe   :  { %s7706_s6 = scalar_lea.vmem %s78_s25, 1024  ;;  %p7711_p12 = scmp.lt.s32.totalorder %s78_s25, %s78_s25 }
  0xbf   :  { %p7707_p11 = scmp.ne.s32.totalorder %s78_s25, %s7706_s6  ;;  %p7712_p13 = scmp.lt.s32.totalorder %s7706_s6, %s7706_s6 }
  0xc1   :  { %p7713_p0 = por %p7712_p13, %p7711_p12 }
  0xc3   :  { %p7714_p1 = pnand %p7713_p0, %p7707_p11 }
  0xc5   :  { %7717 = shalt.err (!%p7714_p1)
}
  0xc6   :  { %83 = dma.hbm_to_vmem [thread:$0]  %s9041_s7, 1024, %s78_s25, [#allocation7], %s7898_s26, %s7898_s26, %s7899_s8  }
  0xc7   :  { %s7905_s30 = smov [#allocation11]   ;;  %s7906_s29 = smov [#allocation14]  }
  0xc8   :  { %s99_s0 = sshll.u32 %s7905_s30, 4  ;;  %s121_s20 = sshll.u32 %s7906_s29, 4  ;;  %s100_s0 = int_to_ptr.vmem [resolvable:$true] %s99_s0  ;;  %s122_s20 = int_to_ptr.vmem [resolvable:$true] %s121_s20 }
  0xc9   :  { %s9042_s27 = sld [smem:[#allocation45_spill]] }
  0xcf   :  { %s7718_s2 = scalar_lea.hbm %s9042_s27, 768 }
  0xd0   :  { %p7719_p2 = scmp.ne.s32.totalorder %s9042_s27, %s7718_s2  ;;  %p7722_p3 = scmp.lt.u32.totalorder %s7718_s2, %s9042_s27 }
  0xd2   :  { %p7724_p4 = pnand %p7722_p3, %p7719_p2 }
  0xd4   :  { %7727 = shalt.err (!%p7724_p4)
}
  0xd5   :  { %s7728_s26 = scalar_lea.vmem %s100_s0, 768  ;;  %p7733_p6 = scmp.lt.s32.totalorder %s100_s0, %s100_s0 }
  0xd6   :  { %p7729_p5 = scmp.ne.s32.totalorder %s100_s0, %s7728_s26  ;;  %p7734_p7 = scmp.lt.s32.totalorder %s7728_s26, %s7728_s26 }
  0xd8   :  { %p7735_p8 = por %p7734_p7, %p7733_p6 }
  0xda   :  { %p7736_p9 = pnand %p7735_p8, %p7729_p5 }
  0xdc   :  { %7739 = shalt.err (!%p7736_p9)
}
  0xdd   :  { %105 = dma.hbm_to_vmem [thread:$0]  %s9042_s27, 768, %s100_s0, [#allocation10], %s7891_s9, %s7891_s9, %s7892_s5  }
  0xde   :  { %s7740_s6 = scalar_lea.hbm %s9000_s10, 12288 }
  0xdf   :  { %p7741_p10 = scmp.ne.s32.totalorder %s9000_s10, %s7740_s6  ;;  %p7744_p11 = scmp.lt.u32.totalorder %s7740_s6, %s9000_s10 }
  0xe1   :  { %p7746_p12 = pnand %p7744_p11, %p7741_p10 }
  0xe3   :  { %7749 = shalt.err (!%p7746_p12)
}
  0xe4   :  { %s7750_s11 = scalar_lea.vmem %s122_s20, 12288  ;;  %p7755_p0 = scmp.lt.s32.totalorder %s122_s20, %s122_s20 }
  0xe5   :  { %p7751_p13 = scmp.ne.s32.totalorder %s122_s20, %s7750_s11  ;;  %p7756_p1 = scmp.lt.s32.totalorder %s7750_s11, %s7750_s11 }
  0xe7   :  { %p7757_p2 = por %p7756_p1, %p7755_p0 }
  0xe9   :  { %p7758_p3 = pnand %p7757_p2, %p7751_p13 }
  0xeb   :  { %7761 = shalt.err (!%p7758_p3)
}
  0xec   :  { %127 = dma.hbm_to_vmem [thread:$0]  %s9000_s10, 12288, %s122_s20, [#allocation13], %s7891_s9, %s7891_s9, %s7892_s5  }
  0xed   :  { %s7907_s27 = smov [#allocation17]   ;;  %s7908_s14 = smov [#allocation20]  }
  0xee   :  { %s146_s2 = sshll.u32 %s7907_s27, 4  ;;  %s168_s24 = sshll.u32 %s7908_s14, 4  ;;  %s147_s2 = int_to_ptr.vmem [resolvable:$true] %s146_s2  ;;  %s169_s24 = int_to_ptr.vmem [resolvable:$true] %s168_s24 }
  0xef   :  { %s7762_s26 = scalar_lea.hbm %s9003_s13, 16 }
  0xf0   :  { %p7763_p4 = scmp.ne.s32.totalorder %s9003_s13, %s7762_s26  ;;  %p7766_p5 = scmp.lt.u32.totalorder %s7762_s26, %s9003_s13 }
  0xf2   :  { %p7768_p6 = pnand %p7766_p5, %p7763_p4 }
  0xf4   :  { %7771 = shalt.err (!%p7768_p6)
}
  0xf5   :  { %s7772_s10 = scalar_lea.vmem %s147_s2, 16  ;;  %s7776_s9 = scalar_lea.vmem %s147_s2, 32 }
  0xf6   :  { %p7773_p7 = scmp.ne.s32.totalorder %s147_s2, %s7772_s10  ;;  %p7777_p8 = scmp.lt.s32.totalorder %s147_s2, %s147_s2 }
  0xf7   :  { %p7778_p9 = scmp.lt.s32.totalorder %s7776_s9, %s7772_s10 }
  0xf9   :  { %p7779_p10 = por %p7778_p9, %p7777_p8 }
  0xfb   :  { %p7780_p11 = pnand %p7779_p10, %p7773_p7 }
  0xfd   :  { %7783 = shalt.err (!%p7780_p11)
}
  0xfe   :  { %149 = dma.hbm_to_vmem [thread:$0]  %s9003_s13, 16, %s147_s2, [#allocation16]  }
  0xff   :  { %s7784_s1 = scalar_lea.hbm %s9005_s15, 16 }
 0x100   :  { %p7785_p12 = scmp.ne.s32.totalorder %s9005_s15, %s7784_s1  ;;  %p7788_p13 = scmp.lt.u32.totalorder %s7784_s1, %s9005_s15 }
 0x102   :  { %p7790_p0 = pnand %p7788_p13, %p7785_p12 }
 0x104   :  { %7793 = shalt.err (!%p7790_p0)
}
 0x105   :  { %s7794_s17 = scalar_lea.vmem %s169_s24, 16  ;;  %s7798_s27 = scalar_lea.vmem %s169_s24, 32 }
 0x106   :  { %p7795_p1 = scmp.ne.s32.totalorder %s169_s24, %s7794_s17  ;;  %p7799_p2 = scmp.lt.s32.totalorder %s169_s24, %s169_s24 }
 0x107   :  { %p7800_p3 = scmp.lt.s32.totalorder %s7798_s27, %s7794_s17 }
 0x109   :  { %p7801_p4 = por %p7800_p3, %p7799_p2 }
 0x10b   :  { %p7802_p5 = pnand %p7801_p4, %p7795_p1 }
 0x10d   :  { %7805 = shalt.err (!%p7802_p5)
}
 0x10e   :  { %171 = dma.hbm_to_vmem [thread:$0]  %s9005_s15, 16, %s169_s24, [#allocation19]  }
 0x10f   :  { %s7909_s14 = smov [#allocation23]   ;;  %s7910_s3 = smov [#allocation26]  }
 0x110   :  { %s192_s23 = sshll.u32 %s7909_s14, 4  ;;  %s214_s26 = sshll.u32 %s7910_s3, 4  ;;  %s193_s23 = int_to_ptr.vmem [resolvable:$true] %s192_s23  ;;  %s215_s26 = int_to_ptr.vmem [resolvable:$true] %s214_s26 }
 0x111   :  { %s7806_s7 = scalar_lea.hbm %s9009_s19, 16 }
 0x112   :  { %p7807_p6 = scmp.ne.s32.totalorder %s9009_s19, %s7806_s7  ;;  %p7810_p7 = scmp.lt.u32.totalorder %s7806_s7, %s9009_s19 }
 0x114   :  { %p7812_p8 = pnand %p7810_p7, %p7807_p6 }
 0x116   :  { %7815 = shalt.err (!%p7812_p8)
}
 0x117   :  { %s7816_s15 = scalar_lea.vmem %s193_s23, 16  ;;  %s7820_s24 = scalar_lea.vmem %s193_s23, 32 }
 0x118   :  { %p7817_p9 = scmp.ne.s32.totalorder %s193_s23, %s7816_s15  ;;  %p7821_p10 = scmp.lt.s32.totalorder %s193_s23, %s193_s23 }
 0x119   :  { %p7822_p11 = scmp.lt.s32.totalorder %s7820_s24, %s7816_s15 }
 0x11b   :  { %p7823_p12 = por %p7822_p11, %p7821_p10 }
 0x11d   :  { %p7824_p13 = pnand %p7823_p12, %p7817_p9 }
 0x11f   :  { %7827 = shalt.err (!%p7824_p13)
}
 0x120   :  { %195 = dma.hbm_to_vmem [thread:$0]  %s9009_s19, 16, %s193_s23, [#allocation22]  }
 0x121   :  { %s7828_s30 = scalar_lea.hbm %s9011_s21, 96 }
 0x122   :  { %p7829_p0 = scmp.ne.s32.totalorder %s9011_s21, %s7828_s30  ;;  %p7832_p1 = scmp.lt.u32.totalorder %s7828_s30, %s9011_s21 }
 0x124   :  { %p7834_p2 = pnand %p7832_p1, %p7829_p0 }
 0x126   :  { %7837 = shalt.err (!%p7834_p2)
}
 0x127   :  { %s7838_s27 = scalar_lea.vmem %s215_s26, 96  ;;  %p7843_p4 = scmp.lt.s32.totalorder %s215_s26, %s215_s26 }
 0x128   :  { %p7839_p3 = scmp.ne.s32.totalorder %s215_s26, %s7838_s27  ;;  %p7844_p5 = scmp.lt.s32.totalorder %s7838_s27, %s7838_s27 }
 0x12a   :  { %p7845_p6 = por %p7844_p5, %p7843_p4 }
 0x12c   :  { %p7846_p7 = pnand %p7845_p6, %p7839_p3 }
 0x12e   :  { %7849 = shalt.err (!%p7846_p7)
}
 0x12f   :  { %217 = dma.hbm_to_vmem [thread:$0]  %s9011_s21, 96, %s215_s26, [#allocation25]  }
 0x130   :  { %7872 = dma.done.wait [#allocation4], 32  }
 0x131   :  { %7873 = vsyncadd [#allocation4], 4294967264 }
 0x132   :  { %7874 = dma.done.wait [#allocation7], 1280  }
 0x133   :  { %7875 = vsyncadd [#allocation7], 4294966016 }
 0x134   :  { %7876 = dma.done.wait [#allocation10], 784  }
 0x135   :  { %7877 = vsyncadd [#allocation10], 4294966512 }
 0x136   :  { %7878 = dma.done.wait [#allocation13], 12320  }
 0x137   :  { %7879 = vsyncadd [#allocation13], 4294954976 }
 0x138   :  { %7880 = dma.done.wait [#allocation16], 48  }
 0x139   :  { %7881 = vsyncadd [#allocation16], 4294967248 }
 0x13a   :  { %7882 = dma.done.wait [#allocation19], 3088  }
 0x13b   :  { %7883 = vsyncadd [#allocation19], 4294964208 }
 0x13c   :  { %7884 = dma.done.wait [#allocation22], 32  }
 0x13d   :  { %7885 = vsyncadd [#allocation22], 4294967264 }
 0x13e   :  { %7886 = dma.done.wait [#allocation25], 24672  }
 0x13f   :  { %7887 = vsyncadd [#allocation25], 4294942624  ;;  %v7911_v1 = vmov 0   ;;  %s9043_s14 = sld [smem:[#allocation42_spill]]  ;;  %v296_v3 = vld [vmem:[#allocation6] sm:$0xff]  ;;  %v304_v4 = vlaneseq  ;;  %v297_v6 = vld [vmem:[#allocation6 + $0x8] sm:$0xff] }
 0x140   :  { %6948 = vset.pattern.permute.xlu1 %v7911_v1  ;;  %6947 = vset.pattern.permute.xlu0 %v7911_v1  ;;  %v2896_v8 = vld [vmem:[#allocation8 + $0xc] sm:$0xf]  ;;  %v2895_v9 = vld [vmem:[#allocation8 + $0x8] sm:$0xf]  ;;  %v6949_v10 = vld [vmem:[#allocation11 + $0x14] ss:$8 sps:$4 sm:$0xff]  }
 0x141   :  { %447 = vmatprep.mubr.bf16.mxu0 %v7911_v1  ;;  %391 = vmatprep.mubr.bf16.mxu1 %v7911_v1  ;;  %v8262_v7 = vshrl.u32 %v304_v4, 7  ;;  %v6951_v11 = vld [vmem:[#allocation11 + $0x10] ss:$8 sps:$4 sm:$0xff]   ;;  %v2838_v12 = vld [vmem:[#allocation8 + $0x4] sm:$0xf]  ;;  %s9044_s25 = sld [smem:[#allocation40_spill]] }
 0x142   :  { %311 = vperm.xlu0 %6947, %v296_v3   ;;  %v2837_v13 = vld [vmem:[#allocation8] sm:$0xf]  ;;  %415 = vmatprep.subr.bf16.mxu0 %v6949_v10  ;;  %vm355_vm2 = vcmask 130048   ;;  %v6954_v22 = vld [vmem:[#allocation11 + $0x24] ss:$8 sps:$4 sm:$0xff]   ;;  %vm7913_vm11 = vmmov 0  }
 0x143   :  { %vm306_vm0 = vcmp.lt.s32.totalorder %v8262_v7, 1  ;;  %vm323_vm1 = vcmp.lt.s32.totalorder %v8262_v7, 7  ;;  %v6952_v21 = vld [vmem:[#allocation11 + $0x20] ss:$8 sps:$4 sm:$0xff]   ;;  %416 = vmatpush1.bf16.msra.mxu0 %v6951_v11  ;;  %v6955_v23 = vld [vmem:[#allocation11 + $0x4] ss:$8 sps:$4 sm:$0xff]  }
 0x144   :  { %v6957_v24 = vld [vmem:[#allocation11] ss:$8 sps:$4 sm:$0xff]   ;;  %v3459_v29 = vld [vmem:[#allocation8 + $0x14] sm:$0xf]  ;;  %v3458_v30 = vld [vmem:[#allocation8 + $0x10] sm:$0xf]  ;;  %475 = vmatprep.subr.bf16.mxu0 %v6954_v22  ;;  %359 = vmatprep.subr.bf16.mxu1 %v6955_v23 }
 0x145   :  { %v298_v2 = vld [vmem:[%s9043_s14] sm:$0xff]  ;;  %v299_v5 = vld [vmem:[%s9043_s14 + $0x8] sm:$0xff]  ;;  %360 = vmatpush1.bf16.msra.mxu1 %v6957_v24  ;;  %v4105_v33 = vld [vmem:[#allocation8 + $0x24] sm:$0xf]  ;;  %v8297_v22 = vsub.s32 0, %v8262_v7  ;;  %v8300_v24 = vsub.s32 1, %v8262_v7 }
 0x146   :  { %328 = vperm.xlu1 %6948, %v298_v2   ;;  %316 = vperm.xlu0 %6947, %v297_v6   ;;  %v3782_v31 = vld [vmem:[#allocation8 + $0x1c] sm:$0xf]  ;;  %v3781_v32 = vld [vmem:[#allocation8 + $0x18] sm:$0xf]  ;;  %v4104_v34 = vld [vmem:[#allocation8 + $0x20] sm:$0xf] }
 0x147   :  { %v300_v14 = vld [vmem:[%s9044_s25] sm:$0xff]  ;;  %v301_v15 = vld [vmem:[%s9044_s25 + $0x8] sm:$0xff]  ;;  %v4427_v36 = vld [vmem:[#allocation8 + $0x28] sm:$0xf]  ;;  %s9045_s15 = sld [smem:[#allocation39_spill]]  ;;  %s9046_s1 = sld [smem:[#allocation37_spill]] }
 0x148   :  { %v302_v16 = vrot.slane %v300_v14, 7  ;;  %v303_v17 = vrot.slane %v301_v15, 7  ;;  %v321_v18 = vrot.slane %v300_v14, 1  ;;  %v322_v19 = vrot.slane %v301_v15, 1  ;;  %v4428_v35 = vld [vmem:[#allocation8 + $0x2c] sm:$0xf] }
 0x149   :  { %v338_v20 = vpack.c.bf16 %v301_v15, %v300_v14  ;;  %v4751_v37 = vld [vmem:[#allocation8 + $0x34] sm:$0xf]  ;;  %v4750_v38 = vld [vmem:[#allocation8 + $0x30] sm:$0xf]  ;;  %v5074_v39 = vld [vmem:[#allocation8 + $0x3c] sm:$0xf] }
 0x14a   :  { %333 = vperm.xlu1 %6948, %v299_v5   ;;  %2899 = vperm.xlu0 %6947, %v2895_v9   ;;  %v307_v25 = vsel %vm306_vm0, %v302_v16, %v303_v17  ;;  %v308_v26 = vsel %vm306_vm0, %v303_v17, %v302_v16  ;;  %v324_v27 = vsel %vm323_vm1, %v321_v18, %v322_v19  ;;  %v5073_v40 = vld [vmem:[#allocation8 + $0x38] sm:$0xf]  ;;  %v6958_v46 = vld [vmem:[#allocation14] ss:$8 sps:$4 sm:$0xff]   ;;  %v6963_v51 = vld [vmem:[#allocation14 + $0x14] ss:$8 sps:$4 sm:$0xff]  }
 0x14b   :  { %v325_v28 = vsel %vm323_vm1, %v322_v19, %v321_v18  ;;  %5934 = vmatmul.mubr.msk.bf16.vlgmr.msra.gmra.mrb[0].mxu0 %vm355_vm2, %v338_v20  ;;  %v6960_v41 = vld [vmem:[#allocation14 + $0x4] ss:$8 sps:$4 sm:$0xff]   ;;  %v6961_v54 = vld [vmem:[#allocation14 + $0x10] ss:$8 sps:$4 sm:$0xff]   ;;  %v6964_v56 = vld [vmem:[#allocation14 + $0x20] ss:$8 sps:$4 sm:$0xff]  }
 0x14c   :  { %476 = vmatpush1.bf16.msra.mxu0 %v6952_v21  ;;  %507 = vmatprep.mubr.bf16.mxu0 %v7911_v1  ;;  %v6966_v55 = vld [vmem:[#allocation14 + $0x24] ss:$8 sps:$4 sm:$0xff]   ;;  %v6969_v57 = vld [vmem:[#allocation14 + $0x34] ss:$8 sps:$4 sm:$0xff]   ;;  %v6967_v58 = vld [vmem:[#allocation14 + $0x30] ss:$8 sps:$4 sm:$0xff]  }
 0x14d   :  { %803 = vmatprep.subr.bf16.mxu1 %v6960_v41  ;;  %v6972_v59 = vld [vmem:[#allocation14 + $0x44] ss:$8 sps:$4 sm:$0xff]   ;;  %v6970_v60 = vld [vmem:[#allocation14 + $0x40] ss:$8 sps:$4 sm:$0xff]   ;;  %v6975_v61 = vld [vmem:[#allocation14 + $0x54] ss:$8 sps:$4 sm:$0xff]  }
 0x14e   :  { %2911 = vperm.xlu1 %6948, %v2896_v8   ;;  %2841 = vperm.xlu0 %6947, %v2837_v13   ;;  %v6973_v62 = vld [vmem:[#allocation14 + $0x50] ss:$8 sps:$4 sm:$0xff]   ;;  %v6978_v63 = vld [vmem:[#allocation14 + $0x64] ss:$8 sps:$4 sm:$0xff]   ;;  %v6976_v0 = vld [vmem:[#allocation14 + $0x60] ss:$8 sps:$4 sm:$0xff]  }
 0x14f   :  { %v6981_v2 = vld [vmem:[#allocation14 + $0x74] ss:$8 sps:$4 sm:$0xff]   ;;  %v6979_v3 = vld [vmem:[#allocation14 + $0x70] ss:$8 sps:$4 sm:$0xff]   ;;  %v6984_v4 = vld [vmem:[#allocation14 + $0x84] ss:$8 sps:$4 sm:$0xff]  }
 0x150   :  { %v6982_v5 = vld [vmem:[#allocation14 + $0x80] ss:$8 sps:$4 sm:$0xff]   ;;  %v6987_v6 = vld [vmem:[#allocation14 + $0x94] ss:$8 sps:$4 sm:$0xff]   ;;  %v6985_v8 = vld [vmem:[#allocation14 + $0x90] ss:$8 sps:$4 sm:$0xff]  }
 0x151   :  { %v6990_v9 = vld [vmem:[#allocation14 + $0xa4] ss:$8 sps:$4 sm:$0xff]   ;;  %v6988_v10 = vld [vmem:[#allocation14 + $0xa0] ss:$8 sps:$4 sm:$0xff]   ;;  %v6993_v11 = vld [vmem:[#allocation14 + $0xb4] ss:$8 sps:$4 sm:$0xff]  }
 0x152   :  { %2853 = vperm.xlu1 %6948, %v2838_v12   ;;  %3462 = vperm.xlu0 %6947, %v3458_v30   ;;  %v6991_v12 = vld [vmem:[#allocation14 + $0xb0] ss:$8 sps:$4 sm:$0xff]   ;;  %v6996_v13 = vld [vmem:[#allocation14 + $0xc4] ss:$8 sps:$4 sm:$0xff]   ;;  %v6994_v14 = vld [vmem:[#allocation14 + $0xc0] ss:$8 sps:$4 sm:$0xff]  }
 0x153   :  { %v6999_v15 = vld [vmem:[#allocation14 + $0xd4] ss:$8 sps:$4 sm:$0xff]   ;;  %v6997_v16 = vld [vmem:[#allocation14 + $0xd0] ss:$8 sps:$4 sm:$0xff]   ;;  %v7002_v17 = vld [vmem:[#allocation14 + $0xe4] ss:$8 sps:$4 sm:$0xff]  }
 0x154   :  { %v7000_v18 = vld [vmem:[#allocation14 + $0xe0] ss:$8 sps:$4 sm:$0xff]   ;;  %v7003_v19 = vld [vmem:[#allocation14 + $0xf0] ss:$8 sps:$4 sm:$0xff]   ;;  %v7005_v20 = vld [vmem:[#allocation14 + $0xf4] ss:$8 sps:$4 sm:$0xff]  }
 0x155   :  { %v7008_v21 = vld [vmem:[#allocation14 + $0x104] ss:$8 sps:$4 sm:$0xff]   ;;  %v522_v23 = vld [vmem:[#allocation12] sm:$0x3]  ;;  %s7915_s30 = smov [#allocation27]  }
 0x156   :  { %3474 = vperm.xlu1 %6948, %v3459_v29   ;;  %3785 = vperm.xlu0 %6947, %v3781_v32   ;;  %s5911_s29 = sshll.u32 %s7915_s30, 4  ;;  %s5912_s29 = int_to_ptr.vmem [resolvable:$true] %s5911_s29 }
 0x157   :  { %p7855_p9 = scmp.lt.s32.totalorder %s5912_s29, %s5912_s29 }
 0x15a   :  { %3797 = vperm.xlu1 %6948, %v3782_v31   ;;  %4108 = vperm.xlu0 %6947, %v4104_v34  }
 0x15e   :  { %4120 = vperm.xlu1 %6948, %v4105_v33   ;;  %4431 = vperm.xlu0 %6947, %v4427_v36  }
 0x162   :  { %4443 = vperm.xlu1 %6948, %v4428_v35   ;;  %4754 = vperm.xlu0 %6947, %v4750_v38  }
 0x166   :  { %4766 = vperm.xlu1 %6948, %v4751_v37   ;;  %5077 = vperm.xlu0 %6947, %v5073_v40  }
 0x16a   :  { %5089 = vperm.xlu1 %6948, %v5074_v39  }
 0x1c1   :  { %v8284_v43 = vpop.permute.xlu0 %311 }
 0x1c2   :  { %v319_v47 = vmul.f32 %v8284_v43, %v308_v26 }
 0x1c5   :  { %v8282_v42 = vpop.permute.xlu1 %328  ;;  %v8288_v45 = vpop.permute.xlu0 %316 }
 0x1c6   :  { %v320_v48 = vmul.f32 %v8288_v45, %v307_v25  ;;  %v336_v49 = vmul.f32 %v8282_v42, %v324_v27  ;;  %v527_v25 = vrot.slane %v522_v23, %v8297_v22 }
 0x1c8   :  { %v342_v52 = vpack.c.bf16 %v320_v48, %v319_v47 }
 0x1c9   :  { %v8286_v44 = vpop.permute.xlu1 %333 }
 0x1ca   :  { %v337_v50 = vmul.f32 %v8286_v44, %v325_v28  ;;  %5931 = vmatmul.mubr.msk.bf16.vlgmr.msra.gmra.mrb[0].mxu1 %vm355_vm2, %v342_v52  ;;  %v531_v28 = vrot.slane %v522_v23, %v8300_v24  ;;  %v7011_v23 = vld [vmem:[#allocation14 + $0x114] ss:$8 sps:$4 sm:$0xff]  }
 0x1cb   :  { %804 = vmatpush1.bf16.msra.mxu1 %v6958_v46 }
 0x1cc   :  { %v458_v53 = vpack.c.bf16 %v337_v50, %v336_v49  ;;  %805 = vmatprep.subr.bf16.mxu1 %v6963_v51 }
 0x1ce   :  { %5937 = vmatmul.mubr.msk.bf16.vlgmr.msra.gmra.mrb[0].mxu0 %vm355_vm2, %v458_v53 }
 0x1cf   :  { %806 = vmatpush1.bf16.msra.mxu1 %v6961_v54 }
 0x1d0   :  { %807 = vmatprep.subr.bf16.mxu1 %v6966_v55 }
 0x1d3   :  { %808 = vmatpush1.bf16.msra.mxu1 %v6964_v56 }
 0x1d4   :  { %809 = vmatprep.subr.bf16.mxu1 %v6969_v57 }
 0x1d7   :  { %810 = vmatpush1.bf16.msra.mxu1 %v6967_v58 }
 0x1d8   :  { %811 = vmatprep.subr.bf16.mxu1 %v6972_v59 }
 0x1db   :  { %812 = vmatpush1.bf16.msra.mxu1 %v6970_v60 }
 0x1dc   :  { %813 = vmatprep.subr.bf16.mxu1 %v6975_v61 }
 0x1df   :  { %814 = vmatpush1.bf16.msra.mxu1 %v6973_v62 }
 0x1e0   :  { %815 = vmatprep.subr.bf16.mxu1 %v6978_v63 }
 0x1e3   :  { %816 = vmatpush1.bf16.msra.mxu1 %v6976_v0 }
 0x1e4   :  { %817 = vmatprep.subr.bf16.mxu1 %v6981_v2 }
 0x1e7   :  { %818 = vmatpush1.bf16.msra.mxu1 %v6979_v3 }
 0x1e8   :  { %819 = vmatprep.subr.bf16.mxu1 %v6984_v4 }
 0x1eb   :  { %820 = vmatpush1.bf16.msra.mxu1 %v6982_v5 }
 0x1ec   :  { %821 = vmatprep.subr.bf16.mxu1 %v6987_v6 }
 0x1ef   :  { %822 = vmatpush1.bf16.msra.mxu1 %v6985_v8 }
 0x1f0   :  { %823 = vmatprep.subr.bf16.mxu1 %v6990_v9 }
 0x1f3   :  { %824 = vmatpush1.bf16.msra.mxu1 %v6988_v10 }
 0x1f4   :  { %825 = vmatprep.subr.bf16.mxu1 %v6993_v11 }
 0x1f7   :  { %826 = vmatpush1.bf16.msra.mxu1 %v6991_v12 }
 0x1f8   :  { %827 = vmatprep.subr.bf16.mxu1 %v6996_v13 }
 0x1fb   :  { %828 = vmatpush1.bf16.msra.mxu1 %v6994_v14 }
 0x1fc   :  { %829 = vmatprep.subr.bf16.mxu1 %v6999_v15 }
 0x1ff   :  { %830 = vmatpush1.bf16.msra.mxu1 %v6997_v16 }
 0x200   :  { %831 = vmatprep.subr.bf16.mxu1 %v7002_v17 }
 0x203   :  { %832 = vmatpush1.bf16.msra.mxu1 %v7000_v18 }
 0x204   :  { %833 = vmatprep.subr.bf16.mxu1 %v7005_v20  ;;  %v7006_v20 = vld [vmem:[#allocation14 + $0x100] ss:$8 sps:$4 sm:$0xff]  }
 0x207   :  { %834 = vmatpush1.bf16.msra.mxu1 %v7003_v19 }
 0x208   :  { %1006 = vmatprep.subr.bf16.mxu1 %v7008_v21 }
 0x29d   :  { %v393_v26 = vpop.f32.mrb[0].mxu1 }
 0x29e   :  { %v395_v30 = vpop.f32.mrb[1].mxu1 }
 0x29f   :  { %v397_v33 = vpop.f32.mrb[2].mxu1 }
 0x2a0   :  { %v399_v37 = vpop.f32.mrb[3].mxu1 }
 0x2a1   :  { %v509_v27 = vpop.f32.mrb[0].mxu0 }
 0x2a2   :  { %v6821_v29 = vadd.f32 %v509_v27, %v393_v26  ;;  %v511_v31 = vpop.f32.mrb[1].mxu0  ;;  %v7102_v27 = vld [vmem:[%s9002_s12 + $0x40] sm:$0xff]  }
 0x2a3   :  { %v6822_v32 = vadd.f32 %v511_v31, %v395_v30  ;;  %v513_v34 = vpop.f32.mrb[2].mxu0  ;;  %v7009_v30 = vld [vmem:[#allocation14 + $0x110] ss:$8 sps:$4 sm:$0xff]   ;;  %v7014_v31 = vld [vmem:[#allocation14 + $0x124] ss:$8 sps:$4 sm:$0xff]   ;;  %6508 = vmatprep.subr.bf16.mxu0 %v7102_v27 }
 0x2a4   :  { %v534_v35 = vadd.f32 %v6821_v29, %v527_v25  ;;  %v6823_v36 = vadd.f32 %v513_v34, %v397_v33  ;;  %v515_v38 = vpop.f32.mrb[3].mxu0  ;;  %v7104_v29 = vld [vmem:[%s9002_s12 + $0x48] sm:$0xff]   ;;  %v7106_v33 = vld [vmem:[%s9002_s12 + $0x50] sm:$0xff]  }
 0x2a5   :  { %v535_v39 = vadd.f32 %v6822_v32, %v531_v28  ;;  %v6824_v40 = vadd.f32 %v515_v38, %v399_v37  ;;  %v7105_v32 = vld [vmem:[%s9002_s12 + $0x8] sm:$0xff]   ;;  %v7108_v37 = vld [vmem:[%s9002_s12 + $0x58] sm:$0xff]  }
 0x2a6   :  { %vm538_vm3 = vcmp.gt.f32.partialorder %v534_v35, 0.0  ;;  %v542_v41 = vmul.f32 0.2, %v534_v35  ;;  %v536_v46 = vadd.f32 %v6823_v36, %v527_v25  ;;  %v7012_v34 = vld [vmem:[#allocation14 + $0x120] ss:$8 sps:$4 sm:$0xff]  }
 0x2a7   :  { %vm539_vm4 = vcmp.gt.f32.partialorder %v535_v39, 0.0  ;;  %v543_v47 = vmul.f32 0.2, %v535_v39  ;;  %v537_v48 = vadd.f32 %v6824_v40, %v531_v28  ;;  %v7103_v28 = vld [vmem:[%s9002_s12] sm:$0xff]   ;;  %v7107_v36 = vld [vmem:[%s9002_s12 + $0x10] sm:$0xff]   ;;  %v7109_v40 = vld [vmem:[%s9002_s12 + $0x18] sm:$0xff]  }
 0x2a8   :  { %v8304_v49 = vsel %vm538_vm3, %v534_v35, %v542_v41  ;;  %vm540_vm5 = vcmp.gt.f32.partialorder %v536_v46, 0.0  ;;  %v544_v50 = vmul.f32 0.2, %v536_v46  ;;  %6509 = vmatpush3.bf16.msra.mxu0 %v7103_v28  ;;  %v7017_v35 = vld [vmem:[#allocation14 + $0x134] ss:$8 sps:$4 sm:$0xff]  }
 0x2a9   :  { %v547_v51 = vsel %vm539_vm4, %v535_v39, %v543_v47  ;;  %vm541_vm6 = vcmp.gt.f32.partialorder %v537_v48, 0.0  ;;  %v545_v53 = vmul.f32 0.2, %v537_v48  ;;  %v550_v54 = vrot.slane %v8304_v49, 7  ;;  %6510 = vmatprep.subr.bf16.mxu0 %v7104_v29  ;;  %v7015_v38 = vld [vmem:[#allocation14 + $0x130] ss:$8 sps:$4 sm:$0xff]  }
 0x2aa   :  { %v8306_v52 = vsel %vm540_vm5, %v536_v46, %v544_v50  ;;  %v562_v58 = vrot.slane %v8304_v49, 1  ;;  %v551_v59 = vrot.slane %v547_v51, 7  ;;  %v563_v60 = vrot.slane %v547_v51, 1  ;;  %v7020_v39 = vld [vmem:[#allocation14 + $0x144] ss:$8 sps:$4 sm:$0xff]  }
 0x2ab   :  { %v552_v55 = vrot.slane %v8306_v52, 7  ;;  %v564_v56 = vrot.slane %v8306_v52, 1  ;;  %v574_v57 = vpack.c.bf16 %v8306_v52, %v8304_v49  ;;  %v549_v61 = vsel %vm541_vm6, %v537_v48, %v545_v53  ;;  %v7018_v41 = vld [vmem:[#allocation14 + $0x140] ss:$8 sps:$4 sm:$0xff]   ;;  %v7023_v46 = vld [vmem:[#allocation14 + $0x154] ss:$8 sps:$4 sm:$0xff]  }
 0x2ac   :  { %v553_v62 = vrot.slane %v549_v61, 7  ;;  %v565_v63 = vrot.slane %v549_v61, 1  ;;  %v575_v5 = vpack.c.bf16 %v549_v61, %v547_v51  ;;  %6511 = vmatpush3.bf16.msra.mxu0 %v7105_v32  ;;  %v7021_v47 = vld [vmem:[#allocation14 + $0x150] ss:$8 sps:$4 sm:$0xff]   ;;  %v7026_v48 = vld [vmem:[#allocation14 + $0x164] ss:$8 sps:$4 sm:$0xff]  }
 0x2ad   :  { %v554_v0 = vsel %vm306_vm0, %v550_v54, %v552_v55  ;;  %v556_v2 = vsel %vm306_vm0, %v552_v55, %v550_v54  ;;  %v566_v6 = vsel %vm323_vm1, %v562_v58, %v564_v56  ;;  %v568_v17 = vsel %vm323_vm1, %v564_v56, %v562_v58  ;;  %6512 = vmatprep.subr.bf16.mxu0 %v7106_v33  ;;  %v7024_v50 = vld [vmem:[#allocation14 + $0x160] ss:$8 sps:$4 sm:$0xff]   ;;  %v7029_v51 = vld [vmem:[#allocation14 + $0x174] ss:$8 sps:$4 sm:$0xff]   ;;  %v7027_v53 = vld [vmem:[#allocation14 + $0x170] ss:$8 sps:$4 sm:$0xff]  }
 0x2ae   :  { %v558_v3 = vmul.f32 %v556_v2, %v8284_v43  ;;  %v560_v4 = vmul.f32 %v554_v0, %v8288_v45  ;;  %v555_v8 = vsel %vm306_vm0, %v551_v59, %v553_v62  ;;  %v557_v9 = vsel %vm306_vm0, %v553_v62, %v551_v59  ;;  %v7032_v54 = vld [vmem:[#allocation14 + $0x184] ss:$8 sps:$4 sm:$0xff]   ;;  %v7030_v55 = vld [vmem:[#allocation14 + $0x180] ss:$8 sps:$4 sm:$0xff]   ;;  %v7035_v56 = vld [vmem:[#allocation14 + $0x194] ss:$8 sps:$4 sm:$0xff]  }
 0x2af   :  { %v567_v10 = vsel %vm323_vm1, %v563_v60, %v565_v63  ;;  %v569_v11 = vsel %vm323_vm1, %v565_v63, %v563_v60  ;;  %v559_v12 = vmul.f32 %v557_v9, %v8284_v43  ;;  %v561_v13 = vmul.f32 %v555_v8, %v8288_v45  ;;  %v7033_v58 = vld [vmem:[#allocation14 + $0x190] ss:$8 sps:$4 sm:$0xff]   ;;  %v7038_v59 = vld [vmem:[#allocation14 + $0x1a4] ss:$8 sps:$4 sm:$0xff]   ;;  %v7036_v60 = vld [vmem:[#allocation14 + $0x1a0] ss:$8 sps:$4 sm:$0xff]  }
 0x2b0   :  { %v609_v14 = vpack.c.bf16 %v560_v4, %v558_v3  ;;  %v8333_v15 = vmul.f32 %v567_v10, %v8282_v42  ;;  %v8336_v16 = vmul.f32 %v569_v11, %v8286_v44  ;;  %v8341_v18 = vmul.f32 %v566_v6, %v8282_v42  ;;  %6513 = vmatpush3.bf16.msra.mxu0 %v7107_v36  ;;  %v7041_v61 = vld [vmem:[#allocation14 + $0x1b4] ss:$8 sps:$4 sm:$0xff]   ;;  %v7039_v62 = vld [vmem:[#allocation14 + $0x1b0] ss:$8 sps:$4 sm:$0xff]   ;;  %v7044_v63 = vld [vmem:[#allocation14 + $0x1c4] ss:$8 sps:$4 sm:$0xff]  }
 0x2b1   :  { %v610_v19 = vpack.c.bf16 %v561_v13, %v559_v12  ;;  %v8344_v21 = vmul.f32 %v568_v17, %v8286_v44  ;;  %6514 = vmatprep.subr.bf16.mxu0 %v7108_v37  ;;  %v7042_v0 = vld [vmem:[#allocation14 + $0x1c0] ss:$8 sps:$4 sm:$0xff]   ;;  %v7047_v2 = vld [vmem:[#allocation14 + $0x1d4] ss:$8 sps:$4 sm:$0xff]   ;;  %v7045_v3 = vld [vmem:[#allocation14 + $0x1d0] ss:$8 sps:$4 sm:$0xff]  }
 0x2b2   :  { %v1050_v25 = vpack.c.bf16 %v8336_v16, %v8333_v15  ;;  %v7050_v4 = vld [vmem:[#allocation14 + $0x1e4] ss:$8 sps:$4 sm:$0xff]   ;;  %v7053_v6 = vld [vmem:[#allocation14 + $0x1f4] ss:$8 sps:$4 sm:$0xff]   ;;  %v7051_v8 = vld [vmem:[#allocation14 + $0x1f0] ss:$8 sps:$4 sm:$0xff]  }
 0x2b3   :  { %835 = vmatprep.mubr.bf16.mxu1 %v610_v19  ;;  %v1049_v26 = vpack.c.bf16 %v8344_v21, %v8341_v18  ;;  %v7056_v9 = vld [vmem:[#allocation14 + $0x204] ss:$8 sps:$4 sm:$0xff]   ;;  %v7054_v10 = vld [vmem:[#allocation14 + $0x200] ss:$8 sps:$4 sm:$0xff]   ;;  %v7059_v11 = vld [vmem:[#allocation14 + $0x214] ss:$8 sps:$4 sm:$0xff]  }
 0x2b4   :  { %836 = vmatmul.mubr.bf16.vlgmr.msra.gmra.mrb[4].mxu1 %v609_v14  ;;  %6515 = vmatpush3.bf16.msra.mxu0 %v7109_v40  ;;  %v7057_v12 = vld [vmem:[#allocation14 + $0x210] ss:$8 sps:$4 sm:$0xff]   ;;  %v7062_v13 = vld [vmem:[#allocation14 + $0x224] ss:$8 sps:$4 sm:$0xff]   ;;  %v7060_v14 = vld [vmem:[#allocation14 + $0x220] ss:$8 sps:$4 sm:$0xff]  }
 0x2b5   :  { %1007 = vmatpush1.bf16.msra.mxu1 %v7006_v20  ;;  %1038 = vmatprep.mubr.bf16.mxu1 %v575_v5  ;;  %v7048_v5 = vld [vmem:[#allocation14 + $0x1e0] ss:$8 sps:$4 sm:$0xff]   ;;  %v7065_v17 = vld [vmem:[#allocation14 + $0x234] ss:$8 sps:$4 sm:$0xff]   ;;  %v7063_v19 = vld [vmem:[#allocation14 + $0x230] ss:$8 sps:$4 sm:$0xff]  }
 0x2b6   :  { %1008 = vmatprep.subr.bf16.mxu1 %v7011_v23  ;;  %v7068_v20 = vld [vmem:[#allocation14 + $0x244] ss:$8 sps:$4 sm:$0xff]   ;;  %v7066_v23 = vld [vmem:[#allocation14 + $0x240] ss:$8 sps:$4 sm:$0xff]   ;;  %v7071_v49 = vld [vmem:[#allocation14 + $0x254] ss:$8 sps:$4 sm:$0xff]  }
 0x2b7   :  { %v7069_v52 = vld [vmem:[#allocation14 + $0x250] ss:$8 sps:$4 sm:$0xff]   ;;  %v7072_v15 = vld [vmem:[#allocation14 + $0x260] ss:$8 sps:$4 sm:$0xff]   ;;  %v7077_v16 = vld [vmem:[#allocation14 + $0x274] ss:$8 sps:$4 sm:$0xff]  }
 0x2b8   :  { %v7080_v27 = vld [vmem:[#allocation14 + $0x284] ss:$8 sps:$4 sm:$0xff]   ;;  %v7078_v28 = vld [vmem:[#allocation14 + $0x280] ss:$8 sps:$4 sm:$0xff]   ;;  %v7083_v29 = vld [vmem:[#allocation14 + $0x294] ss:$8 sps:$4 sm:$0xff]  }
 0x2b9   :  { %1009 = vmatpush1.bf16.msra.mxu1 %v7009_v30  ;;  %v7081_v30 = vld [vmem:[#allocation14 + $0x290] ss:$8 sps:$4 sm:$0xff]   ;;  %v7084_v32 = vld [vmem:[#allocation14 + $0x2a0] ss:$8 sps:$4 sm:$0xff]   ;;  %v7089_v33 = vld [vmem:[#allocation14 + $0x2b4] ss:$8 sps:$4 sm:$0xff]  }
 0x2ba   :  { %1010 = vmatprep.subr.bf16.mxu1 %v7014_v31  ;;  %v7086_v31 = vld [vmem:[#allocation14 + $0x2a4] ss:$8 sps:$4 sm:$0xff]   ;;  %v7090_v36 = vld [vmem:[#allocation14 + $0x2c0] ss:$8 sps:$4 sm:$0xff]   ;;  %v7095_v37 = vld [vmem:[#allocation14 + $0x2d4] ss:$8 sps:$4 sm:$0xff]  }
 0x2bb   :  { %v7096_v40 = vld [vmem:[#allocation14 + $0x2e0] ss:$8 sps:$4 sm:$0xff]   ;;  %vm2628_vm5 = vcmask 523264   ;;  %vm5630_vm6 = vcmask 9216  }
 0x2bc   :  { %v7114_v18 = vld [vmem:[%s9002_s12 + $0x70] sm:$0xff]  }
 0x2bd   :  { %1011 = vmatpush1.bf16.msra.mxu1 %v7012_v34  ;;  %v7087_v34 = vld [vmem:[#allocation14 + $0x2b0] ss:$8 sps:$4 sm:$0xff]  }
 0x2be   :  { %1012 = vmatprep.subr.bf16.mxu1 %v7017_v35  ;;  %v7092_v35 = vld [vmem:[#allocation14 + $0x2c4] ss:$8 sps:$4 sm:$0xff]  }
 0x2bf   :  { %v7115_v21 = vld [vmem:[%s9002_s12 + $0x30] sm:$0xff]  }
 0x2c1   :  { %1013 = vmatpush1.bf16.msra.mxu1 %v7015_v38  ;;  %v7093_v38 = vld [vmem:[#allocation14 + $0x2d0] ss:$8 sps:$4 sm:$0xff]  }
 0x2c2   :  { %1014 = vmatprep.subr.bf16.mxu1 %v7020_v39  ;;  %v7098_v39 = vld [vmem:[#allocation14 + $0x2e4] ss:$8 sps:$4 sm:$0xff]  }
 0x2c5   :  { %1015 = vmatpush1.bf16.msra.mxu1 %v7018_v41  ;;  %v7101_v41 = vld [vmem:[#allocation14 + $0x2f4] ss:$8 sps:$4 sm:$0xff]  }
 0x2c6   :  { %1016 = vmatprep.subr.bf16.mxu1 %v7023_v46  ;;  %v7099_v46 = vld [vmem:[#allocation14 + $0x2f0] ss:$8 sps:$4 sm:$0xff]  }
 0x2c9   :  { %1017 = vmatpush1.bf16.msra.mxu1 %v7021_v47  ;;  %v7110_v47 = vld [vmem:[%s9002_s12 + $0x60] sm:$0xff]  }
 0x2ca   :  { %1018 = vmatprep.subr.bf16.mxu1 %v7026_v48  ;;  %v7111_v48 = vld [vmem:[%s9002_s12 + $0x20] sm:$0xff]   ;;  %6516 = vmatprep.subr.bf16.mxu0 %v7110_v47 }
 0x2cb   :  { %6517 = vmatpush3.bf16.msra.mxu0 %v7111_v48  ;;  %v7120_v48 = vld [vmem:[%s9002_s12 + $0xc8] sm:$0xff]  }
 0x2cd   :  { %1019 = vmatpush1.bf16.msra.mxu1 %v7024_v50  ;;  %v7112_v50 = vld [vmem:[%s9002_s12 + $0x68] sm:$0xff]  }
 0x2ce   :  { %1020 = vmatprep.subr.bf16.mxu1 %v7029_v51  ;;  %v7113_v51 = vld [vmem:[%s9002_s12 + $0x28] sm:$0xff]   ;;  %6518 = vmatprep.subr.bf16.mxu0 %v7112_v50 }
 0x2cf   :  { %6519 = vmatpush3.bf16.msra.mxu0 %v7113_v51 }
 0x2d0   :  { %6520 = vmatprep.subr.bf16.mxu0 %v7114_v18  ;;  %v7121_v18 = vld [vmem:[%s9002_s12 + $0x88] sm:$0xff]  }
 0x2d1   :  { %1021 = vmatpush1.bf16.msra.mxu1 %v7027_v53  ;;  %v7117_v53 = vld [vmem:[%s9002_s12 + $0x38] sm:$0xff]  }
 0x2d2   :  { %1022 = vmatprep.subr.bf16.mxu1 %v7032_v54  ;;  %v7118_v54 = vld [vmem:[%s9002_s12 + $0xc0] sm:$0xff]  }
 0x2d3   :  { %6521 = vmatpush3.bf16.msra.mxu0 %v7115_v21  ;;  %v7122_v21 = vld [vmem:[%s9002_s12 + $0xd0] sm:$0xff]  }
 0x2d5   :  { %1023 = vmatpush1.bf16.msra.mxu1 %v7030_v55  ;;  %v1291_v55 = vld [vmem:[#allocation15] sm:$0x3] }
 0x2d6   :  { %1024 = vmatprep.subr.bf16.mxu1 %v7035_v56  ;;  %v1296_v56 = vrot.slane %v1291_v55, %v8297_v22 }
 0x2d9   :  { %1025 = vmatpush1.bf16.msra.mxu1 %v7033_v58  ;;  %v1300_v58 = vrot.slane %v1291_v55, %v8300_v24  ;;  %v7126_v55 = vld [vmem:[%s9002_s12 + $0xe0] sm:$0xff]  }
 0x2da   :  { %1026 = vmatprep.subr.bf16.mxu1 %v7038_v59 }
 0x2dd   :  { %1027 = vmatpush1.bf16.msra.mxu1 %v7036_v60 }
 0x2de   :  { %1028 = vmatprep.subr.bf16.mxu1 %v7041_v61 }
 0x2e1   :  { %1029 = vmatpush1.bf16.msra.mxu1 %v7039_v62 }
 0x2e2   :  { %1030 = vmatprep.subr.bf16.mxu1 %v7044_v63 }
 0x2e5   :  { %1031 = vmatpush1.bf16.msra.mxu1 %v7042_v0 }
 0x2e6   :  { %1032 = vmatprep.subr.bf16.mxu1 %v7047_v2 }
 0x2e9   :  { %1033 = vmatpush1.bf16.msra.mxu1 %v7045_v3 }
 0x2ea   :  { %1034 = vmatprep.subr.bf16.mxu1 %v7050_v4 }
 0x2ed   :  { %1035 = vmatpush1.bf16.msra.mxu1 %v7048_v5 }
 0x2ee   :  { %1036 = vmatprep.subr.bf16.mxu1 %v7053_v6 }
 0x2f1   :  { %1037 = vmatpush1.bf16.msra.mxu1 %v7051_v8 }
 0x2f2   :  { %1244 = vmatprep.subr.bf16.mxu1 %v7056_v9 }
 0x2f4   :  { %1039 = vmatmul.mubr.bf16.vlgmr.msra.gmra.mrb[4].mxu1 %v574_v57  ;;  %v7074_v57 = vld [vmem:[#allocation14 + $0x264] ss:$8 sps:$4 sm:$0xff]  }
 0x2f5   :  { %1245 = vmatpush1.bf16.msra.mxu1 %v7054_v10  ;;  %1276 = vmatprep.mubr.bf16.mxu1 %v1050_v25  ;;  %v7075_v25 = vld [vmem:[#allocation14 + $0x270] ss:$8 sps:$4 sm:$0xff]  }
 0x2f6   :  { %1246 = vmatprep.subr.bf16.mxu1 %v7059_v11 }
 0x2f9   :  { %1247 = vmatpush1.bf16.msra.mxu1 %v7057_v12 }
 0x2fa   :  { %1248 = vmatprep.subr.bf16.mxu1 %v7062_v13 }
 0x2fd   :  { %1249 = vmatpush1.bf16.msra.mxu1 %v7060_v14 }
 0x2fe   :  { %1250 = vmatprep.subr.bf16.mxu1 %v7065_v17 }
 0x301   :  { %1251 = vmatpush1.bf16.msra.mxu1 %v7063_v19 }
 0x302   :  { %1252 = vmatprep.subr.bf16.mxu1 %v7068_v20 }
 0x305   :  { %1253 = vmatpush1.bf16.msra.mxu1 %v7066_v23 }
 0x306   :  { %1254 = vmatprep.subr.bf16.mxu1 %v7071_v49 }
 0x309   :  { %1255 = vmatpush1.bf16.msra.mxu1 %v7069_v52 }
 0x30a   :  { %1256 = vmatprep.subr.bf16.mxu1 %v7074_v57 }
 0x30d   :  { %1257 = vmatpush1.bf16.msra.mxu1 %v7072_v15 }
 0x30e   :  { %1258 = vmatprep.subr.bf16.mxu1 %v7077_v16 }
 0x311   :  { %1259 = vmatpush1.bf16.msra.mxu1 %v7075_v25 }
 0x312   :  { %1260 = vmatprep.subr.bf16.mxu1 %v7080_v27 }
 0x315   :  { %1261 = vmatpush1.bf16.msra.mxu1 %v7078_v28 }
 0x316   :  { %1262 = vmatprep.subr.bf16.mxu1 %v7083_v29 }
 0x319   :  { %1263 = vmatpush1.bf16.msra.mxu1 %v7081_v30 }
 0x31a   :  { %1264 = vmatprep.subr.bf16.mxu1 %v7086_v31 }
 0x31d   :  { %1265 = vmatpush1.bf16.msra.mxu1 %v7084_v32 }
 0x31e   :  { %1266 = vmatprep.subr.bf16.mxu1 %v7089_v33 }
 0x321   :  { %1267 = vmatpush1.bf16.msra.mxu1 %v7087_v34 }
 0x322   :  { %1268 = vmatprep.subr.bf16.mxu1 %v7092_v35 }
 0x325   :  { %1269 = vmatpush1.bf16.msra.mxu1 %v7090_v36 }
 0x326   :  { %1270 = vmatprep.subr.bf16.mxu1 %v7095_v37 }
 0x329   :  { %1271 = vmatpush1.bf16.msra.mxu1 %v7093_v38 }
 0x32a   :  { %1272 = vmatprep.subr.bf16.mxu1 %v7098_v39 }
 0x32d   :  { %1273 = vmatpush1.bf16.msra.mxu1 %v7096_v40 }
 0x32e   :  { %1274 = vmatprep.subr.bf16.mxu1 %v7101_v41 }
 0x331   :  { %1275 = vmatpush1.bf16.msra.mxu1 %v7099_v46  ;;  %v7119_v46 = vld [vmem:[%s9002_s12 + $0x80] sm:$0xff]  }
 0x334   :  { %1277 = vmatmul.mubr.bf16.vlgmr.msra.gmra.mrb[4].mxu1 %v1049_v26  ;;  %v7116_v26 = vld [vmem:[%s9002_s12 + $0x78] sm:$0xff]  }
 0x335   :  { %6522 = vmatprep.subr.bf16.mxu0 %v7116_v26  ;;  %v7123_v26 = vld [vmem:[%s9002_s12 + $0x90] sm:$0xff]  }
 0x336   :  { %6523 = vmatpush3.bf16.msra.mxu0 %v7117_v53  ;;  %v7124_v53 = vld [vmem:[%s9002_s12 + $0xd8] sm:$0xff]  }
 0x337   :  { %6530 = vmatprep.subr.bf16.mxu0 %v7118_v54  ;;  %v7125_v54 = vld [vmem:[%s9002_s12 + $0x98] sm:$0xff]  }
 0x407   :  { %v1278_v59 = vpop.f32.mrb[4].mxu1 }
 0x408   :  { %v1303_v60 = vadd.f32 %v1296_v56, %v1278_v59  ;;  %v1280_v61 = vpop.f32.mrb[5].mxu1  ;;  %v7129_v59 = vld [vmem:[%s9002_s12 + $0xa8] sm:$0xff]  }
 0x409   :  { %v1304_v62 = vadd.f32 %v1300_v58, %v1280_v61  ;;  %v1282_v63 = vpop.f32.mrb[6].mxu1  ;;  %v7131_v61 = vld [vmem:[%s9002_s12 + $0xb0] sm:$0xff]  }
 0x40a   :  { %vm1307_vm7 = vcmp.gt.f32.partialorder %v1303_v60, 0.0  ;;  %v1311_v0 = vmul.f32 0.2, %v1303_v60  ;;  %v1305_v2 = vadd.f32 %v1296_v56, %v1282_v63  ;;  %v1284_v3 = vpop.f32.mrb[7].mxu1  ;;  %v7127_v56 = vld [vmem:[%s9002_s12 + $0xa0] sm:$0xff]   ;;  %v7133_v63 = vld [vmem:[%s9002_s12 + $0xb8] sm:$0xff]  }
 0x40b   :  { %vm1308_vm8 = vcmp.gt.f32.partialorder %v1304_v62, 0.0  ;;  %v1312_v4 = vmul.f32 0.2, %v1304_v62  ;;  %v1306_v5 = vadd.f32 %v1300_v58, %v1284_v3  ;;  %v7128_v58 = vld [vmem:[%s9002_s12 + $0xe8] sm:$0xff]  }
 0x40c   :  { %v8412_v6 = vsel %vm1307_vm7, %v1303_v60, %v1311_v0  ;;  %vm1309_vm9 = vcmp.gt.f32.partialorder %v1305_v2, 0.0  ;;  %v1313_v8 = vmul.f32 0.2, %v1305_v2  ;;  %v7130_v60 = vld [vmem:[%s9002_s12 + $0xf0] sm:$0xff]   ;;  %v7134_v0 = vld [vmem:[%s9002_s12 + $0x140] sm:$0xff]   ;;  %v7136_v3 = vld [vmem:[%s9002_s12 + $0x148] sm:$0xff]  }
 0x40d   :  { %v1316_v9 = vsel %vm1308_vm8, %v1304_v62, %v1312_v4  ;;  %vm1310_vm10 = vcmp.gt.f32.partialorder %v1306_v5, 0.0  ;;  %v1314_v11 = vmul.f32 0.2, %v1306_v5  ;;  %v1319_v12 = vrot.slane %v8412_v6, 7  ;;  %v7132_v62 = vld [vmem:[%s9002_s12 + $0xf8] sm:$0xff]   ;;  %v7137_v4 = vld [vmem:[%s9002_s12 + $0x108] sm:$0xff]  }
 0x40e   :  { %v8414_v10 = vsel %vm1309_vm9, %v1305_v2, %v1313_v8  ;;  %v1331_v19 = vrot.slane %v8412_v6, 1  ;;  %v1320_v20 = vrot.slane %v1316_v9, 7  ;;  %v1332_v23 = vrot.slane %v1316_v9, 1  ;;  %v7135_v2 = vld [vmem:[%s9002_s12 + $0x100] sm:$0xff]   ;;  %v7139_v8 = vld [vmem:[%s9002_s12 + $0x110] sm:$0xff]  }
 0x40f   :  { %v1321_v13 = vrot.slane %v8414_v10, 7  ;;  %v1333_v14 = vrot.slane %v8414_v10, 1  ;;  %v1343_v17 = vpack.c.bf16 %v8414_v10, %v8412_v6  ;;  %v1318_v49 = vsel %vm1310_vm10, %v1306_v5, %v1314_v11  ;;  %v7138_v5 = vld [vmem:[%s9002_s12 + $0x150] sm:$0xff]   ;;  %v7140_v6 = vld [vmem:[%s9002_s12 + $0x158] sm:$0xff]   ;;  %v7142_v10 = vld [vmem:[%s9002_s12 + $0x160] sm:$0xff]  }
 0x410   :  { %v1322_v52 = vrot.slane %v1318_v49, 7  ;;  %v1334_v57 = vrot.slane %v1318_v49, 1  ;;  %v1344_v28 = vpack.c.bf16 %v1318_v49, %v1316_v9  ;;  %v7141_v9 = vld [vmem:[%s9002_s12 + $0x118] sm:$0xff]   ;;  %v7143_v11 = vld [vmem:[%s9002_s12 + $0x120] sm:$0xff]   ;;  %v7912_v49 = vmov 0.0  }
 0x411   :  { %v1323_v15 = vsel %vm306_vm0, %v1319_v12, %v1321_v13  ;;  %v1325_v16 = vsel %vm306_vm0, %v1321_v13, %v1319_v12  ;;  %v1335_v29 = vsel %vm323_vm1, %v1331_v19, %v1333_v14  ;;  %v1337_v39 = vsel %vm323_vm1, %v1333_v14, %v1331_v19  ;;  %v7144_v12 = vld [vmem:[%s9002_s12 + $0x168] sm:$0xff]   ;;  %v7146_v14 = vld [vmem:[%s9002_s12 + $0x170] sm:$0xff]   ;;  %v7148_v19 = vld [vmem:[%s9002_s12 + $0x178] sm:$0xff]   ;;  %6765 = vmatprep.subr.bf16.mxu1 %v7912_v49 }
 0x412   :  { %v1327_v25 = vmul.f32 %v1325_v16, %v8284_v43  ;;  %v1329_v27 = vmul.f32 %v1323_v15, %v8288_v45  ;;  %v1324_v30 = vsel %vm306_vm0, %v1320_v20, %v1322_v52  ;;  %v1326_v31 = vsel %vm306_vm0, %v1322_v52, %v1320_v20  ;;  %v7145_v13 = vld [vmem:[%s9002_s12 + $0x128] sm:$0xff]   ;;  %v7149_v20 = vld [vmem:[%s9002_s12 + $0x138] sm:$0xff]   ;;  %6781 = vmatprep.mubr.msk.bf16.mxu1 %vm7913_vm11, %v7912_v49 }
 0x413   :  { %v1336_v32 = vsel %vm323_vm1, %v1332_v23, %v1334_v57  ;;  %v1338_v33 = vsel %vm323_vm1, %v1334_v57, %v1332_v23  ;;  %v1328_v34 = vmul.f32 %v1326_v31, %v8284_v43  ;;  %v1330_v35 = vmul.f32 %v1324_v30, %v8288_v45  ;;  %v7150_v23 = vld [vmem:[#allocation18] sm:$0xff]   ;;  %v7151_v52 = vld [vmem:[#allocation18 + $0x8] sm:$0xff]   ;;  %v7152_v57 = vld [vmem:[#allocation18 + $0x10] sm:$0xff]  }
 0x414   :  { %v1378_v36 = vpack.c.bf16 %v1329_v27, %v1327_v25  ;;  %v1340_v37 = vmul.f32 %v1336_v32, %v8282_v42  ;;  %v1342_v38 = vmul.f32 %v1338_v33, %v8286_v44  ;;  %v8445_v40 = vmul.f32 %v1335_v29, %v8282_v42  ;;  %v7153_v15 = vld [vmem:[#allocation18 + $0x18] sm:$0xff]   ;;  %v7154_v16 = vld [vmem:[#allocation18 + $0x20] sm:$0xff]   ;;  %v7155_v25 = vld [vmem:[#allocation18 + $0x28] sm:$0xff]  }
 0x415   :  { %v1379_v41 = vpack.c.bf16 %v1330_v35, %v1328_v34  ;;  %v8451_v47 = vmul.f32 %v1337_v39, %v8286_v44  ;;  %v7156_v27 = vld [vmem:[#allocation18 + $0x30] sm:$0xff]   ;;  %vm294_vm9 = vcmask 517120   ;;  %vm5642_vm10 = vcmask 15360  }
 0x416   :  { %v1687_v50 = vpack.c.bf16 %v1342_v38, %v1340_v37 }
 0x417   :  { %1540 = vmatprep.mubr.bf16.mxu0 %v1379_v41  ;;  %v1686_v51 = vpack.c.bf16 %v8451_v47, %v8445_v40 }
 0x418   :  { %1541 = vmatmul.mubr.bf16.vlgmr.msra.gmra.mrb[4].mxu0 %v1378_v36 }
 0x419   :  { %6531 = vmatpush3.bf16.msra.mxu0 %v7119_v46  ;;  %1677 = vmatprep.mubr.bf16.mxu0 %v1344_v28  ;;  %v7157_v28 = vld [vmem:[#allocation18 + $0x38] sm:$0xff]  }
 0x41a   :  { %6532 = vmatprep.subr.bf16.mxu0 %v7120_v48 }
 0x41d   :  { %6533 = vmatpush3.bf16.msra.mxu0 %v7121_v18  ;;  %v6146_v18 = vld [vmem:[#allocation17] ss:$0 sm:$0xff] }
 0x41e   :  { %6534 = vmatprep.subr.bf16.mxu0 %v7122_v21 }
 0x421   :  { %6535 = vmatpush3.bf16.msra.mxu0 %v7123_v26 }
 0x422   :  { %6536 = vmatprep.subr.bf16.mxu0 %v7124_v53 }
 0x425   :  { %6537 = vmatpush3.bf16.msra.mxu0 %v7125_v54 }
 0x426   :  { %6538 = vmatprep.subr.bf16.mxu0 %v7126_v55 }
 0x429   :  { %6539 = vmatpush3.bf16.msra.mxu0 %v7127_v56 }
 0x42a   :  { %6540 = vmatprep.subr.bf16.mxu0 %v7128_v58 }
 0x42d   :  { %6541 = vmatpush3.bf16.msra.mxu0 %v7129_v59 }
 0x42e   :  { %6542 = vmatprep.subr.bf16.mxu0 %v7130_v60 }
 0x431   :  { %6543 = vmatpush3.bf16.msra.mxu0 %v7131_v61 }
 0x432   :  { %6544 = vmatprep.subr.bf16.mxu0 %v7132_v62 }
 0x435   :  { %6545 = vmatpush3.bf16.msra.mxu0 %v7133_v63 }
 0x436   :  { %6552 = vmatprep.subr.bf16.mxu0 %v7134_v0 }
 0x438   :  { %1678 = vmatmul.mubr.bf16.vlgmr.msra.gmra.mrb[8].mxu0 %v1343_v17  ;;  %v7147_v17 = vld [vmem:[%s9002_s12 + $0x130] sm:$0xff]  }
 0x439   :  { %6553 = vmatpush3.bf16.msra.mxu0 %v7135_v2  ;;  %1849 = vmatprep.mubr.bf16.mxu0 %v1687_v50 }
 0x43a   :  { %6554 = vmatprep.subr.bf16.mxu0 %v7136_v3 }
 0x43d   :  { %6555 = vmatpush3.bf16.msra.mxu0 %v7137_v4 }
 0x43e   :  { %6556 = vmatprep.subr.bf16.mxu0 %v7138_v5 }
 0x441   :  { %6557 = vmatpush3.bf16.msra.mxu0 %v7139_v8 }
 0x442   :  { %6558 = vmatprep.subr.bf16.mxu0 %v7140_v6 }
 0x445   :  { %6559 = vmatpush3.bf16.msra.mxu0 %v7141_v9 }
 0x446   :  { %6560 = vmatprep.subr.bf16.mxu0 %v7142_v10 }
 0x449   :  { %6561 = vmatpush3.bf16.msra.mxu0 %v7143_v11 }
 0x44a   :  { %6562 = vmatprep.subr.bf16.mxu0 %v7144_v12 }
 0x44d   :  { %6563 = vmatpush3.bf16.msra.mxu0 %v7145_v13  ;;  %v7158_v13 = vld [vmem:[#allocation18 + $0x40] sm:$0xff]  }
 0x44e   :  { %6564 = vmatprep.subr.bf16.mxu0 %v7146_v14 }
 0x451   :  { %6565 = vmatpush3.bf16.msra.mxu0 %v7147_v17 }
 0x452   :  { %6566 = vmatprep.subr.bf16.mxu0 %v7148_v19  ;;  %v7159_v19 = vld [vmem:[#allocation18 + $0x48] sm:$0xff]  }
 0x455   :  { %6567 = vmatpush3.bf16.msra.mxu0 %v7149_v20  ;;  %v7160_v20 = vld [vmem:[#allocation18 + $0x50] sm:$0xff]  }
 0x456   :  { %6665 = vmatprep.subr.bf16.mxu0 %v7912_v49 }
 0x458   :  { %1850 = vmatmul.mubr.bf16.vlgmr.msra.gmra.mrb[12].mxu0 %v1686_v51 }
 0x459   :  { %6666 = vmatpush3.bf16.msra.mxu0 %v7150_v23  ;;  %6681 = vmatprep.mubr.msk.bf16.mxu0 %vm7913_vm11, %v7912_v49  ;;  %v7161_v23 = vld [vmem:[#allocation18 + $0x58] sm:$0xff]  }
 0x45a   :  { %6667 = vmatprep.subr.bf16.mxu0 %v7912_v49 }
 0x45d   :  { %6668 = vmatpush3.bf16.msra.mxu0 %v7151_v52  ;;  %v7162_v52 = vld [vmem:[#allocation18 + $0x60] sm:$0xff]  }
 0x45e   :  { %6669 = vmatprep.subr.bf16.mxu0 %v7912_v49 }
 0x461   :  { %6670 = vmatpush3.bf16.msra.mxu0 %v7152_v57  ;;  %v7163_v57 = vld [vmem:[#allocation18 + $0x68] sm:$0xff]  }
 0x462   :  { %6671 = vmatprep.subr.bf16.mxu0 %v7912_v49 }
 0x465   :  { %6672 = vmatpush3.bf16.msra.mxu0 %v7153_v15  ;;  %v7164_v15 = vld [vmem:[#allocation18 + $0x70] sm:$0xff]  }
 0x466   :  { %6673 = vmatprep.subr.bf16.mxu0 %v7912_v49 }
 0x469   :  { %6674 = vmatpush3.bf16.msra.mxu0 %v7154_v16  ;;  %v7165_v16 = vld [vmem:[#allocation18 + $0x78] sm:$0xff]  }
 0x46a   :  { %6675 = vmatprep.subr.bf16.mxu0 %v7912_v49 }
 0x46d   :  { %6676 = vmatpush3.bf16.msra.mxu0 %v7155_v25  ;;  %v7166_v25 = vld [vmem:[#allocation18 + $0x80] sm:$0xff]  }
 0x46e   :  { %6677 = vmatprep.subr.bf16.mxu0 %v7912_v49 }
 0x471   :  { %6678 = vmatpush3.bf16.msra.mxu0 %v7156_v27  ;;  %v7167_v27 = vld [vmem:[#allocation18 + $0x88] sm:$0xff]  }
 0x472   :  { %6679 = vmatprep.subr.bf16.mxu0 %v7912_v49 }
 0x475   :  { %6680 = vmatpush3.bf16.msra.mxu0 %v7157_v28  ;;  %v7168_v28 = vld [vmem:[#allocation18 + $0x90] sm:$0xff]  }
 0x476   :  { %6685 = vmatprep.subr.bf16.mxu0 %v7912_v49 }
 0x4eb   :  { %v6524_v29 = vpop.f32.mrb[4].mxu0 }
 0x4ec   :  { %v6525_v30 = vpop.f32.mrb[5].mxu0 }
 0x4ed   :  { %v6526_v31 = vadd.f32 %v6525_v30, %v6524_v29  ;;  %v6527_v32 = vpop.f32.mrb[6].mxu0  ;;  %v7169_v29 = vld [vmem:[#allocation18 + $0x98] sm:$0xff]   ;;  %v7170_v30 = vld [vmem:[#allocation18 + $0xa0] sm:$0xff]  }
 0x4ee   :  { %v6528_v33 = vpop.f32.mrb[7].mxu0 }
 0x4ef   :  { %v6529_v34 = vadd.f32 %v6528_v33, %v6527_v32  ;;  %v7172_v32 = vld [vmem:[#allocation18 + $0xb0] sm:$0xff]   ;;  %v7173_v33 = vld [vmem:[#allocation18 + $0xb8] sm:$0xff]  }
 0x50b   :  { %v6546_v35 = vpop.f32.mrb[8].mxu0 }
 0x50c   :  { %v6547_v36 = vpop.f32.mrb[9].mxu0 }
 0x50d   :  { %v6548_v37 = vadd.f32 %v6547_v36, %v6546_v35  ;;  %v6549_v38 = vpop.f32.mrb[10].mxu0  ;;  %v7175_v35 = vld [vmem:[%s9006_s16 + $0x80] sm:$0xff]   ;;  %v7176_v36 = vld [vmem:[%s9006_s16 + $0x8] sm:$0xff]  }
 0x50e   :  { %v6550_v39 = vpop.f32.mrb[11].mxu0  ;;  %6766 = vmatpush3.bf16.msra.mxu1 %v7175_v35  ;;  %v7192_v35 = vld [vmem:[%s9006_s16 + $0x50] sm:$0xff]  }
 0x50f   :  { %v1680_v40 = vadd.f32 %v6548_v37, %v6526_v31  ;;  %v6551_v41 = vadd.f32 %v6550_v39, %v6549_v38  ;;  %v7171_v31 = vld [vmem:[#allocation18 + $0xa8] sm:$0xff]   ;;  %v7177_v37 = vld [vmem:[%s9006_s16 + $0x88] sm:$0xff]   ;;  %6767 = vmatprep.subr.bf16.mxu1 %v7912_v49 }
 0x510   :  { %v7178_v38 = vld [vmem:[%s9006_s16 + $0x10] sm:$0xff]  }
 0x511   :  { %v1683_v46 = vadd.f32 %v6551_v41, %v6529_v34  ;;  %v7174_v34 = vld [vmem:[%s9006_s16] sm:$0xff]   ;;  %v7179_v39 = vld [vmem:[%s9006_s16 + $0x90] sm:$0xff]   ;;  %v7181_v41 = vld [vmem:[%s9006_s16 + $0x98] sm:$0xff]  }
 0x512   :  { %6768 = vmatpush3.bf16.msra.mxu1 %v7177_v37  ;;  %v7194_v37 = vld [vmem:[%s9006_s16 + $0x60] sm:$0xff]  }
 0x513   :  { %6769 = vmatprep.subr.bf16.mxu1 %v7912_v49 }
 0x516   :  { %6770 = vmatpush3.bf16.msra.mxu1 %v7179_v39  ;;  %v7196_v39 = vld [vmem:[%s9006_s16 + $0x70] sm:$0xff]  }
 0x517   :  { %6771 = vmatprep.subr.bf16.mxu1 %v7912_v49 }
 0x51a   :  { %6772 = vmatpush3.bf16.msra.mxu1 %v7181_v41  ;;  %v7198_v41 = vld [vmem:[%s9008_s18 + $0x20] sm:$0xff]  }
 0x51b   :  { %6773 = vmatprep.subr.bf16.mxu1 %v7912_v49 }
 0x52b   :  { %v6568_v47 = vpop.f32.mrb[12].mxu0 }
 0x52c   :  { %v6569_v48 = vpop.f32.mrb[13].mxu0 }
 0x52d   :  { %v6570_v50 = vadd.f32 %v6569_v48, %v6568_v47  ;;  %v6571_v51 = vpop.f32.mrb[14].mxu0  ;;  %v7183_v47 = vld [vmem:[%s9006_s16 + $0xa0] sm:$0xff]   ;;  %v7184_v48 = vld [vmem:[%s9006_s16 + $0x28] sm:$0xff]  }
 0x52e   :  { %v6572_v21 = vpop.f32.mrb[15].mxu0  ;;  %6774 = vmatpush3.bf16.msra.mxu1 %v7183_v47  ;;  %v7200_v47 = vld [vmem:[%s9008_s18 + $0x28] sm:$0xff]  }
 0x52f   :  { %v1858_v26 = vadd.f32 %v6570_v50, %v1680_v40  ;;  %v6573_v53 = vadd.f32 %v6572_v21, %v6571_v51  ;;  %v7180_v40 = vld [vmem:[%s9006_s16 + $0x18] sm:$0xff]   ;;  %6775 = vmatprep.subr.bf16.mxu1 %v7912_v49  ;;  %v7185_v50 = vld [vmem:[%s9006_s16 + $0xa8] sm:$0xff]   ;;  %v7186_v51 = vld [vmem:[%s9006_s16 + $0x30] sm:$0xff]  }
 0x530   :  { %v7188_v21 = vld [vmem:[%s9006_s16 + $0x38] sm:$0xff]  }
 0x531   :  { %v1867_v54 = vadd.f32 %v6146_v18, %v1858_v26  ;;  %v1859_v55 = vadd.f32 %v6573_v53, %v1683_v46  ;;  %v7182_v46 = vld [vmem:[%s9006_s16 + $0x20] sm:$0xff]   ;;  %v7189_v26 = vld [vmem:[%s9006_s16 + $0xb8] sm:$0xff]  }
 0x532   :  { %6776 = vmatpush3.bf16.msra.mxu1 %v7185_v50  ;;  %v7202_v50 = vld [vmem:[%s9008_s18 + $0x30] sm:$0xff]  }
 0x533   :  { %vm1869_vm12 = vcmp.gt.f32.partialorder %v1867_v54, 0.0  ;;  %v1871_v56 = vmul.f32 0.2, %v1867_v54  ;;  %v1868_v58 = vadd.f32 %v6146_v18, %v1859_v55  ;;  %6777 = vmatprep.subr.bf16.mxu1 %v7912_v49  ;;  %v7187_v18 = vld [vmem:[%s9006_s16 + $0xb0] sm:$0xff]  }
 0x535   :  { %v1873_v59 = vsel %vm1869_vm12, %v1867_v54, %v1871_v56  ;;  %vm1870_vm13 = vcmp.gt.f32.partialorder %v1868_v58, 0.0  ;;  %v1872_v60 = vmul.f32 0.2, %v1868_v58 }
 0x536   :  { %v1875_v61 = vrot.slane %v1873_v59, 7  ;;  %v1881_v63 = vrot.slane %v1873_v59, 1  ;;  %6778 = vmatpush3.bf16.msra.mxu1 %v7187_v18  ;;  %v7204_v18 = vld [vmem:[%s9008_s18 + $0x38] sm:$0xff]  }
 0x537   :  { %v1874_v62 = vsel %vm1870_vm13, %v1868_v58, %v1872_v60  ;;  %6779 = vmatprep.subr.bf16.mxu1 %v7912_v49 }
 0x538   :  { %v1876_v0 = vrot.slane %v1874_v62, 7  ;;  %v1882_v2 = vrot.slane %v1874_v62, 1  ;;  %v1887_v3 = vpack.c.bf16 %v1874_v62, %v1873_v59 }
 0x53a   :  { %v1877_v4 = vsel %vm306_vm0, %v1875_v61, %v1876_v0  ;;  %v1878_v5 = vsel %vm306_vm0, %v1876_v0, %v1875_v61  ;;  %v1883_v8 = vsel %vm323_vm1, %v1881_v63, %v1882_v2  ;;  %v1884_v6 = vsel %vm323_vm1, %v1882_v2, %v1881_v63  ;;  %6780 = vmatpush3.bf16.msra.mxu1 %v7189_v26  ;;  %v6171_v2 = vld [vmem:[#allocation20] ss:$0 sm:$0xff] }
 0x53b   :  { %v1879_v9 = vmul.f32 %v1878_v5, %v8284_v43  ;;  %v1880_v10 = vmul.f32 %v1877_v4, %v8288_v45  ;;  %v1885_v11 = vmul.f32 %v1883_v8, %v8282_v42  ;;  %v1886_v12 = vmul.f32 %v1884_v6, %v8286_v44  ;;  %6797 = vmatprep.subr.bf16.mxu1 %v7912_v49 }
 0x53d   :  { %v1905_v14 = vpack.c.bf16 %v1880_v10, %v1879_v9  ;;  %v2100_v17 = vpack.c.bf16 %v1886_v12, %v1885_v11 }
 0x53f   :  { %6682 = vmatmul.mubr.bf16.vlgmr.msra.gmra.mrb[16].mxu0 %v1905_v14 }
 0x540   :  { %6686 = vmatpush3.bf16.msra.mxu0 %v7158_v13  ;;  %6701 = vmatprep.mubr.msk.bf16.mxu0 %vm7913_vm11, %v7912_v49 }
 0x541   :  { %6687 = vmatprep.subr.bf16.mxu0 %v7912_v49 }
 0x544   :  { %6688 = vmatpush3.bf16.msra.mxu0 %v7159_v19 }
 0x545   :  { %6689 = vmatprep.subr.bf16.mxu0 %v7912_v49 }
 0x548   :  { %6690 = vmatpush3.bf16.msra.mxu0 %v7160_v20 }
 0x549   :  { %6691 = vmatprep.subr.bf16.mxu0 %v7912_v49 }
 0x54c   :  { %6692 = vmatpush3.bf16.msra.mxu0 %v7161_v23 }
 0x54d   :  { %6693 = vmatprep.subr.bf16.mxu0 %v7912_v49 }
 0x550   :  { %6694 = vmatpush3.bf16.msra.mxu0 %v7162_v52 }
 0x551   :  { %6695 = vmatprep.subr.bf16.mxu0 %v7912_v49 }
 0x554   :  { %6696 = vmatpush3.bf16.msra.mxu0 %v7163_v57 }
 0x555   :  { %6697 = vmatprep.subr.bf16.mxu0 %v7912_v49 }
 0x558   :  { %6698 = vmatpush3.bf16.msra.mxu0 %v7164_v15 }
 0x559   :  { %6699 = vmatprep.subr.bf16.mxu0 %v7912_v49 }
 0x55c   :  { %6700 = vmatpush3.bf16.msra.mxu0 %v7165_v16 }
 0x55d   :  { %6705 = vmatprep.subr.bf16.mxu0 %v7912_v49 }
 0x55f   :  { %6702 = vmatmul.mubr.bf16.vlgmr.msra.gmra.mrb[20].mxu0 %v1887_v3 }
 0x560   :  { %6706 = vmatpush3.bf16.msra.mxu0 %v7166_v25  ;;  %6721 = vmatprep.mubr.msk.bf16.mxu0 %vm7913_vm11, %v7912_v49 }
 0x561   :  { %6707 = vmatprep.subr.bf16.mxu0 %v7912_v49 }
 0x564   :  { %6708 = vmatpush3.bf16.msra.mxu0 %v7167_v27 }
 0x565   :  { %6709 = vmatprep.subr.bf16.mxu0 %v7912_v49 }
 0x568   :  { %6710 = vmatpush3.bf16.msra.mxu0 %v7168_v28 }
 0x569   :  { %6711 = vmatprep.subr.bf16.mxu0 %v7912_v49 }
 0x56c   :  { %6712 = vmatpush3.bf16.msra.mxu0 %v7169_v29 }
 0x56d   :  { %6713 = vmatprep.subr.bf16.mxu0 %v7912_v49 }
 0x570   :  { %6714 = vmatpush3.bf16.msra.mxu0 %v7170_v30 }
 0x571   :  { %6715 = vmatprep.subr.bf16.mxu0 %v7912_v49 }
 0x574   :  { %6716 = vmatpush3.bf16.msra.mxu0 %v7171_v31  ;;  %v7190_v31 = vld [vmem:[%s9006_s16 + $0x40] sm:$0xff]  }
 0x575   :  { %6717 = vmatprep.subr.bf16.mxu0 %v7912_v49 }
 0x578   :  { %6718 = vmatpush3.bf16.msra.mxu0 %v7172_v32 }
 0x579   :  { %6719 = vmatprep.subr.bf16.mxu0 %v7912_v49 }
 0x57c   :  { %6720 = vmatpush3.bf16.msra.mxu0 %v7173_v33 }
 0x57d   :  { %6725 = vmatprep.subr.bf16.mxu0 %v7912_v49 }
 0x57f   :  { %6722 = vmatmul.mubr.bf16.vlgmr.msra.gmra.mrb[24].mxu0 %v2100_v17 }
 0x580   :  { %6741 = vmatprep.mubr.msk.bf16.mxu0 %vm7913_vm11, %v7912_v49  ;;  %6726 = vmatpush3.bf16.msra.mxu0 %v7174_v34  ;;  %v7191_v34 = vld [vmem:[%s9006_s16 + $0x48] sm:$0xff]  }
 0x581   :  { %6727 = vmatprep.subr.bf16.mxu0 %v7912_v49 }
 0x584   :  { %6728 = vmatpush3.bf16.msra.mxu0 %v7176_v36  ;;  %v7193_v36 = vld [vmem:[%s9006_s16 + $0x58] sm:$0xff]  }
 0x585   :  { %6729 = vmatprep.subr.bf16.mxu0 %v7912_v49 }
 0x588   :  { %6730 = vmatpush3.bf16.msra.mxu0 %v7178_v38  ;;  %v7195_v38 = vld [vmem:[%s9006_s16 + $0x68] sm:$0xff]  }
 0x589   :  { %6731 = vmatprep.subr.bf16.mxu0 %v7912_v49 }
 0x58c   :  { %6732 = vmatpush3.bf16.msra.mxu0 %v7180_v40  ;;  %v7197_v40 = vld [vmem:[%s9006_s16 + $0x78] sm:$0xff]   ;;  %s7850_s16 = scalar_lea.vmem %s5912_s29, 32 }
 0x58d   :  { %6733 = vmatprep.subr.bf16.mxu0 %v7912_v49  ;;  %p7851_p8 = scmp.ne.s32.totalorder %s5912_s29, %s7850_s16  ;;  %p7856_p10 = scmp.lt.s32.totalorder %s7850_s16, %s7850_s16 }
 0x58f   :  { %p7857_p11 = por %p7856_p10, %p7855_p9 }
 0x590   :  { %6734 = vmatpush3.bf16.msra.mxu0 %v7182_v46  ;;  %v7199_v46 = vld [vmem:[%s9008_s18] sm:$0xff]  }
 0x591   :  { %6735 = vmatprep.subr.bf16.mxu0 %v7912_v49  ;;  %p7858_p12 = pnand %p7857_p11, %p7851_p8 }
 0x594   :  { %6736 = vmatpush3.bf16.msra.mxu0 %v7184_v48  ;;  %v7201_v48 = vld [vmem:[%s9008_s18 + $0x8] sm:$0xff]  }
 0x595   :  { %6737 = vmatprep.subr.bf16.mxu0 %v7912_v49 }
 0x598   :  { %6738 = vmatpush3.bf16.msra.mxu0 %v7186_v51  ;;  %v7203_v51 = vld [vmem:[%s9008_s18 + $0x10] sm:$0xff]  }
 0x599   :  { %6739 = vmatprep.subr.bf16.mxu0 %v7912_v49 }
 0x59c   :  { %6740 = vmatpush3.bf16.msra.mxu0 %v7188_v21  ;;  %v7205_v21 = vld [vmem:[%s9008_s18 + $0x18] sm:$0xff]  }
 0x59d   :  { %6745 = vmatprep.subr.bf16.mxu0 %v7912_v49 }
 0x612   :  { %v2004_v53 = vpop.f32.mrb[16].mxu0 }
 0x613   :  { %v6683_v54 = vpop.f32.mrb[17].mxu0 }
 0x614   :  { %v2007_v55 = vpop.f32.mrb[18].mxu0 }
 0x615   :  { %v6684_v56 = vpop.f32.mrb[19].mxu0 }
 0x632   :  { %v2093_v58 = vpop.f32.mrb[20].mxu0 }
 0x633   :  { %v2094_v59 = vadd.f32 %v2093_v58, %v2004_v53  ;;  %v6703_v60 = vpop.f32.mrb[21].mxu0 }
 0x634   :  { %v2096_v61 = vpop.f32.mrb[22].mxu0 }
 0x635   :  { %v2097_v62 = vadd.f32 %v2096_v61, %v2007_v55  ;;  %v6704_v63 = vpop.f32.mrb[23].mxu0 }
 0x652   :  { %v2200_v0 = vpop.f32.mrb[24].mxu0 }
 0x653   :  { %v2207_v3 = vadd.f32 %v2200_v0, %v2094_v59  ;;  %v6723_v4 = vpop.f32.mrb[25].mxu0  ;;  %v6228_v0 = vld [vmem:[#allocation21] ss:$0 sm:$0xff] }
 0x654   :  { %v2203_v5 = vpop.f32.mrb[26].mxu0 }
 0x655   :  { %v2216_v8 = vadd.f32 %v6171_v2, %v2207_v3  ;;  %v2208_v6 = vadd.f32 %v2203_v5, %v2097_v62  ;;  %v6724_v9 = vpop.f32.mrb[27].mxu0 }
 0x657   :  { %vm2218_vm14 = vcmp.gt.f32.partialorder %v2216_v8, 0.0  ;;  %v2220_v10 = vmul.f32 0.2, %v2216_v8  ;;  %v2217_v11 = vadd.f32 %v6171_v2, %v2208_v6 }
 0x659   :  { %v2222_v12 = vsel %vm2218_vm14, %v2216_v8, %v2220_v10  ;;  %vm2219_vm15 = vcmp.gt.f32.partialorder %v2217_v11, 0.0  ;;  %v2221_v13 = vmul.f32 0.2, %v2217_v11 }
 0x65a   :  { %v2224_v14 = vrot.slane %v2222_v12, 7  ;;  %v2230_v19 = vrot.slane %v2222_v12, 1 }
 0x65b   :  { %v2223_v17 = vsel %vm2219_vm15, %v2217_v11, %v2221_v13 }
 0x65c   :  { %v2225_v20 = vrot.slane %v2223_v17, 7  ;;  %v2231_v23 = vrot.slane %v2223_v17, 1  ;;  %v2236_v52 = vpack.c.bf16 %v2223_v17, %v2222_v12 }
 0x65e   :  { %v2226_v57 = vsel %vm306_vm0, %v2224_v14, %v2225_v20  ;;  %v2227_v15 = vsel %vm306_vm0, %v2225_v20, %v2224_v14  ;;  %v2232_v16 = vsel %vm323_vm1, %v2230_v19, %v2231_v23  ;;  %v2233_v25 = vsel %vm323_vm1, %v2231_v23, %v2230_v19 }
 0x65f   :  { %v2228_v27 = vmul.f32 %v2227_v15, %v8284_v43  ;;  %v2229_v28 = vmul.f32 %v2226_v57, %v8288_v45  ;;  %v2234_v29 = vmul.f32 %v2232_v16, %v8282_v42  ;;  %v2235_v30 = vmul.f32 %v2233_v25, %v8286_v44 }
 0x661   :  { %v2254_v32 = vpack.c.bf16 %v2229_v28, %v2228_v27  ;;  %v2449_v33 = vpack.c.bf16 %v2235_v30, %v2234_v29  ;;  %v7206_v30 = vld [vmem:[%s9008_s18 + $0x40] sm:$0xff]  }
 0x663   :  { %6742 = vmatmul.mubr.bf16.vlgmr.msra.gmra.mrb[28].mxu0 %v2254_v32  ;;  %6782 = vmatmul.mubr.bf16.vlgmr.msra.gmra.mrb[8].mxu1 %v2449_v33  ;;  %v7212_v33 = vld [vmem:[#allocation24 + $0xc4] ss:$24 sps:$4 sm:$0xff]  }
 0x664   :  { %6746 = vmatpush3.bf16.msra.mxu0 %v7190_v31  ;;  %6761 = vmatprep.mubr.msk.bf16.mxu0 %vm7913_vm11, %v7912_v49 }
 0x665   :  { %6747 = vmatprep.subr.bf16.mxu0 %v7912_v49  ;;  %6805 = vmatprep.mubr.msk.bf16.mxu1 %vm7913_vm11, %v7912_v49 }
 0x666   :  { %6798 = vmatpush3.bf16.msra.mxu1 %v7198_v41  ;;  %v7227_v41 = vld [vmem:[#allocation24 + $0x12c] ss:$24 sps:$4 sm:$0xff]  }
 0x667   :  { %6799 = vmatprep.subr.bf16.mxu1 %v7912_v49 }
 0x668   :  { %6748 = vmatpush3.bf16.msra.mxu0 %v7191_v34  ;;  %v7213_v34 = vld [vmem:[#allocation24 + $0xc8] ss:$24 sps:$4 sm:$0xff]  }
 0x669   :  { %6749 = vmatprep.subr.bf16.mxu0 %v7912_v49 }
 0x66a   :  { %6800 = vmatpush3.bf16.msra.mxu1 %v7200_v47  ;;  %v7225_v47 = vld [vmem:[#allocation24 + $0x128] ss:$24 sps:$4 sm:$0xff]  }
 0x66b   :  { %6801 = vmatprep.subr.bf16.mxu1 %v7912_v49 }
 0x66c   :  { %6750 = vmatpush3.bf16.msra.mxu0 %v7192_v35  ;;  %v7215_v35 = vld [vmem:[#allocation24 + $0xcc] ss:$24 sps:$4 sm:$0xff]  }
 0x66d   :  { %6751 = vmatprep.subr.bf16.mxu0 %v7912_v49 }
 0x66e   :  { %6802 = vmatpush3.bf16.msra.mxu1 %v7202_v50  ;;  %v7233_v50 = vld [vmem:[#allocation24 + $0x15c] ss:$24 sps:$4 sm:$0xff]  }
 0x66f   :  { %6803 = vmatprep.subr.bf16.mxu1 %v7912_v49 }
 0x670   :  { %6752 = vmatpush3.bf16.msra.mxu0 %v7193_v36  ;;  %v7218_v36 = vld [vmem:[#allocation24 + $0xf4] ss:$24 sps:$4 sm:$0xff]  }
 0x671   :  { %6753 = vmatprep.subr.bf16.mxu0 %v7912_v49 }
 0x672   :  { %6804 = vmatpush3.bf16.msra.mxu1 %v7204_v18  ;;  %v7231_v18 = vld [vmem:[#allocation24 + $0x158] ss:$24 sps:$4 sm:$0xff]  }
 0x673   :  { %3076 = vmatprep.subr.bf16.mxu1 %v7212_v33 }
 0x674   :  { %6754 = vmatpush3.bf16.msra.mxu0 %v7194_v37  ;;  %v7221_v37 = vld [vmem:[#allocation24 + $0xfc] ss:$24 sps:$4 sm:$0xff]  }
 0x675   :  { %6755 = vmatprep.subr.bf16.mxu0 %v7912_v49 }
 0x678   :  { %6756 = vmatpush3.bf16.msra.mxu0 %v7195_v38  ;;  %v7216_v38 = vld [vmem:[#allocation24 + $0xf0] ss:$24 sps:$4 sm:$0xff]  }
 0x679   :  { %6757 = vmatprep.subr.bf16.mxu0 %v7912_v49 }
 0x67c   :  { %6758 = vmatpush3.bf16.msra.mxu0 %v7196_v39  ;;  %v7219_v39 = vld [vmem:[#allocation24 + $0xf8] ss:$24 sps:$4 sm:$0xff]  }
 0x67d   :  { %6759 = vmatprep.subr.bf16.mxu0 %v7912_v49 }
 0x680   :  { %6760 = vmatpush3.bf16.msra.mxu0 %v7197_v40  ;;  %v7224_v40 = vld [vmem:[#allocation24 + $0x124] ss:$24 sps:$4 sm:$0xff]  }
 0x681   :  { %6785 = vmatprep.subr.bf16.mxu0 %v7912_v49 }
 0x683   :  { %6762 = vmatmul.mubr.bf16.vlgmr.msra.gmra.mrb[32].mxu0 %v2236_v52 }
 0x684   :  { %6793 = vmatprep.mubr.msk.bf16.mxu0 %vm7913_vm11, %v7912_v49  ;;  %6786 = vmatpush3.bf16.msra.mxu0 %v7199_v46  ;;  %v7222_v46 = vld [vmem:[#allocation24 + $0x120] ss:$24 sps:$4 sm:$0xff]  }
 0x685   :  { %6787 = vmatprep.subr.bf16.mxu0 %v7912_v49 }
 0x688   :  { %6788 = vmatpush3.bf16.msra.mxu0 %v7201_v48  ;;  %v7230_v48 = vld [vmem:[#allocation24 + $0x154] ss:$24 sps:$4 sm:$0xff]  }
 0x689   :  { %6789 = vmatprep.subr.bf16.mxu0 %v7912_v49 }
 0x68c   :  { %6790 = vmatpush3.bf16.msra.mxu0 %v7203_v51  ;;  %v7228_v51 = vld [vmem:[#allocation24 + $0x150] ss:$24 sps:$4 sm:$0xff]  }
 0x68d   :  { %6791 = vmatprep.subr.bf16.mxu0 %v7912_v49 }
 0x690   :  { %6792 = vmatpush3.bf16.msra.mxu0 %v7205_v21  ;;  %v7236_v21 = vld [vmem:[#allocation24 + $0xd4] ss:$24 sps:$4 sm:$0xff]  }
 0x691   :  { %6809 = vmatprep.subr.bf16.mxu0 %v7912_v49 }
 0x736   :  { %v2353_v26 = vpop.f32.mrb[28].mxu0  ;;  %v2549_v53 = vpop.f32.mrb[8].mxu1 }
 0x737   :  { %v6743_v54 = vpop.f32.mrb[29].mxu0  ;;  %v6783_v55 = vpop.f32.mrb[9].mxu1 }
 0x738   :  { %v2356_v56 = vpop.f32.mrb[30].mxu0  ;;  %v2552_v58 = vpop.f32.mrb[10].mxu1 }
 0x739   :  { %v6744_v59 = vpop.f32.mrb[31].mxu0  ;;  %v6784_v60 = vpop.f32.mrb[11].mxu1 }
 0x73a   :  { %v2900_v54 = vpop.permute.xlu0 %2899 }
 0x756   :  { %v2442_v61 = vpop.f32.mrb[32].mxu0 }
 0x757   :  { %v2443_v62 = vadd.f32 %v2442_v61, %v2353_v26  ;;  %v6763_v63 = vpop.f32.mrb[33].mxu0  ;;  %v7239_v26 = vld [vmem:[#allocation24 + $0xc] ss:$24 sps:$4 sm:$0xff]  }
 0x758   :  { %v2445_v2 = vpop.f32.mrb[34].mxu0 }
 0x759   :  { %v2556_v3 = vadd.f32 %v2549_v53, %v2443_v62  ;;  %v2446_v4 = vadd.f32 %v2445_v2, %v2356_v56  ;;  %v6764_v5 = vpop.f32.mrb[35].mxu0  ;;  %v2912_v53 = vpop.permute.xlu1 %2911 }
 0x75a   :  { %v8780_v56 = vpop.permute.xlu0 %2841 }
 0x75b   :  { %v2565_v8 = vadd.f32 %v6228_v0, %v2556_v3  ;;  %v2557_v6 = vadd.f32 %v2552_v58, %v2446_v4 }
 0x75d   :  { %vm2567_vm3 = vcmp.gt.f32.partialorder %v2565_v8, 0.0  ;;  %v2569_v9 = vmul.f32 0.2, %v2565_v8  ;;  %v2566_v10 = vadd.f32 %v6228_v0, %v2557_v6  ;;  %v8778_v55 = vpop.permute.xlu1 %2853 }
 0x75e   :  { %v8784_v59 = vpop.permute.xlu0 %3462 }
 0x75f   :  { %v2571_v11 = vsel %vm2567_vm3, %v2565_v8, %v2569_v9  ;;  %vm2568_vm4 = vcmp.gt.f32.partialorder %v2566_v10, 0.0  ;;  %v2570_v12 = vmul.f32 0.2, %v2566_v10 }
 0x760   :  { %v2573_v13 = vrot.slane %v2571_v11, 7  ;;  %v2579_v17 = vrot.slane %v2571_v11, 1 }
 0x761   :  { %v2572_v14 = vsel %vm2568_vm4, %v2566_v10, %v2570_v12  ;;  %v8782_v58 = vpop.permute.xlu1 %3474  ;;  %v7914_v12 = vmov 839922192  }
 0x762   :  { %v2574_v19 = vrot.slane %v2572_v14, 7  ;;  %v2580_v20 = vrot.slane %v2572_v14, 1  ;;  %v2585_v23 = vpack.c.bf16 %v2572_v14, %v2571_v11  ;;  %v8788_v62 = vpop.permute.xlu0 %3785 }
 0x764   :  { %6806 = vmatmul.mubr.msk.bf16.vlgmr.msra.gmra.mrb[12].mxu1 %vm2628_vm5, %v2585_v23  ;;  %v2575_v52 = vsel %vm306_vm0, %v2573_v13, %v2574_v19  ;;  %v2576_v57 = vsel %vm306_vm0, %v2574_v19, %v2573_v13  ;;  %v2581_v15 = vsel %vm323_vm1, %v2579_v17, %v2580_v20  ;;  %v2582_v16 = vsel %vm323_vm1, %v2580_v20, %v2579_v17 }
 0x765   :  { %v2577_v25 = vmul.f32 %v2576_v57, %v8284_v43  ;;  %v2578_v27 = vmul.f32 %v2575_v52, %v8288_v45  ;;  %v2583_v28 = vmul.f32 %v2581_v15, %v8282_v42  ;;  %v2584_v29 = vmul.f32 %v2582_v16, %v8286_v44  ;;  %3108 = vmatprep.mubr.bf16.mxu1 %v7911_v1  ;;  %v7207_v43 = vld [vmem:[%s9008_s18 + $0x48] sm:$0xff]   ;;  %v7208_v42 = vld [vmem:[%s9008_s18 + $0x50] sm:$0xff]   ;;  %v7209_v44 = vld [vmem:[%s9008_s18 + $0x58] sm:$0xff]   ;;  %v8786_v60 = vpop.permute.xlu1 %3797 }
 0x766   :  { %v7210_v45 = vld [vmem:[#allocation24 + $0xc0] ss:$24 sps:$4 sm:$0xff]   ;;  %v4109_v6 = vpop.permute.xlu0 %4108  ;;  %v2845_v13 = vunpack.c.l.s4 %v7914_v12  ;;  %v6260_v15 = vld [vmem:[#allocation23] ss:$0 sm:$0xff] }
 0x767   :  { %v2595_v31 = vpack.c.bf16 %v2578_v27, %v2577_v25  ;;  %v2741_v32 = vpack.c.bf16 %v2584_v29, %v2583_v28  ;;  %3077 = vmatpush1.bf16.msra.mxu1 %v7210_v45  ;;  %v7249_v12 = vld [vmem:[#allocation24 + $0x68] ss:$24 sps:$4 sm:$0xff]  }
 0x768   :  { %3078 = vmatprep.subr.bf16.mxu1 %v7218_v36  ;;  %v2846_v19 = vunpack.c.0.s8 %v2845_v13  ;;  %v7254_v13 = vld [vmem:[#allocation24 + $0x164] ss:$24 sps:$4 sm:$0xff]  }
 0x769   :  { %6794 = vmatmul.mubr.msk.bf16.vlgmr.msra.gmra.mrb[36].mxu0 %vm2628_vm5, %v2595_v31  ;;  %v4121_v4 = vpop.permute.xlu1 %4120 }
 0x76a   :  { %6810 = vmatpush3.bf16.msra.mxu0 %v7206_v30  ;;  %6817 = vmatprep.mubr.msk.bf16.mxu0 %vm7913_vm11, %v7912_v49  ;;  %v4432_v17 = vpop.permute.xlu0 %4431  ;;  %v8791_v52 = vsub.s32 %v2846_v19, %v8262_v7 }
 0x76b   :  { %6811 = vmatprep.subr.bf16.mxu0 %v7912_v49  ;;  %3079 = vmatpush1.bf16.msra.mxu1 %v7216_v38 }
 0x76c   :  { %3080 = vmatprep.subr.bf16.mxu1 %v7224_v40  ;;  %v2920_v31 = vrot.slane %v2912_v53, %v8791_v52  ;;  %v4117_v45 = vrot.slane %v4109_v6, %v8791_v52  ;;  %v4440_v36 = vrot.slane %v4432_v17, %v8791_v52  ;;  %v7234_v53 = vld [vmem:[#allocation24 + $0xd0] ss:$24 sps:$4 sm:$0xff]   ;;  %v2862_v17 = vrot.slane %v8778_v55, %v8791_v52  ;;  %v7266_v55 = vld [vmem:[#allocation24 + $0x34] ss:$24 sps:$4 sm:$0xff]  }
 0x76d   :  { %v4444_v14 = vpop.permute.xlu1 %4443  ;;  %v7243_v6 = vld [vmem:[#allocation24 + $0x38] ss:$24 sps:$4 sm:$0xff]   ;;  %v2850_v19 = vrot.slane %v8780_v56, %v8791_v52  ;;  %v7269_v56 = vld [vmem:[#allocation24 + $0x1bc] ss:$24 sps:$4 sm:$0xff]  }
 0x76e   :  { %6812 = vmatpush3.bf16.msra.mxu0 %v7207_v43  ;;  %v4755_v23 = vpop.permute.xlu0 %4754  ;;  %v4129_v43 = vrot.slane %v4121_v4, %v8791_v52  ;;  %v4452_v33 = vrot.slane %v4444_v14, %v8791_v52  ;;  %v7257_v14 = vld [vmem:[#allocation24 + $0x9c] ss:$24 sps:$4 sm:$0xff]  }
 0x76f   :  { %6813 = vmatprep.subr.bf16.mxu0 %v7912_v49  ;;  %3081 = vmatpush1.bf16.msra.mxu1 %v7222_v46  ;;  %v4763_v38 = vrot.slane %v4755_v23, %v8791_v52  ;;  %v7255_v23 = vld [vmem:[#allocation24 + $0x98] ss:$24 sps:$4 sm:$0xff]  }
 0x770   :  { %3082 = vmatprep.subr.bf16.mxu1 %v7230_v48 }
 0x771   :  { %v4767_v20 = vpop.permute.xlu1 %4766 }
 0x772   :  { %6814 = vmatpush3.bf16.msra.mxu0 %v7208_v42 }
 0x773   :  { %6815 = vmatprep.subr.bf16.mxu0 %v7912_v49  ;;  %3083 = vmatpush1.bf16.msra.mxu1 %v7228_v51  ;;  %v6373_v51 = vcombine.low %v4117_v45, %v4129_v43  ;;  %v7270_v43 = vld [vmem:[#allocation24 + $0x60] ss:$24 sps:$4 sm:$0xff]   ;;  %v7281_v45 = vld [vmem:[#allocation24 + $0x21c] ss:$24 sps:$4 sm:$0xff]  }
 0x774   :  { %3162 = vmatprep.subr.bf16.mxu1 %v7236_v21 }
 0x775   :  { %v5090_v42 = vpop.permute.xlu1 %5089 }
 0x776   :  { %6816 = vmatpush3.bf16.msra.mxu0 %v7209_v44  ;;  %v5078_v44 = vpop.permute.xlu0 %5077 }
 0x777   :  { %3119 = vmatprep.subr.bf16.mxu0 %v7215_v35  ;;  %v5086_v40 = vrot.slane %v5078_v44, %v8791_v52  ;;  %v7278_v44 = vld [vmem:[#allocation24 + $0x94] ss:$24 sps:$4 sm:$0xff]  }
 0x779   :  { %6818 = vmatmul.mubr.msk.bf16.vlgmr.msra.gmra.mrb[40].mxu0 %vm2628_vm5, %v2741_v32  ;;  %v2908_v32 = vrot.slane %v2900_v54, %v8791_v52  ;;  %v7237_v54 = vld [vmem:[#allocation24 + $0x8] ss:$24 sps:$4 sm:$0xff]  }
 0x77a   :  { %3151 = vmatprep.mubr.bf16.mxu0 %v7911_v1  ;;  %3120 = vmatpush1.bf16.msra.mxu0 %v7213_v34 }
 0x77b   :  { %3121 = vmatprep.subr.bf16.mxu0 %v7221_v37  ;;  %v4775_v37 = vrot.slane %v4767_v20, %v8791_v52  ;;  %v6262_v48 = vcombine.low %v2908_v32, %v2920_v31  ;;  %v7252_v20 = vld [vmem:[#allocation24 + $0x160] ss:$24 sps:$4 sm:$0xff]   ;;  %v7272_v31 = vld [vmem:[#allocation24 + $0x64] ss:$24 sps:$4 sm:$0xff]  }
 0x77c   :  { %v7275_v32 = vld [vmem:[#allocation24 + $0x1ec] ss:$24 sps:$4 sm:$0xff]  }
 0x77d   :  { %v6429_v21 = vcombine.low %v4763_v38, %v4775_v37  ;;  %v7284_v37 = vld [vmem:[#allocation24 + $0x14] ss:$24 sps:$4 sm:$0xff]  }
 0x77e   :  { %3122 = vmatpush1.bf16.msra.mxu0 %v7219_v39  ;;  %v5098_v39 = vrot.slane %v5090_v42, %v8791_v52  ;;  %v7273_v42 = vld [vmem:[#allocation24 + $0x1e8] ss:$24 sps:$4 sm:$0xff]   ;;  %v7287_v38 = vld [vmem:[#allocation24 + $0x24c] ss:$24 sps:$4 sm:$0xff]  }
 0x77f   :  { %3123 = vmatprep.subr.bf16.mxu0 %v7227_v41 }
 0x782   :  { %3124 = vmatpush1.bf16.msra.mxu0 %v7225_v47 }
 0x783   :  { %3125 = vmatprep.subr.bf16.mxu0 %v7233_v50 }
 0x786   :  { %3126 = vmatpush1.bf16.msra.mxu0 %v7231_v18  ;;  %v6401_v18 = vcombine.low %v4440_v36, %v4452_v33  ;;  %v3483_v33 = vrot.slane %v8782_v58, %v8791_v52  ;;  %v7279_v36 = vld [vmem:[#allocation24 + $0x218] ss:$24 sps:$4 sm:$0xff]   ;;  %v7290_v58 = vld [vmem:[#allocation24 + $0x44] ss:$24 sps:$4 sm:$0xff]  }
 0x787   :  { %3371 = vmatprep.subr.bf16.mxu0 %v7239_v26  ;;  %v6457_v26 = vcombine.low %v5086_v40, %v5098_v39  ;;  %v7282_v40 = vld [vmem:[#allocation24 + $0x10] ss:$24 sps:$4 sm:$0xff]  }
 0x837   :  { %v2734_v61 = vpop.f32.mrb[12].mxu1 }
 0x838   :  { %v6807_v63 = vpop.f32.mrb[13].mxu1 }
 0x839   :  { %v2737_v0 = vpop.f32.mrb[14].mxu1  ;;  %v7242_v63 = vld [vmem:[#allocation24 + $0x104] ss:$24 sps:$4 sm:$0xff]  }
 0x83a   :  { %v6808_v2 = vpop.f32.mrb[15].mxu1 }
 0x83c   :  { %v2666_v3 = vpop.f32.mrb[36].mxu0 }
 0x83d   :  { %v2735_v5 = vadd.f32 %v2734_v61, %v2666_v3  ;;  %v6795_v8 = vpop.f32.mrb[37].mxu0 }
 0x83e   :  { %v2669_v9 = vpop.f32.mrb[38].mxu0  ;;  %v7240_v8 = vld [vmem:[#allocation24 + $0x100] ss:$24 sps:$4 sm:$0xff]  }
 0x83f   :  { %v2738_v10 = vadd.f32 %v2737_v0, %v2669_v9  ;;  %v6796_v11 = vpop.f32.mrb[39].mxu0  ;;  %v7245_v0 = vld [vmem:[#allocation24 + $0x3c] ss:$24 sps:$4 sm:$0xff]  }
 0x840   :  { %v7248_v9 = vld [vmem:[#allocation24 + $0x134] ss:$24 sps:$4 sm:$0xff]   ;;  %v7246_v11 = vld [vmem:[#allocation24 + $0x130] ss:$24 sps:$4 sm:$0xff]  }
 0x84c   :  { %v2812_v57 = vpop.f32.mrb[40].mxu0 }
 0x84d   :  { %v2819_v16 = vadd.f32 %v2812_v57, %v2735_v5  ;;  %v6819_v25 = vpop.f32.mrb[41].mxu0  ;;  %v7260_v57 = vld [vmem:[#allocation24 + $0x4] ss:$24 sps:$4 sm:$0xff]  }
 0x84e   :  { %v2815_v27 = vpop.f32.mrb[42].mxu0  ;;  %v7258_v25 = vld [vmem:[#allocation24] ss:$24 sps:$4 sm:$0xff]  }
 0x84f   :  { %v2828_v28 = vadd.f32 %v6260_v15, %v2819_v16  ;;  %v2820_v29 = vadd.f32 %v2815_v27, %v2738_v10  ;;  %v6820_v30 = vpop.f32.mrb[43].mxu0  ;;  %v7251_v10 = vld [vmem:[#allocation24 + $0x6c] ss:$24 sps:$4 sm:$0xff]   ;;  %v6261_v16 = vcombine.low %v2850_v19, %v2862_v17  ;;  %v7261_v27 = vld [vmem:[#allocation24 + $0x188] ss:$24 sps:$4 sm:$0xff]  }
 0x850   :  { %v7267_v30 = vld [vmem:[#allocation24 + $0x1b8] ss:$24 sps:$4 sm:$0xff]   ;;  %v7320_v17 = vld [vmem:[#allocation24 + $0x1e4] ss:$24 sps:$4 sm:$0xff]  }
 0x851   :  { %v2832_v34 = vmul.f32 0.2, %v2828_v28  ;;  %v2829_v35 = vadd.f32 %v6260_v15, %v2820_v29  ;;  %vm2830_vm0 = vcmp.gt.f32.partialorder %v2828_v28, 0.0  ;;  %v7263_v15 = vld [vmem:[#allocation24 + $0x18c] ss:$24 sps:$4 sm:$0xff]  }
 0x852   :  { %v7264_v29 = vld [vmem:[#allocation24 + $0x30] ss:$24 sps:$4 sm:$0xff]   ;;  %v7323_v19 = vld [vmem:[#allocation24 + $0x36c] ss:$24 sps:$4 sm:$0xff]  }
 0x853   :  { %vm2831_vm1 = vcmp.gt.f32.partialorder %v2829_v35, 0.0  ;;  %v2833_v41 = vmul.f32 0.2, %v2829_v35  ;;  %v2834_v46 = vsel %vm2830_vm0, %v2828_v28, %v2832_v34  ;;  %v3471_v34 = vrot.slane %v8784_v59, %v8791_v52  ;;  %v7293_v59 = vld [vmem:[#allocation24 + $0x27c] ss:$24 sps:$4 sm:$0xff]  }
 0x855   :  { %v2835_v47 = vsel %vm2831_vm1, %v2829_v35, %v2833_v41  ;;  %v7276_v35 = vld [vmem:[#allocation24 + $0x90] ss:$24 sps:$4 sm:$0xff]   ;;  %v6317_v39 = vcombine.low %v3471_v34, %v3483_v33  ;;  %v7353_v33 = vld [vmem:[#allocation24 + $0x45c] ss:$24 sps:$4 sm:$0xff]   ;;  %v7348_v34 = vld [vmem:[#allocation24 + $0x220] ss:$24 sps:$4 sm:$0xff]  }
 0x856   :  { %v8803_v50 = vpack.c.bf16 %v2835_v47, %v2834_v46  ;;  %v7285_v41 = vld [vmem:[#allocation24 + $0x248] ss:$24 sps:$4 sm:$0xff]  }
 0x857   :  { %v7288_v47 = vld [vmem:[#allocation24 + $0x40] ss:$24 sps:$4 sm:$0xff]  }
 0x858   :  { %v2927_v61 = vmul.bf16 %v6262_v48, %v8803_v50  ;;  %v8807_v2 = vmul.bf16 %v6373_v51, %v8803_v50  ;;  %v8810_v3 = vmul.bf16 %v6401_v18, %v8803_v50  ;;  %v8813_v4 = vmul.bf16 %v6429_v21, %v8803_v50  ;;  %v7291_v48 = vld [vmem:[#allocation24 + $0x278] ss:$24 sps:$4 sm:$0xff]   ;;  %v7296_v51 = vld [vmem:[#allocation24 + $0x74] ss:$24 sps:$4 sm:$0xff]  }
 0x859   :  { %v8816_v5 = vmul.bf16 %v6457_v26, %v8803_v50  ;;  %v8827_v28 = vmul.bf16 %v6261_v16, %v8803_v50  ;;  %v8839_v46 = vmul.bf16 %v6317_v39, %v8803_v50  ;;  %v7299_v18 = vld [vmem:[#allocation24 + $0x2ac] ss:$24 sps:$4 sm:$0xff]   ;;  %v7294_v21 = vld [vmem:[#allocation24 + $0x70] ss:$24 sps:$4 sm:$0xff]  }
 0x85a   :  { %6287 = vmatmul.mubr.msk.bf16.vlgmr.msra.gmra.mrb[16].mxu1 %vm2628_vm5, %v2927_v61  ;;  %6288 = vmatmul.mubr.msk.bf16.vlgmr.msra.gmra.mrb[44].mxu0 %vm2628_vm5, %v2927_v61  ;;  %v7297_v26 = vld [vmem:[#allocation24 + $0x2a8] ss:$24 sps:$4 sm:$0xff]   ;;  %v7327_v16 = vld [vmem:[#allocation24 + $0x398] ss:$24 sps:$4 sm:$0xff]  }
 0x85b   :  { %3163 = vmatpush1.bf16.msra.mxu1 %v7234_v53  ;;  %3372 = vmatpush1.bf16.msra.mxu0 %v7237_v54  ;;  %v7302_v53 = vld [vmem:[#allocation24 + $0xa4] ss:$24 sps:$4 sm:$0xff]   ;;  %v7357_v39 = vld [vmem:[#allocation24 + $0x488] ss:$24 sps:$4 sm:$0xff]  }
 0x85c   :  { %3164 = vmatprep.subr.bf16.mxu1 %v7242_v63  ;;  %3373 = vmatprep.subr.bf16.mxu0 %v7245_v0  ;;  %v7305_v54 = vld [vmem:[#allocation24 + $0x2dc] ss:$24 sps:$4 sm:$0xff]   ;;  %v3794_v63 = vrot.slane %v8788_v62, %v8791_v52  ;;  %v7300_v0 = vld [vmem:[#allocation24 + $0xa0] ss:$24 sps:$4 sm:$0xff]  }
 0x85d   :  { %3194 = vmatprep.mubr.bf16.mxu1 %v7911_v1  ;;  %3403 = vmatprep.mubr.bf16.mxu0 %v7911_v1  ;;  %v7317_v62 = vld [vmem:[#allocation24 + $0x33c] ss:$24 sps:$4 sm:$0xff]  }
 0x85f   :  { %3165 = vmatpush1.bf16.msra.mxu1 %v7240_v8  ;;  %3374 = vmatpush1.bf16.msra.mxu0 %v7243_v6  ;;  %v7303_v8 = vld [vmem:[#allocation24 + $0x2d8] ss:$24 sps:$4 sm:$0xff]   ;;  %v7308_v6 = vld [vmem:[#allocation24 + $0x184] ss:$24 sps:$4 sm:$0xff]  }
 0x860   :  { %3166 = vmatprep.subr.bf16.mxu1 %v7248_v9  ;;  %3375 = vmatprep.subr.bf16.mxu0 %v7251_v10  ;;  %v7311_v9 = vld [vmem:[#allocation24 + $0x30c] ss:$24 sps:$4 sm:$0xff]  }
 0x863   :  { %3167 = vmatpush1.bf16.msra.mxu1 %v7246_v11  ;;  %3376 = vmatpush1.bf16.msra.mxu0 %v7249_v12  ;;  %v7306_v11 = vld [vmem:[#allocation24 + $0x180] ss:$24 sps:$4 sm:$0xff]  }
 0x864   :  { %3168 = vmatprep.subr.bf16.mxu1 %v7254_v13  ;;  %3377 = vmatprep.subr.bf16.mxu0 %v7257_v14  ;;  %v7309_v12 = vld [vmem:[#allocation24 + $0x308] ss:$24 sps:$4 sm:$0xff]   ;;  %v7315_v14 = vld [vmem:[#allocation24 + $0x338] ss:$24 sps:$4 sm:$0xff]  }
 0x867   :  { %3169 = vmatpush1.bf16.msra.mxu1 %v7252_v20  ;;  %3378 = vmatpush1.bf16.msra.mxu0 %v7255_v23  ;;  %v7321_v20 = vld [vmem:[#allocation24 + $0x368] ss:$24 sps:$4 sm:$0xff]   ;;  %v7326_v23 = vld [vmem:[#allocation24 + $0x214] ss:$24 sps:$4 sm:$0xff]  }
 0x868   :  { %3328 = vmatprep.subr.bf16.mxu1 %v7260_v57  ;;  %3682 = vmatprep.subr.bf16.mxu0 %v7263_v15  ;;  %v7329_v57 = vld [vmem:[#allocation24 + $0x39c] ss:$24 sps:$4 sm:$0xff]   ;;  %v7324_v15 = vld [vmem:[#allocation24 + $0x210] ss:$24 sps:$4 sm:$0xff]  }
 0x86a   :  { %6289 = vmatmul.mubr.msk.bf16.vlgmr.msra.gmra.mrb[20].mxu1 %vm2628_vm5, %v2927_v61  ;;  %6315 = vmatmul.mubr.msk.bf16.vlgmr.msra.gmra.mrb[44].mxu0 %vm2628_vm5, %v8827_v28  ;;  %v3806_v61 = vrot.slane %v8786_v60, %v8791_v52  ;;  %v7314_v60 = vld [vmem:[#allocation24 + $0x1b4] ss:$24 sps:$4 sm:$0xff]   ;;  %v7312_v52 = vld [vmem:[#allocation24 + $0x1b0] ss:$24 sps:$4 sm:$0xff]  }
 0x86b   :  { %3329 = vmatpush1.bf16.msra.mxu1 %v7258_v25  ;;  %3683 = vmatpush1.bf16.msra.mxu0 %v7261_v27  ;;  %v7332_v25 = vld [vmem:[#allocation24 + $0x194] ss:$24 sps:$4 sm:$0xff]  }
 0x86c   :  { %3330 = vmatprep.subr.bf16.mxu1 %v7266_v55  ;;  %3684 = vmatprep.subr.bf16.mxu0 %v7269_v56  ;;  %v6345_v10 = vcombine.low %v3794_v63, %v3806_v61  ;;  %v7335_v27 = vld [vmem:[#allocation24 + $0x3cc] ss:$24 sps:$4 sm:$0xff]   ;;  %v7333_v55 = vld [vmem:[#allocation24 + $0x3c8] ss:$24 sps:$4 sm:$0xff]  }
 0x86d   :  { %3360 = vmatprep.mubr.bf16.mxu1 %v7911_v1  ;;  %3714 = vmatprep.mubr.bf16.mxu0 %v7911_v1  ;;  %v7338_v56 = vld [vmem:[#allocation24 + $0x1c4] ss:$24 sps:$4 sm:$0xff]   ;;  %v7378_v63 = vld [vmem:[#allocation24 + $0x250] ss:$24 sps:$4 sm:$0xff]  }
 0x86e   :  { %v8852_v13 = vmul.bf16 %v6345_v10, %v8803_v50  ;;  %v7318_v50 = vld [vmem:[#allocation24 + $0x1e0] ss:$24 sps:$4 sm:$0xff]   ;;  %v7383_v61 = vld [vmem:[#allocation24 + $0x54c] ss:$24 sps:$4 sm:$0xff]  }
 0x86f   :  { %3331 = vmatpush1.bf16.msra.mxu1 %v7264_v29  ;;  %3685 = vmatpush1.bf16.msra.mxu0 %v7267_v30  ;;  %v7341_v29 = vld [vmem:[#allocation24 + $0x3fc] ss:$24 sps:$4 sm:$0xff]   ;;  %v7336_v30 = vld [vmem:[#allocation24 + $0x1c0] ss:$24 sps:$4 sm:$0xff]  }
 0x870   :  { %3332 = vmatprep.subr.bf16.mxu1 %v7272_v31  ;;  %3686 = vmatprep.subr.bf16.mxu0 %v7275_v32  ;;  %v7339_v31 = vld [vmem:[#allocation24 + $0x3f8] ss:$24 sps:$4 sm:$0xff]   ;;  %v7344_v32 = vld [vmem:[#allocation24 + $0x1f4] ss:$24 sps:$4 sm:$0xff]  }
 0x871   :  { %v7387_v10 = vld [vmem:[#allocation24 + $0x578] ss:$24 sps:$4 sm:$0xff]  }
 0x873   :  { %3333 = vmatpush1.bf16.msra.mxu1 %v7270_v43  ;;  %3687 = vmatpush1.bf16.msra.mxu0 %v7273_v42  ;;  %v7347_v43 = vld [vmem:[#allocation24 + $0x42c] ss:$24 sps:$4 sm:$0xff]   ;;  %v7342_v42 = vld [vmem:[#allocation24 + $0x1f0] ss:$24 sps:$4 sm:$0xff]  }
 0x874   :  { %3334 = vmatprep.subr.bf16.mxu1 %v7278_v44  ;;  %3688 = vmatprep.subr.bf16.mxu0 %v7281_v45  ;;  %v7345_v44 = vld [vmem:[#allocation24 + $0x428] ss:$24 sps:$4 sm:$0xff]   ;;  %v7350_v45 = vld [vmem:[#allocation24 + $0x224] ss:$24 sps:$4 sm:$0xff]  }
 0x877   :  { %3335 = vmatpush1.bf16.msra.mxu1 %v7276_v35  ;;  %3689 = vmatpush1.bf16.msra.mxu0 %v7279_v36  ;;  %v7351_v35 = vld [vmem:[#allocation24 + $0x458] ss:$24 sps:$4 sm:$0xff]   ;;  %v7356_v36 = vld [vmem:[#allocation24 + $0x244] ss:$24 sps:$4 sm:$0xff]  }
 0x878   :  { %3414 = vmatprep.subr.bf16.mxu1 %v7284_v37  ;;  %4005 = vmatprep.subr.bf16.mxu0 %v7287_v38  ;;  %v7359_v37 = vld [vmem:[#allocation24 + $0x48c] ss:$24 sps:$4 sm:$0xff]   ;;  %v7354_v38 = vld [vmem:[#allocation24 + $0x240] ss:$24 sps:$4 sm:$0xff]  }
 0x87a   :  { %6314 = vmatmul.mubr.msk.bf16.vlgmr.msra.gmra.mrb[16].mxu1 %vm2628_vm5, %v8827_v28  ;;  %6343 = vmatmul.mubr.msk.bf16.vlgmr.msra.gmra.mrb[44].mxu0 %vm2628_vm5, %v8839_v46 }
 0x87b   :  { %3415 = vmatpush1.bf16.msra.mxu1 %v7282_v40  ;;  %4006 = vmatpush1.bf16.msra.mxu0 %v7285_v41  ;;  %v7362_v40 = vld [vmem:[#allocation24 + $0x274] ss:$24 sps:$4 sm:$0xff]  }
 0x87c   :  { %3416 = vmatprep.subr.bf16.mxu1 %v7290_v58  ;;  %4007 = vmatprep.subr.bf16.mxu0 %v7293_v59  ;;  %v7365_v41 = vld [vmem:[#allocation24 + $0x4bc] ss:$24 sps:$4 sm:$0xff]   ;;  %v7360_v58 = vld [vmem:[#allocation24 + $0x270] ss:$24 sps:$4 sm:$0xff]  }
 0x87d   :  { %3446 = vmatprep.mubr.bf16.mxu1 %v7911_v1  ;;  %4037 = vmatprep.mubr.bf16.mxu0 %v7911_v1  ;;  %v7363_v59 = vld [vmem:[#allocation24 + $0x4b8] ss:$24 sps:$4 sm:$0xff]  }
 0x87f   :  { %3417 = vmatpush1.bf16.msra.mxu1 %v7288_v47  ;;  %4008 = vmatpush1.bf16.msra.mxu0 %v7291_v48  ;;  %v7368_v47 = vld [vmem:[#allocation24 + $0x2a4] ss:$24 sps:$4 sm:$0xff]  }
 0x880   :  { %3418 = vmatprep.subr.bf16.mxu1 %v7296_v51  ;;  %4009 = vmatprep.subr.bf16.mxu0 %v7299_v18  ;;  %v7371_v48 = vld [vmem:[#allocation24 + $0x4ec] ss:$24 sps:$4 sm:$0xff]   ;;  %v7366_v51 = vld [vmem:[#allocation24 + $0x2a0] ss:$24 sps:$4 sm:$0xff]  }
 0x881   :  { %v7369_v18 = vld [vmem:[#allocation24 + $0x4e8] ss:$24 sps:$4 sm:$0xff]  }
 0x883   :  { %3419 = vmatpush1.bf16.msra.mxu1 %v7294_v21  ;;  %4010 = vmatpush1.bf16.msra.mxu0 %v7297_v26  ;;  %v7377_v21 = vld [vmem:[#allocation24 + $0x51c] ss:$24 sps:$4 sm:$0xff]   ;;  %v7372_v26 = vld [vmem:[#allocation24 + $0x2d0] ss:$24 sps:$4 sm:$0xff]  }
 0x884   :  { %3420 = vmatprep.subr.bf16.mxu1 %v7302_v53  ;;  %4011 = vmatprep.subr.bf16.mxu0 %v7305_v54  ;;  %v7375_v53 = vld [vmem:[#allocation24 + $0x518] ss:$24 sps:$4 sm:$0xff]   ;;  %v7380_v54 = vld [vmem:[#allocation24 + $0x254] ss:$24 sps:$4 sm:$0xff]  }
 0x887   :  { %3421 = vmatpush1.bf16.msra.mxu1 %v7300_v0  ;;  %4012 = vmatpush1.bf16.msra.mxu0 %v7303_v8  ;;  %v7381_v0 = vld [vmem:[#allocation24 + $0x548] ss:$24 sps:$4 sm:$0xff]   ;;  %v7386_v8 = vld [vmem:[#allocation24 + $0x284] ss:$24 sps:$4 sm:$0xff]  }
 0x888   :  { %3639 = vmatprep.subr.bf16.mxu1 %v7308_v6  ;;  %4328 = vmatprep.subr.bf16.mxu0 %v7311_v9  ;;  %v7389_v6 = vld [vmem:[#allocation24 + $0x57c] ss:$24 sps:$4 sm:$0xff]   ;;  %v7384_v9 = vld [vmem:[#allocation24 + $0x280] ss:$24 sps:$4 sm:$0xff]  }
 0x88a   :  { %6316 = vmatmul.mubr.msk.bf16.vlgmr.msra.gmra.mrb[20].mxu1 %vm2628_vm5, %v8827_v28  ;;  %6371 = vmatmul.mubr.msk.bf16.vlgmr.msra.gmra.mrb[44].mxu0 %vm2628_vm5, %v8852_v13  ;;  %v7330_v28 = vld [vmem:[#allocation24 + $0x190] ss:$24 sps:$4 sm:$0xff]  }
 0x88b   :  { %3640 = vmatpush1.bf16.msra.mxu1 %v7306_v11  ;;  %4329 = vmatpush1.bf16.msra.mxu0 %v7309_v12  ;;  %v7392_v11 = vld [vmem:[#allocation24 + $0x2b4] ss:$24 sps:$4 sm:$0xff]  }
 0x88c   :  { %3641 = vmatprep.subr.bf16.mxu1 %v7314_v60  ;;  %4330 = vmatprep.subr.bf16.mxu0 %v7317_v62  ;;  %v7395_v12 = vld [vmem:[#allocation24 + $0x5ac] ss:$24 sps:$4 sm:$0xff]   ;;  %v7390_v60 = vld [vmem:[#allocation24 + $0x2b0] ss:$24 sps:$4 sm:$0xff]  }
 0x88d   :  { %3671 = vmatprep.mubr.bf16.mxu1 %v7911_v1  ;;  %4360 = vmatprep.mubr.bf16.mxu0 %v7911_v1  ;;  %v7393_v62 = vld [vmem:[#allocation24 + $0x5a8] ss:$24 sps:$4 sm:$0xff]  }
 0x88f   :  { %3642 = vmatpush1.bf16.msra.mxu1 %v7312_v52  ;;  %4331 = vmatpush1.bf16.msra.mxu0 %v7315_v14  ;;  %v7398_v52 = vld [vmem:[#allocation24 + $0x2e4] ss:$24 sps:$4 sm:$0xff]  }
 0x890   :  { %3643 = vmatprep.subr.bf16.mxu1 %v7320_v17  ;;  %4332 = vmatprep.subr.bf16.mxu0 %v7323_v19  ;;  %v7401_v14 = vld [vmem:[#allocation24 + $0x5dc] ss:$24 sps:$4 sm:$0xff]   ;;  %v7396_v17 = vld [vmem:[#allocation24 + $0x2e0] ss:$24 sps:$4 sm:$0xff]  }
 0x891   :  { %v7399_v19 = vld [vmem:[#allocation24 + $0x5d8] ss:$24 sps:$4 sm:$0xff]  }
 0x893   :  { %3644 = vmatpush1.bf16.msra.mxu1 %v7318_v50  ;;  %4333 = vmatpush1.bf16.msra.mxu0 %v7321_v20  ;;  %v7404_v50 = vld [vmem:[#allocation24 + $0x304] ss:$24 sps:$4 sm:$0xff]   ;;  %v7402_v20 = vld [vmem:[#allocation24 + $0x300] ss:$24 sps:$4 sm:$0xff]  }
 0x894   :  { %3645 = vmatprep.subr.bf16.mxu1 %v7326_v23  ;;  %4334 = vmatprep.subr.bf16.mxu0 %v7329_v57  ;;  %v7407_v23 = vld [vmem:[#allocation24 + $0x334] ss:$24 sps:$4 sm:$0xff]   ;;  %v7405_v57 = vld [vmem:[#allocation24 + $0x330] ss:$24 sps:$4 sm:$0xff]  }
 0x897   :  { %3646 = vmatpush1.bf16.msra.mxu1 %v7324_v15  ;;  %4335 = vmatpush1.bf16.msra.mxu0 %v7327_v16  ;;  %v7410_v15 = vld [vmem:[#allocation24 + $0x364] ss:$24 sps:$4 sm:$0xff]   ;;  %v7408_v16 = vld [vmem:[#allocation24 + $0x360] ss:$24 sps:$4 sm:$0xff]  }
 0x898   :  { %3725 = vmatprep.subr.bf16.mxu1 %v7332_v25  ;;  %4651 = vmatprep.subr.bf16.mxu0 %v7335_v27  ;;  %v7413_v25 = vld [vmem:[#allocation24 + $0x394] ss:$24 sps:$4 sm:$0xff]   ;;  %v7411_v27 = vld [vmem:[#allocation24 + $0x390] ss:$24 sps:$4 sm:$0xff]  }
 0x89a   :  { %6342 = vmatmul.mubr.msk.bf16.vlgmr.msra.gmra.mrb[16].mxu1 %vm2628_vm5, %v8839_v46  ;;  %6399 = vmatmul.mubr.msk.bf16.vlgmr.msra.gmra.mrb[44].mxu0 %vm2628_vm5, %v8807_v2 }
 0x89b   :  { %3726 = vmatpush1.bf16.msra.mxu1 %v7330_v28  ;;  %4652 = vmatpush1.bf16.msra.mxu0 %v7333_v55  ;;  %v7416_v28 = vld [vmem:[#allocation24 + $0x314] ss:$24 sps:$4 sm:$0xff]   ;;  %v7419_v55 = vld [vmem:[#allocation24 + $0x344] ss:$24 sps:$4 sm:$0xff]  }
 0x89c   :  { %3727 = vmatprep.subr.bf16.mxu1 %v7338_v56  ;;  %4653 = vmatprep.subr.bf16.mxu0 %v7341_v29  ;;  %v7417_v56 = vld [vmem:[#allocation24 + $0x340] ss:$24 sps:$4 sm:$0xff]   ;;  %v7422_v29 = vld [vmem:[#allocation24 + $0x374] ss:$24 sps:$4 sm:$0xff]  }
 0x89d   :  { %3757 = vmatprep.mubr.bf16.mxu1 %v7911_v1  ;;  %4683 = vmatprep.mubr.bf16.mxu0 %v7911_v1 }
 0x89f   :  { %3728 = vmatpush1.bf16.msra.mxu1 %v7336_v30  ;;  %4654 = vmatpush1.bf16.msra.mxu0 %v7339_v31  ;;  %v7420_v30 = vld [vmem:[#allocation24 + $0x370] ss:$24 sps:$4 sm:$0xff]   ;;  %v7425_v31 = vld [vmem:[#allocation24 + $0x3a4] ss:$24 sps:$4 sm:$0xff]  }
 0x8a0   :  { %3729 = vmatprep.subr.bf16.mxu1 %v7344_v32  ;;  %4655 = vmatprep.subr.bf16.mxu0 %v7347_v43  ;;  %v7423_v32 = vld [vmem:[#allocation24 + $0x3a0] ss:$24 sps:$4 sm:$0xff]   ;;  %v7428_v43 = vld [vmem:[#allocation24 + $0x3c4] ss:$24 sps:$4 sm:$0xff]  }
 0x8a3   :  { %3730 = vmatpush1.bf16.msra.mxu1 %v7342_v42  ;;  %4656 = vmatpush1.bf16.msra.mxu0 %v7345_v44  ;;  %v7426_v42 = vld [vmem:[#allocation24 + $0x3c0] ss:$24 sps:$4 sm:$0xff]   ;;  %v7431_v44 = vld [vmem:[#allocation24 + $0x3f4] ss:$24 sps:$4 sm:$0xff]  }
 0x8a4   :  { %3731 = vmatprep.subr.bf16.mxu1 %v7350_v45  ;;  %4657 = vmatprep.subr.bf16.mxu0 %v7353_v33  ;;  %v7429_v45 = vld [vmem:[#allocation24 + $0x3f0] ss:$24 sps:$4 sm:$0xff]   ;;  %v7434_v33 = vld [vmem:[#allocation24 + $0x424] ss:$24 sps:$4 sm:$0xff]  }
 0x8a7   :  { %3732 = vmatpush1.bf16.msra.mxu1 %v7348_v34  ;;  %4658 = vmatpush1.bf16.msra.mxu0 %v7351_v35  ;;  %v7432_v34 = vld [vmem:[#allocation24 + $0x420] ss:$24 sps:$4 sm:$0xff]   ;;  %v7437_v35 = vld [vmem:[#allocation24 + $0x454] ss:$24 sps:$4 sm:$0xff]  }
 0x8a8   :  { %3962 = vmatprep.subr.bf16.mxu1 %v7356_v36  ;;  %4974 = vmatprep.subr.bf16.mxu0 %v7359_v37  ;;  %v7435_v36 = vld [vmem:[#allocation24 + $0x450] ss:$24 sps:$4 sm:$0xff]   ;;  %v7440_v37 = vld [vmem:[#allocation24 + $0x3d4] ss:$24 sps:$4 sm:$0xff]  }
 0x8aa   :  { %6344 = vmatmul.mubr.msk.bf16.vlgmr.msra.gmra.mrb[20].mxu1 %vm2628_vm5, %v8839_v46  ;;  %6427 = vmatmul.mubr.msk.bf16.vlgmr.msra.gmra.mrb[44].mxu0 %vm2628_vm5, %v8810_v3  ;;  %v7374_v46 = vld [vmem:[#allocation24 + $0x2d4] ss:$24 sps:$4 sm:$0xff]  }
 0x8ab   :  { %3963 = vmatpush1.bf16.msra.mxu1 %v7354_v38  ;;  %4975 = vmatpush1.bf16.msra.mxu0 %v7357_v39  ;;  %v7438_v38 = vld [vmem:[#allocation24 + $0x3d0] ss:$24 sps:$4 sm:$0xff]   ;;  %v7443_v39 = vld [vmem:[#allocation24 + $0x404] ss:$24 sps:$4 sm:$0xff]  }
 0x8ac   :  { %3964 = vmatprep.subr.bf16.mxu1 %v7362_v40  ;;  %4976 = vmatprep.subr.bf16.mxu0 %v7365_v41  ;;  %v7446_v40 = vld [vmem:[#allocation24 + $0x434] ss:$24 sps:$4 sm:$0xff]   ;;  %v7444_v41 = vld [vmem:[#allocation24 + $0x430] ss:$24 sps:$4 sm:$0xff]  }
 0x8ad   :  { %3994 = vmatprep.mubr.bf16.mxu1 %v7911_v1  ;;  %5006 = vmatprep.mubr.bf16.mxu0 %v7911_v1 }
 0x8af   :  { %3965 = vmatpush1.bf16.msra.mxu1 %v7360_v58  ;;  %4977 = vmatpush1.bf16.msra.mxu0 %v7363_v59  ;;  %v7449_v58 = vld [vmem:[#allocation24 + $0x464] ss:$24 sps:$4 sm:$0xff]   ;;  %v7447_v59 = vld [vmem:[#allocation24 + $0x460] ss:$24 sps:$4 sm:$0xff]  }
 0x8b0   :  { %3966 = vmatprep.subr.bf16.mxu1 %v7368_v47  ;;  %4978 = vmatprep.subr.bf16.mxu0 %v7371_v48  ;;  %v7452_v47 = vld [vmem:[#allocation24 + $0x484] ss:$24 sps:$4 sm:$0xff]   ;;  %v7450_v48 = vld [vmem:[#allocation24 + $0x480] ss:$24 sps:$4 sm:$0xff]  }
 0x8b3   :  { %3967 = vmatpush1.bf16.msra.mxu1 %v7366_v51  ;;  %4979 = vmatpush1.bf16.msra.mxu0 %v7369_v18  ;;  %v7455_v51 = vld [vmem:[#allocation24 + $0x4b4] ss:$24 sps:$4 sm:$0xff]   ;;  %v7453_v18 = vld [vmem:[#allocation24 + $0x4b0] ss:$24 sps:$4 sm:$0xff]  }
 0x8b4   :  { %3968 = vmatprep.subr.bf16.mxu1 %v7374_v46  ;;  %4980 = vmatprep.subr.bf16.mxu0 %v7377_v21  ;;  %v7458_v46 = vld [vmem:[#allocation24 + $0x4e4] ss:$24 sps:$4 sm:$0xff]   ;;  %v7456_v21 = vld [vmem:[#allocation24 + $0x4e0] ss:$24 sps:$4 sm:$0xff]  }
 0x8b7   :  { %3969 = vmatpush1.bf16.msra.mxu1 %v7372_v26  ;;  %4981 = vmatpush1.bf16.msra.mxu0 %v7375_v53  ;;  %v7461_v26 = vld [vmem:[#allocation24 + $0x514] ss:$24 sps:$4 sm:$0xff]   ;;  %v7459_v53 = vld [vmem:[#allocation24 + $0x510] ss:$24 sps:$4 sm:$0xff]  }
 0x8b8   :  { %4048 = vmatprep.subr.bf16.mxu1 %v7380_v54  ;;  %5297 = vmatprep.subr.bf16.mxu0 %v7383_v61  ;;  %v7464_v54 = vld [vmem:[#allocation24 + $0x494] ss:$24 sps:$4 sm:$0xff]   ;;  %v7462_v61 = vld [vmem:[#allocation24 + $0x490] ss:$24 sps:$4 sm:$0xff]  }
 0x8ba   :  { %6370 = vmatmul.mubr.msk.bf16.vlgmr.msra.gmra.mrb[16].mxu1 %vm2628_vm5, %v8852_v13  ;;  %6455 = vmatmul.mubr.msk.bf16.vlgmr.msra.gmra.mrb[44].mxu0 %vm2628_vm5, %v8813_v4 }
 0x8bb   :  { %4049 = vmatpush1.bf16.msra.mxu1 %v7378_v63  ;;  %5298 = vmatpush1.bf16.msra.mxu0 %v7381_v0  ;;  %v7467_v63 = vld [vmem:[#allocation24 + $0x4c4] ss:$24 sps:$4 sm:$0xff]   ;;  %v7470_v0 = vld [vmem:[#allocation24 + $0x4f4] ss:$24 sps:$4 sm:$0xff]  }
 0x8bc   :  { %4050 = vmatprep.subr.bf16.mxu1 %v7386_v8  ;;  %5299 = vmatprep.subr.bf16.mxu0 %v7389_v6  ;;  %v7468_v8 = vld [vmem:[#allocation24 + $0x4f0] ss:$24 sps:$4 sm:$0xff]   ;;  %v7473_v6 = vld [vmem:[#allocation24 + $0x524] ss:$24 sps:$4 sm:$0xff]  }
 0x8bd   :  { %4080 = vmatprep.mubr.bf16.mxu1 %v7911_v1  ;;  %5329 = vmatprep.mubr.bf16.mxu0 %v7911_v1 }
 0x8bf   :  { %4051 = vmatpush1.bf16.msra.mxu1 %v7384_v9  ;;  %5300 = vmatpush1.bf16.msra.mxu0 %v7387_v10  ;;  %v7471_v9 = vld [vmem:[#allocation24 + $0x520] ss:$24 sps:$4 sm:$0xff]   ;;  %v7476_v10 = vld [vmem:[#allocation24 + $0x544] ss:$24 sps:$4 sm:$0xff]  }
 0x8c0   :  { %4052 = vmatprep.subr.bf16.mxu1 %v7392_v11  ;;  %5301 = vmatprep.subr.bf16.mxu0 %v7395_v12  ;;  %v7474_v11 = vld [vmem:[#allocation24 + $0x540] ss:$24 sps:$4 sm:$0xff]   ;;  %v7479_v12 = vld [vmem:[#allocation24 + $0x574] ss:$24 sps:$4 sm:$0xff]  }
 0x8c3   :  { %4053 = vmatpush1.bf16.msra.mxu1 %v7390_v60  ;;  %5302 = vmatpush1.bf16.msra.mxu0 %v7393_v62  ;;  %v7477_v60 = vld [vmem:[#allocation24 + $0x570] ss:$24 sps:$4 sm:$0xff]   ;;  %v7482_v62 = vld [vmem:[#allocation24 + $0x5a4] ss:$24 sps:$4 sm:$0xff]  }
 0x8c4   :  { %4054 = vmatprep.subr.bf16.mxu1 %v7398_v52  ;;  %5303 = vmatprep.subr.bf16.mxu0 %v7401_v14  ;;  %v7480_v52 = vld [vmem:[#allocation24 + $0x5a0] ss:$24 sps:$4 sm:$0xff]   ;;  %v7485_v14 = vld [vmem:[#allocation24 + $0x5d4] ss:$24 sps:$4 sm:$0xff]  }
 0x8c7   :  { %4055 = vmatpush1.bf16.msra.mxu1 %v7396_v17  ;;  %5304 = vmatpush1.bf16.msra.mxu0 %v7399_v19  ;;  %v7483_v17 = vld [vmem:[#allocation24 + $0x5d0] ss:$24 sps:$4 sm:$0xff]   ;;  %v7488_v19 = vld [vmem:[#allocation24 + $0x554] ss:$24 sps:$4 sm:$0xff]  }
 0x8c8   :  { %4285 = vmatprep.subr.bf16.mxu1 %v7404_v50  ;;  %v7486_v50 = vld [vmem:[#allocation24 + $0x550] ss:$24 sps:$4 sm:$0xff]  }
 0x8ca   :  { %6372 = vmatmul.mubr.msk.bf16.vlgmr.msra.gmra.mrb[20].mxu1 %vm2628_vm5, %v8852_v13  ;;  %6483 = vmatmul.mubr.msk.bf16.vlgmr.msra.gmra.mrb[44].mxu0 %vm2628_vm5, %v8816_v5  ;;  %v7414_v13 = vld [vmem:[#allocation24 + $0x310] ss:$24 sps:$4 sm:$0xff]  }
 0x8cb   :  { %4286 = vmatpush1.bf16.msra.mxu1 %v7402_v20  ;;  %4317 = vmatprep.mubr.bf16.mxu1 %v7911_v1  ;;  %v7491_v20 = vld [vmem:[#allocation24 + $0x584] ss:$24 sps:$4 sm:$0xff]  }
 0x8cc   :  { %4287 = vmatprep.subr.bf16.mxu1 %v7407_v23  ;;  %5469 = vmatprep.mubr.bf16.mxu0 %v7911_v1  ;;  %v7494_v23 = vld [vmem:[#allocation24 + $0x5b4] ss:$24 sps:$4 sm:$0xff]  }
 0x8cf   :  { %4288 = vmatpush1.bf16.msra.mxu1 %v7405_v57  ;;  %v7492_v57 = vld [vmem:[#allocation24 + $0x5b0] ss:$24 sps:$4 sm:$0xff]  }
 0x8d0   :  { %4289 = vmatprep.subr.bf16.mxu1 %v7410_v15  ;;  %v7497_v15 = vld [vmem:[#allocation24 + $0x5e4] ss:$24 sps:$4 sm:$0xff]  }
 0x8d3   :  { %4290 = vmatpush1.bf16.msra.mxu1 %v7408_v16  ;;  %v7495_v16 = vld [vmem:[#allocation24 + $0x5e0] ss:$24 sps:$4 sm:$0xff]  }
 0x8d4   :  { %4291 = vmatprep.subr.bf16.mxu1 %v7413_v25 }
 0x8d7   :  { %4292 = vmatpush1.bf16.msra.mxu1 %v7411_v27 }
 0x8d8   :  { %4371 = vmatprep.subr.bf16.mxu1 %v7416_v28 }
 0x8da   :  { %6398 = vmatmul.mubr.msk.bf16.vlgmr.msra.gmra.mrb[16].mxu1 %vm2628_vm5, %v8807_v2 }
 0x8db   :  { %4372 = vmatpush1.bf16.msra.mxu1 %v7414_v13  ;;  %4403 = vmatprep.mubr.bf16.mxu1 %v7911_v1 }
 0x8dc   :  { %4373 = vmatprep.subr.bf16.mxu1 %v7419_v55 }
 0x8df   :  { %4374 = vmatpush1.bf16.msra.mxu1 %v7417_v56 }
 0x8e0   :  { %4375 = vmatprep.subr.bf16.mxu1 %v7422_v29 }
 0x8e3   :  { %4376 = vmatpush1.bf16.msra.mxu1 %v7420_v30 }
 0x8e4   :  { %4377 = vmatprep.subr.bf16.mxu1 %v7425_v31 }
 0x8e7   :  { %4378 = vmatpush1.bf16.msra.mxu1 %v7423_v32 }
 0x8e8   :  { %4608 = vmatprep.subr.bf16.mxu1 %v7428_v43 }
 0x8ea   :  { %6400 = vmatmul.mubr.msk.bf16.vlgmr.msra.gmra.mrb[20].mxu1 %vm2628_vm5, %v8807_v2  ;;  %v7441_v2 = vld [vmem:[#allocation24 + $0x400] ss:$24 sps:$4 sm:$0xff]  }
 0x8eb   :  { %4609 = vmatpush1.bf16.msra.mxu1 %v7426_v42  ;;  %4640 = vmatprep.mubr.bf16.mxu1 %v7911_v1 }
 0x8ec   :  { %4610 = vmatprep.subr.bf16.mxu1 %v7431_v44  ;;  %v5395_v44 = vld [vmem:[#allocation9] sm:$0x1] }
 0x8ef   :  { %4611 = vmatpush1.bf16.msra.mxu1 %v7429_v45 }
 0x8f0   :  { %4612 = vmatprep.subr.bf16.mxu1 %v7434_v33 }
 0x8f3   :  { %4613 = vmatpush1.bf16.msra.mxu1 %v7432_v34 }
 0x8f4   :  { %4614 = vmatprep.subr.bf16.mxu1 %v7437_v35 }
 0x8f7   :  { %4615 = vmatpush1.bf16.msra.mxu1 %v7435_v36 }
 0x8f8   :  { %4694 = vmatprep.subr.bf16.mxu1 %v7440_v37  ;;  %v5402_v37 = vld [vmem:[#allocation26] sm:$0x3f] }
 0x8fa   :  { %6426 = vmatmul.mubr.msk.bf16.vlgmr.msra.gmra.mrb[16].mxu1 %vm2628_vm5, %v8810_v3 }
 0x8fb   :  { %4695 = vmatpush1.bf16.msra.mxu1 %v7438_v38  ;;  %4726 = vmatprep.mubr.bf16.mxu1 %v7911_v1  ;;  %v5411_v38 = vrot.slane %v5402_v37, %v8300_v24 }
 0x8fc   :  { %4696 = vmatprep.subr.bf16.mxu1 %v7443_v39 }
 0x8ff   :  { %4697 = vmatpush1.bf16.msra.mxu1 %v7441_v2 }
 0x900   :  { %4698 = vmatprep.subr.bf16.mxu1 %v7446_v40 }
 0x903   :  { %4699 = vmatpush1.bf16.msra.mxu1 %v7444_v41 }
 0x904   :  { %4700 = vmatprep.subr.bf16.mxu1 %v7449_v58  ;;  %v5418_v58 = vsub.s32 3, %v8262_v7 }
 0x907   :  { %4701 = vmatpush1.bf16.msra.mxu1 %v7447_v59 }
 0x908   :  { %4931 = vmatprep.subr.bf16.mxu1 %v7452_v47  ;;  %v5414_v47 = vsub.s32 2, %v8262_v7 }
 0x90a   :  { %6428 = vmatmul.mubr.msk.bf16.vlgmr.msra.gmra.mrb[20].mxu1 %vm2628_vm5, %v8810_v3  ;;  %v7465_v3 = vld [vmem:[#allocation24 + $0x4c0] ss:$24 sps:$4 sm:$0xff]  }
 0x90b   :  { %4932 = vmatpush1.bf16.msra.mxu1 %v7450_v48  ;;  %4963 = vmatprep.mubr.bf16.mxu1 %v7911_v1  ;;  %v5419_v48 = vrot.slane %v5402_v37, %v5418_v58  ;;  %v7512_v58 = vld [vmem:[%s9012_s22 + $0x78] sm:$0xff]  }
 0x90c   :  { %4933 = vmatprep.subr.bf16.mxu1 %v7455_v51 }
 0x90f   :  { %4934 = vmatpush1.bf16.msra.mxu1 %v7453_v18 }
 0x910   :  { %4935 = vmatprep.subr.bf16.mxu1 %v7458_v46  ;;  %v5422_v46 = vsub.s32 4, %v8262_v7 }
 0x913   :  { %4936 = vmatpush1.bf16.msra.mxu1 %v7456_v21  ;;  %v5407_v21 = vrot.slane %v5402_v37, %v8297_v22 }
 0x914   :  { %4937 = vmatprep.subr.bf16.mxu1 %v7461_v26 }
 0x917   :  { %4938 = vmatpush1.bf16.msra.mxu1 %v7459_v53  ;;  %v5426_v53 = vsub.s32 5, %v8262_v7 }
 0x918   :  { %5017 = vmatprep.subr.bf16.mxu1 %v7464_v54 }
 0x91a   :  { %6454 = vmatmul.mubr.msk.bf16.vlgmr.msra.gmra.mrb[16].mxu1 %vm2628_vm5, %v8813_v4 }
 0x91b   :  { %5018 = vmatpush1.bf16.msra.mxu1 %v7462_v61  ;;  %5049 = vmatprep.mubr.bf16.mxu1 %v7911_v1 }
 0x91c   :  { %5019 = vmatprep.subr.bf16.mxu1 %v7467_v63  ;;  %v5423_v63 = vrot.slane %v5402_v37, %v5422_v46 }
 0x91f   :  { %5020 = vmatpush1.bf16.msra.mxu1 %v7465_v3 }
 0x920   :  { %5021 = vmatprep.subr.bf16.mxu1 %v7470_v0  ;;  %v5427_v0 = vrot.slane %v5402_v37, %v5426_v53 }
 0x923   :  { %5022 = vmatpush1.bf16.msra.mxu1 %v7468_v8 }
 0x924   :  { %5023 = vmatprep.subr.bf16.mxu1 %v7473_v6 }
 0x927   :  { %5024 = vmatpush1.bf16.msra.mxu1 %v7471_v9 }
 0x928   :  { %5254 = vmatprep.subr.bf16.mxu1 %v7476_v10 }
 0x92a   :  { %6456 = vmatmul.mubr.msk.bf16.vlgmr.msra.gmra.mrb[20].mxu1 %vm2628_vm5, %v8813_v4  ;;  %v7489_v4 = vld [vmem:[#allocation24 + $0x580] ss:$24 sps:$4 sm:$0xff]  }
 0x92b   :  { %5255 = vmatpush1.bf16.msra.mxu1 %v7474_v11  ;;  %5286 = vmatprep.mubr.bf16.mxu1 %v7911_v1 }
 0x92c   :  { %5256 = vmatprep.subr.bf16.mxu1 %v7479_v12 }
 0x92f   :  { %5257 = vmatpush1.bf16.msra.mxu1 %v7477_v60 }
 0x930   :  { %5258 = vmatprep.subr.bf16.mxu1 %v7482_v62  ;;  %v268_v62 = vld [vmem:[%s9045_s15] sm:$0x3] }
 0x933   :  { %5259 = vmatpush1.bf16.msra.mxu1 %v7480_v52  ;;  %v276_v52 = vmul.f32 %v268_v62, %v268_v62 }
 0x934   :  { %5260 = vmatprep.subr.bf16.mxu1 %v7485_v14 }
 0x937   :  { %5261 = vmatpush1.bf16.msra.mxu1 %v7483_v17 }
 0x938   :  { %5340 = vmatprep.subr.bf16.mxu1 %v7488_v19 }
 0x93a   :  { %6482 = vmatmul.mubr.msk.bf16.vlgmr.msra.gmra.mrb[16].mxu1 %vm2628_vm5, %v8816_v5 }
 0x93b   :  { %5341 = vmatpush1.bf16.msra.mxu1 %v7486_v50  ;;  %5372 = vmatprep.mubr.bf16.mxu1 %v7911_v1 }
 0x93c   :  { %5342 = vmatprep.subr.bf16.mxu1 %v7491_v20 }
 0x93f   :  { %5343 = vmatpush1.bf16.msra.mxu1 %v7489_v4 }
 0x940   :  { %5344 = vmatprep.subr.bf16.mxu1 %v7494_v23 }
 0x943   :  { %5345 = vmatpush1.bf16.msra.mxu1 %v7492_v57 }
 0x944   :  { %5346 = vmatprep.subr.bf16.mxu1 %v7497_v15 }
 0x947   :  { %5347 = vmatpush1.bf16.msra.mxu1 %v7495_v16 }
 0x94a   :  { %6484 = vmatmul.mubr.msk.bf16.vlgmr.msra.gmra.mrb[20].mxu1 %vm2628_vm5, %v8816_v5 }
 0x99d   :  { %v5331_v25 = vpop.f32.mrb[44].mxu0 }
 0x99e   :  { %v5333_v27 = vpop.f32.mrb[45].mxu0 }
 0x99f   :  { %v5335_v28 = vpop.f32.mrb[46].mxu0 }
 0x9a0   :  { %v5398_v13 = vpack.c.bf16 %v5335_v28, %v5331_v25  ;;  %v5337_v55 = vpop.f32.mrb[47].mxu0 }
 0x9a1   :  { %v5399_v56 = vpack.c.bf16 %v5337_v55, %v5333_v27  ;;  %v7498_v27 = vld [vmem:[%s9012_s22 + $0x40] sm:$0xff]  }
 0xa0d   :  { %v5288_v29 = vpop.f32.mrb[16].mxu1 }
 0xa0e   :  { %v5290_v30 = vpop.f32.mrb[17].mxu1 }
 0xa0f   :  { %v5292_v31 = vpop.f32.mrb[18].mxu1 }
 0xa10   :  { %v5396_v32 = vpack.c.bf16 %v5292_v31, %v5288_v29  ;;  %v5294_v43 = vpop.f32.mrb[19].mxu1 }
 0xa11   :  { %v5397_v42 = vpack.c.bf16 %v5294_v43, %v5290_v30 }
 0xa13   :  { %5437 = vmatprep.subr.bf16.mxu0 %v5397_v42  ;;  %v7499_v42 = vld [vmem:[%s9012_s22] sm:$0xff]  }
 0xa14   :  { %5438 = vmatpush1.bf16.msra.mxu0 %v5396_v32 }
 0xa15   :  { %5478 = vmatprep.subr.bf16.mxu0 %v5399_v56  ;;  %v286_v56 = vld [vmem:[#allocation3] sm:$0x3] }
 0xa17   :  { %6485 = vmatmul.mubr.msk.bf16.vlgmr.msra.gmra.mrb[48].mxu0 %vm355_vm2, %v5395_v44 }
 0xa18   :  { %5479 = vmatpush1.bf16.msra.mxu0 %v5398_v13  ;;  %5510 = vmatprep.mubr.bf16.mxu0 %v7911_v1  ;;  %v269_v13 = vld [vmem:[%s9046_s1] sm:$0x3] }
 0xa1d   :  { %v5374_v5 = vpop.f32.mrb[20].mxu1 }
 0xa1e   :  { %v5376_v45 = vpop.f32.mrb[21].mxu1 }
 0xa1f   :  { %v5378_v33 = vpop.f32.mrb[22].mxu1  ;;  %6486 = vmatmul.mubr.msk.bf16.vlgmr.msra.gmra.mrb[52].mxu0 %vm355_vm2, %v5395_v44 }
 0xa20   :  { %v5400_v34 = vpack.c.bf16 %v5378_v33, %v5374_v5  ;;  %v5380_v35 = vpop.f32.mrb[23].mxu1  ;;  %5551 = vmatprep.mubr.bf16.mxu0 %v7911_v1  ;;  %v5415_v1 = vrot.slane %v5402_v37, %v5414_v47  ;;  %v7500_v5 = vld [vmem:[%s9012_s22 + $0x48] sm:$0xff]   ;;  %v7502_v33 = vld [vmem:[%s9012_s22 + $0x50] sm:$0xff]   ;;  %v7506_v37 = vld [vmem:[%s9012_s22 + $0x60] sm:$0xff]  }
 0xa21   :  { %v5401_v36 = vpack.c.bf16 %v5380_v35, %v5376_v45  ;;  %v7501_v45 = vld [vmem:[%s9012_s22 + $0x8] sm:$0xff]   ;;  %v7504_v35 = vld [vmem:[%s9012_s22 + $0x58] sm:$0xff]  }
 0xa23   :  { %5519 = vmatprep.subr.bf16.mxu0 %v5401_v36  ;;  %v7505_v36 = vld [vmem:[%s9012_s22 + $0x18] sm:$0xff]  }
 0xa24   :  { %5520 = vmatpush1.bf16.msra.mxu0 %v5400_v34  ;;  %v7503_v34 = vld [vmem:[%s9012_s22 + $0x10] sm:$0xff]  }
 0xa27   :  { %6487 = vmatmul.mubr.msk.bf16.vlgmr.msra.gmra.mrb[56].mxu0 %vm355_vm2, %v5395_v44  ;;  %vm5646_vm2 = vcmask 1041408  }
 0xaea   :  { %v5471_v39 = vpop.f32.mrb[48].mxu0 }
 0xaeb   :  { %v5473_v2 = vpop.f32.mrb[49].mxu0  ;;  %v5472_v3 = vadd.f32 %v5471_v39, %v5407_v21  ;;  %v7508_v39 = vld [vmem:[%s9012_s22 + $0x68] sm:$0xff]  }
 0xaec   :  { %v5474_v40 = vadd.f32 %v5473_v2, %v5411_v38  ;;  %v5475_v41 = vpop.f32.mrb[50].mxu0  ;;  %v7507_v38 = vld [vmem:[%s9012_s22 + $0x20] sm:$0xff]   ;;  %v7509_v2 = vld [vmem:[%s9012_s22 + $0x28] sm:$0xff]  }
 0xaed   :  { %v5476_v59 = vpop.f32.mrb[51].mxu0  ;;  %v7511_v41 = vld [vmem:[%s9012_s22 + $0x30] sm:$0xff]  }
 0xaee   :  { %5624 = vmatprep.mubr.f32.mxu0 %v5474_v40  ;;  %v7510_v40 = vld [vmem:[%s9012_s22 + $0x70] sm:$0xff]   ;;  %v7513_v59 = vld [vmem:[%s9012_s22 + $0x38] sm:$0xff]  }
 0xaf2   :  { %v5512_v51 = vpop.f32.mrb[52].mxu0 }
 0xaf3   :  { %v5514_v18 = vpop.f32.mrb[53].mxu0  ;;  %v5513_v54 = vadd.f32 %v5512_v51, %v5415_v1 }
 0xaf4   :  { %v5515_v26 = vadd.f32 %v5514_v18, %v5419_v48  ;;  %v5516_v24 = vpop.f32.mrb[54].mxu0 }
 0xaf5   :  { %v5517_v61 = vpop.f32.mrb[55].mxu0 }
 0xaf6   :  { %5560 = vmatprep.subr.mxu0 %v5515_v26 }
 0xaf7   :  { %5561 = vmatpush1.xpose.msra.mxu0 %v5513_v54 }
 0xafa   :  { %5625 = vmatmul.mubr.f32.vlgmr.msra.gmra.mrb[60].mxu0 %v5472_v3  ;;  %v5553_v8 = vpop.f32.mrb[56].mxu0 }
 0xafb   :  { %v5554_v6 = vadd.f32 %v5553_v8, %v5423_v63  ;;  %v5555_v9 = vpop.f32.mrb[57].mxu0  ;;  %5717 = vmatprep.mubr.f32.mxu0 %v7912_v49  ;;  %v277_v49 = vsub.f32 1.0, %v276_v52 }
 0xafc   :  { %v5556_v10 = vadd.f32 %v5555_v9, %v5427_v0  ;;  %v5557_v22 = vpop.f32.mrb[58].mxu0 }
 0xafd   :  { %v5558_v11 = vpop.f32.mrb[59].mxu0  ;;  %v278_v50 = vmax.f32 %v277_v49, 0.0 }
 0xafe   :  { %6488 = vmatprep.subr.msk.mxu0 %vm5646_vm2, %v5556_v10 }
 0xaff   :  { %6489 = vmatpush1.msk.msra.mxu0 %vm5646_vm2, %v5554_v6  ;;  %vm281_vm7 = vcmp.eq.f32.partialorder %v278_v50, inf  ;;  %v284_v15 = vand.u32 2147483648, %v278_v50  ;;  %vm283_vm8 = vcmp.eq.f32.partialorder %v278_v50, 0.0 }
 0xb00   :  { %6643 = vmatprep.subr.bf16.mxu0 %v7498_v27 }
 0xbcd   :  { %v5626_v7 = vpop.f32.mrb[60].mxu0 }
 0xbce   :  { %v5628_v12 = vpop.f32.mrb[61].mxu0  ;;  %v5631_v60 = vsel %vm5630_vm6, %v5626_v7, -inf }
 0xbcf   :  { %5632 = vmax.xlane.f32.xlu0 %v5631_v60 }
 0xbe5   :  { %272 = vperm.xlu0 %6947, %v268_v62  }
 0xc5c   :  { %v5633_v14 = vpop.xlane.xlu0 %5632 }
 0xc5d   :  { %v5634_v17 = vsub.f32 %v5626_v7, %v5633_v14 }
 0xc5f   :  { %v5635_v19 = vmul.f32 1.442695, %v5634_v17 }
 0xc61   :  { %7514 = vpow2.f32 %v5635_v19 }
 0xc62   :  { %7516 = vrsqrt.f32 %v278_v50 }
 0xc64   :  { %v273_v55 = vpop.permute.xlu0 %272 }
 0xc65   :  { %v275_v30 = vmul.f32 %v273_v55, %v269_v13 }
 0xc6b   :  { %v7515_v20 = vpop.eup %7514 }
 0xc6c   :  { %v5637_v4 = vsel %vm5630_vm6, %v7515_v20, 0.0  ;;  %v7517_v23 = vpop.eup %7516 }
 0xc6d   :  { %5638 = vadd.xlane.f32.xlu1 %v5637_v4  ;;  %v280_v57 = vmul.f32 %v7517_v23, %v278_v50 }
 0xc6f   :  { %v282_v16 = vsel %vm281_vm7, %v278_v50, %v280_v57 }
 0xc70   :  { %v285_v25 = vsel %vm283_vm8, %v284_v15, %v282_v16 }
 0xc7e   :  { %289 = vperm.xlu1 %6948, %v285_v25  }
 0xcfa   :  { %v5639_v28 = vpop.xlane.xlu1 %5638 }
 0xcfb   :  { %7518 = vrcp.f32 %v5639_v28 }
 0xcfe   :  { %v290_v29 = vpop.permute.xlu1 %289 }
 0xcff   :  { %v292_v31 = vmul.f32 %v290_v29, %v286_v56 }
 0xd01   :  { %v293_v32 = vadd.f32 %v292_v31, %v275_v30 }
 0xd03   :  { %295 = vst.msk [vmem:[#allocation27] sm:$0x3] %vm294_vm9, %v293_v32 }
 0xd05   :  { %v7519_v43 = vpop.eup %7518 }
 0xd06   :  { %v5641_v44 = vmul.f32 %v7519_v43, %v7515_v20 }
 0xd08   :  { %6490 = vmatmul.mubr.msk.f32.vlgmr.msra.gmra.mrb[62].mxu0 %vm5642_vm10, %v5641_v44 }
 0xd09   :  { %6644 = vmatpush3.bf16.msra.mxu0 %v7499_v42 }
 0xd0a   :  { %6645 = vmatprep.subr.bf16.mxu0 %v7500_v5 }
 0xd0d   :  { %6646 = vmatpush3.bf16.msra.mxu0 %v7501_v45 }
 0xd0e   :  { %6647 = vmatprep.subr.bf16.mxu0 %v7502_v33 }
 0xd11   :  { %6648 = vmatpush3.bf16.msra.mxu0 %v7503_v34 }
 0xd12   :  { %6649 = vmatprep.subr.bf16.mxu0 %v7504_v35 }
 0xd15   :  { %6650 = vmatpush3.bf16.msra.mxu0 %v7505_v36 }
 0xd16   :  { %6651 = vmatprep.subr.bf16.mxu0 %v7506_v37 }
 0xd19   :  { %6652 = vmatpush3.bf16.msra.mxu0 %v7507_v38 }
 0xd1a   :  { %6653 = vmatprep.subr.bf16.mxu0 %v7508_v39 }
 0xd1d   :  { %6654 = vmatpush3.bf16.msra.mxu0 %v7509_v2 }
 0xd1e   :  { %6655 = vmatprep.subr.bf16.mxu0 %v7510_v40 }
 0xd21   :  { %6656 = vmatpush3.bf16.msra.mxu0 %v7511_v41 }
 0xd22   :  { %6657 = vmatprep.subr.bf16.mxu0 %v7512_v58 }
 0xd25   :  { %6658 = vmatpush3.bf16.msra.mxu0 %v7513_v59 }
 0xddb   :  { %v5719_v47 = vpop.f32.mrb[62].mxu0 }
 0xddc   :  { %v5721_v48 = vpop.f32.mrb[63].mxu0  ;;  %v5724_v51 = vpack.c.bf16 %v5719_v47, %v5719_v47 }
 0xddd   :  { %v5725_v1 = vpack.c.bf16 %v5721_v48, %v5721_v48 }
 0xddf   :  { %5893 = vmatprep.mubr.bf16.mxu0 %v5725_v1 }
 0xde0   :  { %5894 = vmatmul.mubr.bf16.vlgmr.msra.gmra.mrb[64].mxu0 %v5724_v51 }
 0xde1   :  { %7861 = shalt.err (!%p7858_p12)
}
 0xde2   :  { %s9047_s0 = sld [smem:[#allocation48_spill]] }
 0xde8   :  { %s7862_s17 = scalar_lea.hbm %s9047_s0, 32 }
 0xde9   :  { %p7863_p13 = scmp.ne.s32.totalorder %s9047_s0, %s7862_s17  ;;  %p7866_p0 = scmp.lt.u32.totalorder %s7862_s17, %s9047_s0 }
 0xdeb   :  { %p7868_p1 = pnand %p7866_p0, %p7863_p13 }
 0xded   :  { %7871 = shalt.err (!%p7868_p1)
}
 0xdee   :  { %5914 = dma.vmem_to_hbm [thread:$0]  %s5912_s29, 32, %s9047_s0, [#allocation5]   ;;  %v6491_v46 = vld [vmem:[#allocation2] ss:$0 sm:$0xff]  ;;  %vm5901_vm11 = vcmask 1024  }
 0xdef   :  { %s9048_s3 = sld [smem:[#allocation47_spill]] }
 0xeb3   :  { %v6659_v18 = vpop.f32.mrb[64].mxu0 }
 0xeb4   :  { %v6660_v21 = vpop.f32.mrb[65].mxu0 }
 0xeb5   :  { %v6661_v26 = vadd.f32 %v6660_v21, %v6659_v18  ;;  %v6662_v24 = vpop.f32.mrb[66].mxu0 }
 0xeb6   :  { %v6663_v53 = vpop.f32.mrb[67].mxu0 }
 0xeb7   :  { %v5896_v54 = vadd.f32 %v6661_v26, %v6491_v46 }
 0xeb9   :  { %5902 = vst.msk [vmem:[%s9048_s3] sm:$0x3] %vm5901_vm11, %v5896_v54 }
 0xeba   :  { %7888 = dma.done.wait [#allocation5], 32  }
 0xebb   :  { %7889 = vsyncadd [#allocation5], 4294967264 }
 0xebc   :  { %5920 = vsyncpa [#allocation4], 1 }
 0xebd   :  { %5921 = vsyncpa [#allocation7], 1 }
 0xebe   :  { %5922 = vsyncpa [#allocation10], 1 }
 0xebf   :  { %5923 = vsyncpa [#allocation13], 1 }
 0xec0   :  { %5924 = vsyncpa [#allocation16], 1 }
 0xec1   :  { %5925 = vsyncpa [#allocation19], 1 }
 0xec2   :  { %5926 = vsyncpa [#allocation22], 1 }
 0xec3   :  { %5927 = vsyncpa [#allocation25], 1 }
 0xec4   :  { %5928 = vsyncpa [#allocation5], 1 }

</bundles_post_ra>
